<compile_context>
chip_gen: v7x
topology: tpu7x:2x2x1
jax: 0.10.0
libtpu: 0.0.40
codegen_flags: <defaults>
</compile_context>

<pallas_src>
import jax
import jax.numpy as jnp
from jax.experimental import pallas as pl
from jax.experimental.pallas import tpu as pltpu


# ---------------------------------------------------------------------------
# Kernels
# ---------------------------------------------------------------------------

def qnet_fused_kernel(obs_ref, w1_ref, b1_ref, w2_ref, b2_ref, w3_ref, b3_ref,
                      out_ref):
    """Whole MLP in one grid step (optionally tiled over batch on a parallel axis)."""
    # Layer 1 (K = obs_dim, tiny): f32 matmul + bias + ReLU, cast to bf16 for MXU.
    h1 = jnp.dot(obs_ref[...], w1_ref[...], preferred_element_type=jnp.float32)
    h1 = jnp.maximum(h1 + b1_ref[...], 0.0).astype(jnp.bfloat16)

    # Layer 2: bf16 x bf16 -> f32 accumulate, bias + ReLU, cast to bf16.
    h2 = jnp.dot(h1, w2_ref[...], preferred_element_type=jnp.float32)
    h2 = jnp.maximum(h2 + b2_ref[...], 0.0).astype(jnp.bfloat16)

    # Layer 3: native n_actions-wide output (no lane padding of w3/out).
    out = jnp.dot(h2, w3_ref[...], preferred_element_type=jnp.float32) + b3_ref[...]
    out_ref[...] = out.astype(out_ref.dtype)


def qnet_stream_kernel(obs_ref, w1_ref, b1_ref, w2_ref, b2_ref, w3_ref, b3_ref,
                       out_ref, h1_ref, acc_ref):
    """Streaming variant: layer-2 hidden dim split into tn-wide chunks over the grid.

    The single grid axis is a reduction; it MUST stay "arbitrary" (out_ref is only
    written on the last step and acc_ref persists across steps).  Do NOT flip it
    to "parallel".
    """
    n = pl.program_id(0)

    @pl.when(n == 0)
    def _init():
        h1 = jnp.dot(obs_ref[...], w1_ref[...], preferred_element_type=jnp.float32)
        h1_ref[...] = jnp.maximum(h1 + b1_ref[...], 0.0).astype(h1_ref.dtype)
        acc_ref[...] = jnp.zeros_like(acc_ref)

    # Layer 2: one tn-wide column chunk of the (padded) hidden layer.
    h2 = jnp.dot(h1_ref[...], w2_ref[...], preferred_element_type=jnp.float32)
    h2 = jnp.maximum(h2 + b2_ref[...], 0.0)

    # Layer 3: partial product for this chunk, accumulated in f32.
    acc_ref[...] += jnp.dot(h2.astype(jnp.bfloat16), w3_ref[...],
                            preferred_element_type=jnp.float32)

    @pl.when(n == pl.num_programs(0) - 1)
    def _finalize():
        out_ref[...] = (acc_ref[...] + b3_ref[...]).astype(out_ref.dtype)


# ---------------------------------------------------------------------------
# Wrapper
# ---------------------------------------------------------------------------

def qnet_forward(obs, w1, b1, w2, b2, w3, b3, n_actions=None, *, tn=None, bm=None):
    """Run the fused MLP. Weights must already be padded/cast (prepare_qnet_params).

    tn: layer-2 chunk width for the streaming variant. Default None -> tn = H2
        (single grid step, fused kernel; the recommended configuration).
    bm: batch tile for the fused path. Default None -> bm = B (single tile).  For
        large batches on v7x, a bm < B adds a "parallel" grid axis so both
        TensorCores are engaged.
    """
    B, obs_dim = obs.shape
    H1 = w1.shape[1]       # padded hidden 1 (e.g. 512)
    H2 = w2.shape[1]       # padded hidden 2 (e.g. 2048)
    n_out = w3.shape[1]    # native n_actions (no lane padding)
    if n_actions is None:
        n_actions = n_out

    # Advisory cost hint for XLA around this microsecond-scale custom call.
    flops = 2 * B * (obs_dim * H1 + H1 * H2 + H2 * n_out)
    bytes_accessed = (obs.size * 4 + w1.size * 4 + b1.size * 4 + w2.size * 2
                      + b2.size * 4 + w3.size * 2 + b3.size * 4 + B * n_out * 4)
    cost = pl.CostEstimate(flops=flops, transcendentals=0,
                           bytes_accessed=bytes_accessed)

    if tn is None:
        tn = H2
    assert H2 % tn == 0
    n_steps = H2 // tn

    if n_steps == 1:
        # -------- fused path (default): no scratch, no accumulation phases ----
        if bm is None:
            bm = B
        assert B % bm == 0 and (bm % 8 == 0 or bm == B)
        grid = (B // bm,)
        out = pl.pallas_call(
            qnet_fused_kernel,
            out_shape=jax.ShapeDtypeStruct((B, n_out), jnp.float32),
            grid=grid,
            in_specs=[
                pl.BlockSpec((bm, obs_dim), lambda i: (i, 0)),
                pl.BlockSpec((obs_dim, H1), lambda i: (0, 0)),
                pl.BlockSpec((1, H1), lambda i: (0, 0)),
                pl.BlockSpec((H1, H2), lambda i: (0, 0)),
                pl.BlockSpec((1, H2), lambda i: (0, 0)),
                pl.BlockSpec((H2, n_out), lambda i: (0, 0)),
                pl.BlockSpec((1, n_out), lambda i: (0, 0)),
            ],
            out_specs=pl.BlockSpec((bm, n_out), lambda i: (i, 0)),
            compiler_params=pltpu.CompilerParams(
                dimension_semantics=("parallel",),  # batch tiles are independent
            ),
            cost_estimate=cost,
        )(obs, w1, b1, w2, b2, w3, b3)
    else:
        # -------- streaming path (tn < H2): reduction over layer-2 chunks -----
        out = pl.pallas_call(
            qnet_stream_kernel,
            out_shape=jax.ShapeDtypeStruct((B, n_out), jnp.float32),
            grid=(n_steps,),
            in_specs=[
                # Pinned blocks (constant index -> DMA'd once, stay resident).
                pl.BlockSpec((B, obs_dim), lambda n: (0, 0)),
                pl.BlockSpec((obs_dim, H1), lambda n: (0, 0)),
                pl.BlockSpec((1, H1), lambda n: (0, 0)),
                # Streamed layer-2 / layer-3 tiles.
                pl.BlockSpec((H1, tn), lambda n: (0, n)),
                pl.BlockSpec((1, tn), lambda n: (0, n)),
                pl.BlockSpec((tn, n_out), lambda n: (n, 0)),
                pl.BlockSpec((1, n_out), lambda n: (0, 0)),
            ],
            out_specs=pl.BlockSpec((B, n_out), lambda n: (0, 0)),
            scratch_shapes=[
                pltpu.VMEM((B, H1), jnp.bfloat16),   # h1, computed once
                pltpu.VMEM((B, n_out), jnp.float32),  # layer-3 accumulator
            ],
            compiler_params=pltpu.CompilerParams(
                # Reduction axis: MUST stay "arbitrary" (accumulator + last-step write).
                dimension_semantics=("arbitrary",),
            ),
            cost_estimate=cost,
        )(obs, w1, b1, w2, b2, w3, b3)

    return out[:, :n_actions]


# ---------------------------------------------------------------------------
# Parameter helpers
# ---------------------------------------------------------------------------

def init_qnet_params(key, obs_dim, layers_dbn, n_actions):
    """Deterministic init of the qnet MLP params (PyTorch nn.Linear-style uniform)."""
    dims = [obs_dim] + list(layers_dbn) + [n_actions]
    params = []
    for i in range(len(dims) - 1):
        fan_in, fan_out = dims[i], dims[i + 1]
        key, kw, kb = jax.random.split(key, 3)
        bound = 1.0 / jnp.sqrt(jnp.float32(fan_in))
        w = jax.random.uniform(kw, (fan_in, fan_out), jnp.float32, -bound, bound)
        b = jax.random.uniform(kb, (1, fan_out), jnp.float32, -bound, bound)
        params.append((w, b))
    return params


def _round_up(x, m):
    return ((x + m - 1) // m) * m


def prepare_qnet_params(params):
    """Zero-pad hidden dims to multiples of 128 and cast the large weights to bf16.

    Hidden-dim zero padding is numerically exact: padded h1/h2 columns are
    relu(0+0)=0 and the extra w2/w3 rows they multiply are zero.  The output /
    w3-column dimension is deliberately NOT padded (kept at native n_actions) to
    avoid streaming 16x more w3 bytes than needed.
    """
    (w1, b1), (w2, b2), (w3, b3) = params
    H1 = _round_up(w1.shape[1], 128)   # 500 -> 512
    H2 = _round_up(w2.shape[1], 128)   # 2000 -> 2048
    n_out = w3.shape[1]                # 8 -> 8 (no lane padding)

    def pad2(a, rows, cols):
        return jnp.pad(a, ((0, rows - a.shape[0]), (0, cols - a.shape[1])))

    w1p = pad2(w1, w1.shape[0], H1).astype(jnp.float32)   # tiny -> keep f32
    b1p = pad2(b1, 1, H1).astype(jnp.float32)
    w2p = pad2(w2, H1, H2).astype(jnp.bfloat16)            # ~2 MB instead of ~4 MB
    b2p = pad2(b2, 1, H2).astype(jnp.float32)
    w3p = pad2(w3, H2, n_out).astype(jnp.bfloat16)         # rows padded only, 32 KB
    b3p = b3.astype(jnp.float32)
    return w1p, b1p, w2p, b2p, w3p, b3p


# ---------------------------------------------------------------------------
# Self-test
# ---------------------------------------------------------------------------

if __name__ == "__main__":
    # Module-consistent small config:
    #   ob_space ~ Tuple of 4 Discretes -> obs_dim = 4
    #   ac_space ~ Discrete(8)          -> n_actions = 8
    #   layers_dbn default              -> [500, 2000]
    #   n_batch default                 -> 16
    obs_dim = 4
    n_actions = 8
    layers_dbn = [500, 2000]
    batch = 16

    key = jax.random.PRNGKey(0)
    key, kobs = jax.random.split(key)
    obs = jax.random.normal(kobs, (batch, obs_dim), jnp.float32)

    params = init_qnet_params(key, obs_dim, layers_dbn, n_actions)
    w1p, b1p, w2p, b2p, w3p, b3p = prepare_qnet_params(params)

    # Default (recommended) path: single fused grid step.
    qvals = qnet_forward(obs, w1p, b1p, w2p, b2p, w3p, b3p, n_actions)
    qvals = jax.block_until_ready(qvals)
    assert qvals.shape == (batch, n_actions)

    # Same-precision reference (bf16 weights / activations, f32 accumulation).
    h1 = jnp.maximum(obs @ w1p + b1p, 0.0).astype(jnp.bfloat16)
    h2 = jnp.maximum(
        jnp.dot(h1, w2p, preferred_element_type=jnp.float32) + b2p, 0.0
    ).astype(jnp.bfloat16)
    ref_bf16 = jnp.dot(h2, w3p, preferred_element_type=jnp.float32) + b3p
    assert jnp.allclose(qvals, ref_bf16[:, :n_actions], atol=1e-2, rtol=1e-2)

    # Loose sanity check against the full-f32 PyTorch-equivalent forward.
    (w1, b1), (w2, b2), (w3, b3) = params
    h1f = jnp.maximum(obs @ w1 + b1, 0.0)
    h2f = jnp.maximum(h1f @ w2 + b2, 0.0)
    ref_f32 = h2f @ w3 + b3
    assert jnp.allclose(qvals, ref_f32, atol=5e-2, rtol=5e-2)

    # Streaming variant (tn sweep) matches the fused path.
    q_stream = jax.block_until_ready(
        qnet_forward(obs, w1p, b1p, w2p, b2p, w3p, b3p, n_actions, tn=1024))
    assert jnp.allclose(qvals, q_stream, atol=1e-2, rtol=1e-2)

    # Batch-parallel variant (megacore-friendly) matches as well.
    q_bm = jax.block_until_ready(
        qnet_forward(obs, w1p, b1p, w2p, b2p, w3p, b3p, n_actions, bm=8))
    assert jnp.allclose(qvals, q_bm, atol=1e-2, rtol=1e-2)

    print("KERNEL_OK")
</pallas_src>

<mosaic_0001>
module attributes {stable_mosaic.version = 11 : i64} {
  func.func @qnet_fused_kernel(%arg0: i32, %arg1: memref<16x4xf32, #tpu.memory_space<vmem>>, %arg2: memref<4x512xf32, #tpu.memory_space<vmem>>, %arg3: memref<1x512xf32, #tpu.memory_space<vmem>>, %arg4: memref<512x2048xbf16, #tpu.memory_space<vmem>>, %arg5: memref<1x2048xf32, #tpu.memory_space<vmem>>, %arg6: memref<2048x8xbf16, #tpu.memory_space<vmem>>, %arg7: memref<1x8xf32, #tpu.memory_space<vmem>>, %arg8: memref<16x8xf32, #tpu.memory_space<vmem>>) attributes {dimension_semantics = [#tpu.dimension_semantics<parallel>], iteration_bounds = array<i64: 1>, scalar_prefetch = 0 : i64, scratch_operands = 0 : i64, tpu.core_type = #tpu.core_type<tc>, window_params = [{transform_indices = @transform_0, window_bounds = array<i64: 16, 4>}, {pipeline_mode = #tpu.pipeline_mode<synchronous>, transform_indices = @transform_1, window_bounds = array<i64: 4, 512>}, {pipeline_mode = #tpu.pipeline_mode<synchronous>, transform_indices = @transform_2, window_bounds = array<i64: 1, 512>}, {pipeline_mode = #tpu.pipeline_mode<synchronous>, transform_indices = @transform_3, window_bounds = array<i64: 512, 2048>}, {pipeline_mode = #tpu.pipeline_mode<synchronous>, transform_indices = @transform_4, window_bounds = array<i64: 1, 2048>}, {pipeline_mode = #tpu.pipeline_mode<synchronous>, transform_indices = @transform_5, window_bounds = array<i64: 2048, 8>}, {pipeline_mode = #tpu.pipeline_mode<synchronous>, transform_indices = @transform_6, window_bounds = array<i64: 1, 8>}, {transform_indices = @transform_7, window_bounds = array<i64: 16, 8>}]} {
    %c0 = arith.constant 0 : index
    %c0_0 = arith.constant 0 : index
    %0 = vector.load %arg1[%c0, %c0_0] : memref<16x4xf32, #tpu.memory_space<vmem>>, vector<16x4xf32>
    %c0_1 = arith.constant 0 : index
    %c0_2 = arith.constant 0 : index
    %1 = vector.load %arg2[%c0_1, %c0_2] : memref<4x512xf32, #tpu.memory_space<vmem>>, vector<4x512xf32>
    %cst = arith.constant dense<0.000000e+00> : vector<16x512xf32>
    %2 = tpu.matmul %0, %1, %cst {dimension_numbers = #tpu.dot_dimension_numbers<[1], [0], [0], [1], [0, 0, 1, 1], [], []>} : vector<16x4xf32>, vector<4x512xf32>, vector<16x512xf32> -> vector<16x512xf32>
    %c0_3 = arith.constant 0 : index
    %c0_4 = arith.constant 0 : index
    %3 = vector.load %arg3[%c0_3, %c0_4] : memref<1x512xf32, #tpu.memory_space<vmem>>, vector<1x512xf32>
    %4 = vector.broadcast %3 : vector<1x512xf32> to vector<16x512xf32>
    %5 = arith.addf %2, %4 : vector<16x512xf32>
    %cst_5 = arith.constant 0.000000e+00 : f32
    %6 = vector.broadcast %cst_5 : f32 to vector<16x512xf32>
    %7 = arith.maximumf %5, %6 : vector<16x512xf32>
    %8 = arith.truncf %7 : vector<16x512xf32> to vector<16x512xbf16>
    %c0_6 = arith.constant 0 : index
    %c0_7 = arith.constant 0 : index
    %9 = vector.load %arg4[%c0_6, %c0_7] : memref<512x2048xbf16, #tpu.memory_space<vmem>>, vector<512x2048xbf16>
    %cst_8 = arith.constant dense<0.000000e+00> : vector<16x2048xf32>
    %10 = tpu.matmul %8, %9, %cst_8 {dimension_numbers = #tpu.dot_dimension_numbers<[1], [0], [0], [1], [0, 0, 1, 1], [], []>} : vector<16x512xbf16>, vector<512x2048xbf16>, vector<16x2048xf32> -> vector<16x2048xf32>
    %c0_9 = arith.constant 0 : index
    %c0_10 = arith.constant 0 : index
    %11 = vector.load %arg5[%c0_9, %c0_10] : memref<1x2048xf32, #tpu.memory_space<vmem>>, vector<1x2048xf32>
    %12 = vector.broadcast %11 : vector<1x2048xf32> to vector<16x2048xf32>
    %13 = arith.addf %10, %12 : vector<16x2048xf32>
    %cst_11 = arith.constant 0.000000e+00 : f32
    %14 = vector.broadcast %cst_11 : f32 to vector<16x2048xf32>
    %15 = arith.maximumf %13, %14 : vector<16x2048xf32>
    %16 = arith.truncf %15 : vector<16x2048xf32> to vector<16x2048xbf16>
    %c0_12 = arith.constant 0 : index
    %c0_13 = arith.constant 0 : index
    %17 = vector.load %arg6[%c0_12, %c0_13] : memref<2048x8xbf16, #tpu.memory_space<vmem>>, vector<2048x8xbf16>
    %cst_14 = arith.constant dense<0.000000e+00> : vector<16x8xf32>
    %18 = tpu.matmul %16, %17, %cst_14 {dimension_numbers = #tpu.dot_dimension_numbers<[1], [0], [0], [1], [0, 0, 1, 1], [], []>} : vector<16x2048xbf16>, vector<2048x8xbf16>, vector<16x8xf32> -> vector<16x8xf32>
    %c0_15 = arith.constant 0 : index
    %c0_16 = arith.constant 0 : index
    %19 = vector.load %arg7[%c0_15, %c0_16] : memref<1x8xf32, #tpu.memory_space<vmem>>, vector<1x8xf32>
    %20 = vector.broadcast %19 : vector<1x8xf32> to vector<16x8xf32>
    %21 = arith.addf %18, %20 : vector<16x8xf32>
    %c0_17 = arith.constant 0 : index
    %c0_18 = arith.constant 0 : index
    %22 = vector.load %arg8[%c0_17, %c0_18] : memref<16x8xf32, #tpu.memory_space<vmem>>, vector<16x8xf32>
    tpu.vector_store %arg8[%c0_17, %c0_18], %21 {strides = array<i32>} : memref<16x8xf32, #tpu.memory_space<vmem>>, vector<16x8xf32>,
    return
  }
  func.func @transform_0(%arg0: i32) -> (i32, i32) {
    %c0_i32 = arith.constant 0 : i32
    %c0_i32_0 = arith.constant 0 : i32
    return %arg0, %c0_i32 : i32, i32
  }
  func.func @transform_1(%arg0: i32) -> (i32, i32) {
    %c0_i32 = arith.constant 0 : i32
    %c0_i32_0 = arith.constant 0 : i32
    %c0_i32_1 = arith.constant 0 : i32
    return %c0_i32, %c0_i32_0 : i32, i32
  }
  func.func @transform_2(%arg0: i32) -> (i32, i32) {
    %c0_i32 = arith.constant 0 : i32
    %c0_i32_0 = arith.constant 0 : i32
    %c0_i32_1 = arith.constant 0 : i32
    return %c0_i32, %c0_i32_0 : i32, i32
  }
  func.func @transform_3(%arg0: i32) -> (i32, i32) {
    %c0_i32 = arith.constant 0 : i32
    %c0_i32_0 = arith.constant 0 : i32
    %c0_i32_1 = arith.constant 0 : i32
    return %c0_i32, %c0_i32_0 : i32, i32
  }
  func.func @transform_4(%arg0: i32) -> (i32, i32) {
    %c0_i32 = arith.constant 0 : i32
    %c0_i32_0 = arith.constant 0 : i32
    %c0_i32_1 = arith.constant 0 : i32
    return %c0_i32, %c0_i32_0 : i32, i32
  }
  func.func @transform_5(%arg0: i32) -> (i32, i32) {
    %c0_i32 = arith.constant 0 : i32
    %c0_i32_0 = arith.constant 0 : i32
    %c0_i32_1 = arith.constant 0 : i32
    return %c0_i32, %c0_i32_0 : i32, i32
  }
  func.func @transform_6(%arg0: i32) -> (i32, i32) {
    %c0_i32 = arith.constant 0 : i32
    %c0_i32_0 = arith.constant 0 : i32
    %c0_i32_1 = arith.constant 0 : i32
    return %c0_i32, %c0_i32_0 : i32, i32
  }
  func.func @transform_7(%arg0: i32) -> (i32, i32) {
    %c0_i32 = arith.constant 0 : i32
    %c0_i32_0 = arith.constant 0 : i32
    return %arg0, %c0_i32 : i32, i32
  }
}

</mosaic_0001>

<bundles_post_ra>
// kernel: tpu_custom_call.1
= control target key start
LH: loop header
LB: loop body
LE: loop exit
PB: predicated region body
PF: predicated region fallthrough
CT: control target
= control target key end

     0   :  { %12 = vsyncpa [#allocation3], 0  ;;  %s7364_s0 = inlined_call_operand.vmem [shape: f32[16,4], index: 0, kind: input, shape index: {}]   ;;  %s7365_s1 = inlined_call_operand.hbm [shape: f32[4,512], index: 1, kind: input, shape index: {}]   ;;  %s7366_s2 = inlined_call_operand.hbm [shape: f32[1,512], index: 2, kind: input, shape index: {}]   ;;  %s7367_s3 = inlined_call_operand.hbm [shape: bf16[512,2048], index: 3, kind: input, shape index: {}]   ;;  %s7368_s4 = inlined_call_operand.hbm [shape: f32[1,2048], index: 4, kind: input, shape index: {}]   ;;  %s7369_s5 = inlined_call_operand.vmem [shape: bf16[2048,8], index: 5, kind: input, shape index: {}]   ;;  %s7370_s6 = inlined_call_operand.hbm [shape: f32[1,8], index: 6, kind: input, shape index: {}]   ;;  %s7371_s7 = inlined_call_operand.vmem [shape: f32[16,8], index: 7, kind: output, shape index: {}]  }
   0x1   :  { %13 = vsyncpa [#allocation5], 0 }
   0x2   :  { %14 = vsyncpa [#allocation8], 0  ;;  %s6703_s24 = smov [#allocation4]   ;;  %s6704_s26 = smov [#allocation7]  }
   0x3   :  { %s33_s25 = sshll.u32 %s6703_s24, 4  ;;  %s55_s27 = sshll.u32 %s6704_s26, 4  ;;  %s34_s25 = int_to_ptr.vmem [resolvable:$true] %s33_s25  ;;  %s56_s27 = int_to_ptr.vmem [resolvable:$true] %s55_s27 }
   0x4   :  { %s6587_s30 = scalar_lea.hbm %s7366_s2, 64 }
   0x5   :  { %p6588_p0 = scmp.ne.s32.totalorder %s7366_s2, %s6587_s30  ;;  %p6591_p1 = scmp.lt.u32.totalorder %s6587_s30, %s7366_s2 }
   0x7   :  { %p6593_p2 = pnand %p6591_p1, %p6588_p0 }
   0x9   :  { %6596 = shalt.err (!%p6593_p2)
}
   0xa   :  { %s6597_s12 = scalar_lea.vmem %s34_s25, 64  ;;  %p6602_p4 = scmp.lt.s32.totalorder %s34_s25, %s34_s25 }
   0xb   :  { %p6598_p3 = scmp.ne.s32.totalorder %s34_s25, %s6597_s12  ;;  %p6603_p5 = scmp.lt.s32.totalorder %s6597_s12, %s6597_s12 }
   0xd   :  { %p6604_p6 = por %p6603_p5, %p6602_p4 }
   0xf   :  { %p6605_p7 = pnand %p6604_p6, %p6598_p3 }
  0x11   :  { %6608 = shalt.err (!%p6605_p7)
}
  0x12   :  { %36 = dma.hbm_to_vmem [thread:$0]  %s7366_s2, 64, %s34_s25, [#allocation5]  }
  0x13   :  { %s6609_s17 = scalar_lea.hbm %s7368_s4, 256 }
  0x14   :  { %p6610_p8 = scmp.ne.s32.totalorder %s7368_s4, %s6609_s17  ;;  %p6613_p9 = scmp.lt.u32.totalorder %s6609_s17, %s7368_s4 }
  0x16   :  { %p6615_p10 = pnand %p6613_p9, %p6610_p8 }
  0x18   :  { %6618 = shalt.err (!%p6615_p10)
}
  0x19   :  { %s6619_s22 = scalar_lea.vmem %s56_s27, 256  ;;  %p6624_p12 = scmp.lt.s32.totalorder %s56_s27, %s56_s27 }
  0x1a   :  { %p6620_p11 = scmp.ne.s32.totalorder %s56_s27, %s6619_s22  ;;  %p6625_p13 = scmp.lt.s32.totalorder %s6619_s22, %s6619_s22 }
  0x1c   :  { %p6626_p0 = por %p6625_p13, %p6624_p12 }
  0x1e   :  { %p6627_p1 = pnand %p6626_p0, %p6620_p11 }
  0x20   :  { %6630 = shalt.err (!%p6627_p1)
}
  0x21   :  { %58 = dma.hbm_to_vmem [thread:$0]  %s7368_s4, 256, %s56_s27, [#allocation8]  }
  0x22   :  { %s6705_s24 = smov [#allocation2]   ;;  %s6706_s26 = smov [#allocation6]  }
  0x23   :  { %s23_s25 = sshll.u32 %s6705_s24, 4  ;;  %s42_s28 = sshll.u32 %s6706_s26, 4  ;;  %s24_s25 = int_to_ptr.vmem [resolvable:$true] %s23_s25  ;;  %s6775_s28 = int_to_ptr.vmem [resolvable:$true] %s42_s28 }
  0x24   :  { %s6631_s8 = scalar_lea.hbm %s7365_s1, 256 }
  0x25   :  { %p6632_p2 = scmp.ne.s32.totalorder %s7365_s1, %s6631_s8  ;;  %p6635_p3 = scmp.lt.u32.totalorder %s6631_s8, %s7365_s1 }
  0x27   :  { %p6637_p4 = pnand %p6635_p3, %p6632_p2 }
  0x29   :  { %6640 = shalt.err (!%p6637_p4)
}
  0x2a   :  { %s6641_s4 = scalar_lea.vmem %s24_s25, 256  ;;  %p6646_p6 = scmp.lt.s32.totalorder %s24_s25, %s24_s25 }
  0x2b   :  { %p6642_p5 = scmp.ne.s32.totalorder %s24_s25, %s6641_s4  ;;  %p6647_p7 = scmp.lt.s32.totalorder %s6641_s4, %s6641_s4 }
  0x2d   :  { %p6648_p8 = por %p6647_p7, %p6646_p6 }
  0x2f   :  { %p6649_p9 = pnand %p6648_p8, %p6642_p5 }
  0x31   :  { %6652 = shalt.err (!%p6649_p9)
}
  0x32   :  { %26 = dma.hbm_to_vmem [thread:$0]  %s7365_s1, 256, %s24_s25, [#allocation3]  }
  0x33   :  { %s6653_s16 = scalar_lea.hbm %s7367_s3, 65536 }
  0x34   :  { %p6654_p10 = scmp.ne.s32.totalorder %s7367_s3, %s6653_s16  ;;  %p6657_p11 = scmp.lt.u32.totalorder %s6653_s16, %s7367_s3 }
  0x36   :  { %p6659_p12 = pnand %p6657_p11, %p6654_p10 }
  0x38   :  { %6662 = shalt.err (!%p6659_p12)
}
  0x39   :  { %s6663_s21 = scalar_lea.vmem %s6775_s28, 65536  ;;  %p6668_p0 = scmp.lt.s32.totalorder %s6775_s28, %s6775_s28 }
  0x3a   :  { %p6664_p13 = scmp.ne.s32.totalorder %s6775_s28, %s6663_s21  ;;  %p6669_p1 = scmp.lt.s32.totalorder %s6663_s21, %s6663_s21 }
  0x3c   :  { %p6670_p2 = por %p6669_p1, %p6668_p0 }
  0x3e   :  { %p6671_p3 = pnand %p6670_p2, %p6664_p13 }
  0x40   :  { %6674 = shalt.err (!%p6671_p3)
}
  0x41   :  { %s6707_s1 = smov 1024   ;;  %s6708_s22 = smov 64  }
  0x42   :  { %48 = dma.hbm_to_vmem [thread:$0]  %s7367_s3, 65536, %s6775_s28, [#allocation5], %s6707_s1, %s6707_s1, %s6708_s22  }
  0x43   :  { %s6709_s24 = smov [#allocation9]   ;;  %s6675_s30 = scalar_lea.hbm %s7370_s6, 16 }
  0x44   :  { %s67_s25 = sshll.u32 %s6709_s24, 4  ;;  %p6676_p4 = scmp.ne.s32.totalorder %s7370_s6, %s6675_s30  ;;  %s68_s25 = int_to_ptr.vmem [resolvable:$true] %s67_s25 }
  0x45   :  { %p6679_p5 = scmp.lt.u32.totalorder %s6675_s30, %s7370_s6 }
  0x47   :  { %p6681_p6 = pnand %p6679_p5, %p6676_p4 }
  0x49   :  { %6684 = shalt.err (!%p6681_p6)
}
  0x4a   :  { %s6685_s12 = scalar_lea.vmem %s68_s25, 16  ;;  %s6689_s3 = scalar_lea.vmem %s68_s25, 32 }
  0x4b   :  { %p6686_p7 = scmp.ne.s32.totalorder %s68_s25, %s6685_s12  ;;  %p6690_p8 = scmp.lt.s32.totalorder %s68_s25, %s68_s25 }
  0x4c   :  { %p6691_p9 = scmp.lt.s32.totalorder %s6689_s3, %s6685_s12 }
  0x4e   :  { %p6692_p10 = por %p6691_p9, %p6690_p8 }
  0x50   :  { %p6693_p11 = pnand %p6692_p10, %p6686_p7 }
  0x52   :  { %6696 = shalt.err (!%p6693_p11)
}
  0x53   :  { %70 = dma.hbm_to_vmem [thread:$0]  %s7370_s6, 16, %s68_s25, [#allocation8]  }
  0x54   :  { %6697 = dma.done.wait [#allocation3], 256  }
  0x55   :  { %6698 = vsyncadd [#allocation3], 4294967040 }
  0x56   :  { %6699 = dma.done.wait [#allocation5], 65600  }
  0x57   :  { %6700 = vsyncadd [#allocation5], 4294901696 }
  0x58   :  { %6701 = dma.done.wait [#allocation8], 272  }
  0x59   :  { %6702 = vsyncadd [#allocation8], 4294967024  ;;  %v6710_v0 = vmov 0.0   ;;  %v89_v1 = vld [vmem:[#allocation2] sm:$0xff]  ;;  %vm124_vm0 = vcmask 1043456   ;;  %v90_v3 = vld [vmem:[#allocation2 + $0x8] sm:$0xff] }
  0x5a   :  { %197 = vmatprep.mubr.f32.mxu0 %v6710_v0  ;;  %274 = vmatprep.mubr.f32.mxu1 %v6710_v0  ;;  %v115_v2 = vcombine.high %v89_v1, %v89_v1  ;;  %v299_v4 = vld [vmem:[#allocation6] sm:$0xff]  ;;  %v87_v6 = vld [vmem:[%s7364_s0] sm:$0xff]  ;;  %vm117_vm1 = vcmask 31744   ;;  %v116_v7 = vcombine.high %v90_v3, %v90_v3  ;;  %v88_v18 = vld [vmem:[%s7364_s0 + $0x8] sm:$0xff]  ;;  %vm5550_vm2 = vcmask 64512  }
  0x5b   :  { %v307_v5 = vld [vmem:[#allocation6 + $0x40] sm:$0xff]  ;;  %v300_v8 = vld [vmem:[#allocation6 + $0x8] sm:$0xff] }
  0x5c   :  { %v308_v9 = vld [vmem:[#allocation6 + $0x48] sm:$0xff]  ;;  %5560 = vmatprep.subr.msk.mxu0 %vm124_vm0, %v115_v2  ;;  %v5569_v10 = vcombine.high %v299_v4, %v307_v5  ;;  %v315_v11 = vld [vmem:[#allocation6 + $0x80] sm:$0xff]  ;;  %5564 = vmatprep.subr.msk.mxu1 %vm124_vm0, %v116_v7  ;;  %v5568_v13 = vcombine.low %v299_v4, %v307_v5 }
  0x5d   :  { %v323_v12 = vld [vmem:[#allocation6 + $0xc0] sm:$0xff]  ;;  %5561 = vmatpush1.msk.msra.mxu0 %vm124_vm0, %v89_v1  ;;  %v5571_v14 = vcombine.high %v300_v8, %v308_v9  ;;  %v316_v15 = vld [vmem:[#allocation6 + $0x88] sm:$0xff]  ;;  %5565 = vmatpush1.msk.msra.mxu1 %vm124_vm0, %v90_v3  ;;  %v5570_v17 = vcombine.low %v300_v8, %v308_v9 }
  0x5e   :  { %v324_v16 = vld [vmem:[#allocation6 + $0xc8] sm:$0xff]  ;;  %5562 = vmatmul.mubr.msk.f32.vlgmr.msra.gmra.mrb[0].mxu0 %vm117_vm1, %v87_v6  ;;  %5566 = vmatmul.mubr.msk.f32.vlgmr.msra.gmra.mrb[0].mxu1 %vm117_vm1, %v87_v6  ;;  %v5585_v19 = vcombine.high %v315_v11, %v323_v12  ;;  %v331_v20 = vld [vmem:[#allocation6 + $0x100] sm:$0xff]  ;;  %v5584_v25 = vcombine.low %v315_v11, %v323_v12 }
  0x5f   :  { %203 = vmatprep.mubr.f32.mxu0 %v6710_v0  ;;  %v339_v21 = vld [vmem:[#allocation6 + $0x140] sm:$0xff]  ;;  %280 = vmatprep.mubr.f32.mxu1 %v6710_v0  ;;  %v5587_v22 = vcombine.high %v316_v15, %v324_v16  ;;  %v332_v23 = vld [vmem:[#allocation6 + $0x108] sm:$0xff]  ;;  %v5586_v26 = vcombine.low %v316_v15, %v324_v16 }
  0x60   :  { %3455 = vmatprep.subr.bf16.mxu0 %v5569_v10  ;;  %v340_v24 = vld [vmem:[#allocation6 + $0x148] sm:$0xff]  ;;  %3541 = vmatprep.subr.bf16.mxu1 %v5571_v14  ;;  %v5601_v27 = vcombine.high %v331_v20, %v339_v21  ;;  %v347_v29 = vld [vmem:[#allocation6 + $0x180] sm:$0xff]  ;;  %v5600_v33 = vcombine.low %v331_v20, %v339_v21 }
  0x61   :  { %3456 = vmatpush1.bf16.msra.mxu0 %v5568_v13  ;;  %3542 = vmatpush1.bf16.msra.mxu1 %v5570_v17  ;;  %v5603_v28 = vcombine.high %v332_v23, %v340_v24  ;;  %v355_v30 = vld [vmem:[#allocation6 + $0x1c0] sm:$0xff]  ;;  %v348_v31 = vld [vmem:[#allocation6 + $0x188] sm:$0xff]  ;;  %v5602_v34 = vcombine.low %v332_v23, %v340_v24 }
  0x62   :  { %5563 = vmatmul.mubr.msk.f32.gmra.mrb[2].mxu0 %vm117_vm1, %v88_v18  ;;  %5567 = vmatmul.mubr.msk.f32.gmra.mrb[2].mxu1 %vm117_vm1, %v88_v18  ;;  %v356_v32 = vld [vmem:[#allocation6 + $0x1c8] sm:$0xff]  ;;  %v5617_v35 = vcombine.high %v347_v29, %v355_v30  ;;  %v363_v37 = vld [vmem:[#allocation6 + $0x200] sm:$0xff]  ;;  %v5616_v41 = vcombine.low %v347_v29, %v355_v30 }
  0x63   :  { %3457 = vmatprep.subr.bf16.mxu0 %v5585_v19  ;;  %3543 = vmatprep.subr.bf16.mxu1 %v5587_v22  ;;  %v5619_v36 = vcombine.high %v348_v31, %v356_v32  ;;  %v371_v38 = vld [vmem:[#allocation6 + $0x240] sm:$0xff]  ;;  %v364_v39 = vld [vmem:[#allocation6 + $0x208] sm:$0xff]  ;;  %v5618_v42 = vcombine.low %v348_v31, %v356_v32 }
  0x64   :  { %v372_v40 = vld [vmem:[#allocation6 + $0x248] sm:$0xff]  ;;  %v5633_v43 = vcombine.high %v363_v37, %v371_v38  ;;  %v379_v44 = vld [vmem:[#allocation6 + $0x280] sm:$0xff]  ;;  %v5632_v49 = vcombine.low %v363_v37, %v371_v38 }
  0x65   :  { %3458 = vmatpush1.bf16.msra.mxu0 %v5584_v25  ;;  %3544 = vmatpush1.bf16.msra.mxu1 %v5586_v26  ;;  %v5635_v45 = vcombine.high %v364_v39, %v372_v40  ;;  %v387_v46 = vld [vmem:[#allocation6 + $0x2c0] sm:$0xff]  ;;  %v380_v47 = vld [vmem:[#allocation6 + $0x288] sm:$0xff]  ;;  %v5634_v52 = vcombine.low %v364_v39, %v372_v40 }
  0x66   :  { %3459 = vmatprep.subr.bf16.mxu0 %v5601_v27  ;;  %3545 = vmatprep.subr.bf16.mxu1 %v5603_v28  ;;  %v388_v48 = vld [vmem:[#allocation6 + $0x2c8] sm:$0xff]  ;;  %v395_v50 = vld [vmem:[#allocation6 + $0x300] sm:$0xff]  ;;  %v5649_v53 = vcombine.high %v379_v44, %v387_v46  ;;  %v5648_v57 = vcombine.low %v379_v44, %v387_v46 }
  0x67   :  { %v403_v51 = vld [vmem:[#allocation6 + $0x340] sm:$0xff]  ;;  %v396_v54 = vld [vmem:[#allocation6 + $0x308] sm:$0xff]  ;;  %v5651_v56 = vcombine.high %v380_v47, %v388_v48  ;;  %v5650_v60 = vcombine.low %v380_v47, %v388_v48 }
  0x68   :  { %v404_v55 = vld [vmem:[#allocation6 + $0x348] sm:$0xff]  ;;  %v411_v58 = vld [vmem:[#allocation6 + $0x380] sm:$0xff]  ;;  %v5665_v61 = vcombine.high %v395_v50, %v403_v51  ;;  %v5664_v1 = vcombine.low %v395_v50, %v403_v51 }
  0x69   :  { %3460 = vmatpush1.bf16.msra.mxu0 %v5600_v33  ;;  %3546 = vmatpush1.bf16.msra.mxu1 %v5602_v34  ;;  %v419_v59 = vld [vmem:[#allocation6 + $0x3c0] sm:$0xff]  ;;  %v412_v62 = vld [vmem:[#allocation6 + $0x388] sm:$0xff]  ;;  %v5667_v0 = vcombine.high %v396_v54, %v404_v55  ;;  %v5666_v4 = vcombine.low %v396_v54, %v404_v55 }
  0x6a   :  { %3461 = vmatprep.subr.bf16.mxu0 %v5617_v35  ;;  %3547 = vmatprep.subr.bf16.mxu1 %v5619_v36  ;;  %v420_v63 = vld [vmem:[#allocation6 + $0x3c8] sm:$0xff]  ;;  %v427_v2 = vld [vmem:[#allocation6 + $0x400] sm:$0xff]  ;;  %v5681_v5 = vcombine.high %v411_v58, %v419_v59  ;;  %v5680_v9 = vcombine.low %v411_v58, %v419_v59 }
  0x6b   :  { %v435_v3 = vld [vmem:[#allocation6 + $0x440] sm:$0xff]  ;;  %v428_v6 = vld [vmem:[#allocation6 + $0x408] sm:$0xff]  ;;  %v5683_v8 = vcombine.high %v412_v62, %v420_v63  ;;  %v5682_v12 = vcombine.low %v412_v62, %v420_v63 }
  0x6c   :  { %v436_v7 = vld [vmem:[#allocation6 + $0x448] sm:$0xff]  ;;  %v443_v10 = vld [vmem:[#allocation6 + $0x480] sm:$0xff]  ;;  %v5697_v13 = vcombine.high %v427_v2, %v435_v3  ;;  %v5696_v17 = vcombine.low %v427_v2, %v435_v3 }
  0x6d   :  { %3462 = vmatpush1.bf16.msra.mxu0 %v5616_v41  ;;  %3548 = vmatpush1.bf16.msra.mxu1 %v5618_v42  ;;  %v451_v11 = vld [vmem:[#allocation6 + $0x4c0] sm:$0xff]  ;;  %v444_v14 = vld [vmem:[#allocation6 + $0x488] sm:$0xff]  ;;  %v5699_v16 = vcombine.high %v428_v6, %v436_v7  ;;  %v5698_v20 = vcombine.low %v428_v6, %v436_v7 }
  0x6e   :  { %3463 = vmatprep.subr.bf16.mxu0 %v5633_v43  ;;  %3549 = vmatprep.subr.bf16.mxu1 %v5635_v45  ;;  %v452_v15 = vld [vmem:[#allocation6 + $0x4c8] sm:$0xff]  ;;  %v459_v18 = vld [vmem:[#allocation6 + $0x500] sm:$0xff]  ;;  %v5713_v21 = vcombine.high %v443_v10, %v451_v11  ;;  %v5712_v25 = vcombine.low %v443_v10, %v451_v11 }
  0x6f   :  { %v467_v19 = vld [vmem:[#allocation6 + $0x540] sm:$0xff]  ;;  %v460_v22 = vld [vmem:[#allocation6 + $0x508] sm:$0xff]  ;;  %v5715_v24 = vcombine.high %v444_v14, %v452_v15  ;;  %v5714_v28 = vcombine.low %v444_v14, %v452_v15  ;;  %v93_v15 = vlaneseq }
  0x70   :  { %v468_v23 = vld [vmem:[#allocation6 + $0x548] sm:$0xff]  ;;  %v475_v26 = vld [vmem:[#allocation6 + $0x580] sm:$0xff]  ;;  %v5729_v29 = vcombine.high %v459_v18, %v467_v19  ;;  %v5728_v33 = vcombine.low %v459_v18, %v467_v19 }
  0x71   :  { %3464 = vmatpush1.bf16.msra.mxu0 %v5632_v49  ;;  %3550 = vmatpush1.bf16.msra.mxu1 %v5634_v52  ;;  %v483_v27 = vld [vmem:[#allocation6 + $0x5c0] sm:$0xff]  ;;  %v476_v30 = vld [vmem:[#allocation6 + $0x588] sm:$0xff]  ;;  %v5731_v32 = vcombine.high %v460_v22, %v468_v23  ;;  %v5730_v36 = vcombine.low %v460_v22, %v468_v23 }
  0x72   :  { %3465 = vmatprep.subr.bf16.mxu0 %v5649_v53  ;;  %3551 = vmatprep.subr.bf16.mxu1 %v5651_v56  ;;  %v484_v31 = vld [vmem:[#allocation6 + $0x5c8] sm:$0xff]  ;;  %v491_v34 = vld [vmem:[#allocation6 + $0x600] sm:$0xff]  ;;  %v5745_v37 = vcombine.high %v475_v26, %v483_v27  ;;  %v5744_v41 = vcombine.low %v475_v26, %v483_v27 }
  0x73   :  { %v499_v35 = vld [vmem:[#allocation6 + $0x640] sm:$0xff]  ;;  %v492_v38 = vld [vmem:[#allocation6 + $0x608] sm:$0xff]  ;;  %v5747_v40 = vcombine.high %v476_v30, %v484_v31  ;;  %v5746_v42 = vcombine.low %v476_v30, %v484_v31 }
  0x74   :  { %v500_v39 = vld [vmem:[#allocation6 + $0x648] sm:$0xff]  ;;  %v5761_v43 = vcombine.high %v491_v34, %v499_v35  ;;  %v5760_v45 = vcombine.low %v491_v34, %v499_v35  ;;  %v507_v47 = vld [vmem:[#allocation6 + $0x680] sm:$0xff] }
  0x75   :  { %3466 = vmatpush1.bf16.msra.mxu0 %v5648_v57  ;;  %3552 = vmatpush1.bf16.msra.mxu1 %v5650_v60  ;;  %v5763_v44 = vcombine.high %v492_v38, %v500_v39  ;;  %v5762_v46 = vcombine.low %v492_v38, %v500_v39  ;;  %v515_v48 = vld [vmem:[#allocation6 + $0x6c0] sm:$0xff]  ;;  %v508_v49 = vld [vmem:[#allocation6 + $0x688] sm:$0xff] }
  0x76   :  { %3467 = vmatprep.subr.bf16.mxu0 %v5665_v61  ;;  %3553 = vmatprep.subr.bf16.mxu1 %v5667_v0  ;;  %v5777_v50 = vcombine.high %v507_v47, %v515_v48  ;;  %v516_v51 = vld [vmem:[#allocation6 + $0x6c8] sm:$0xff]  ;;  %v5776_v52 = vcombine.low %v507_v47, %v515_v48  ;;  %v523_v55 = vld [vmem:[#allocation6 + $0x700] sm:$0xff] }
  0x77   :  { %v5778_v53 = vcombine.low %v508_v49, %v516_v51  ;;  %v5779_v54 = vcombine.high %v508_v49, %v516_v51  ;;  %v531_v56 = vld [vmem:[#allocation6 + $0x740] sm:$0xff]  ;;  %v524_v57 = vld [vmem:[#allocation6 + $0x708] sm:$0xff] }
  0x78   :  { %v5793_v58 = vcombine.high %v523_v55, %v531_v56  ;;  %v532_v59 = vld [vmem:[#allocation6 + $0x748] sm:$0xff]  ;;  %v5792_v60 = vcombine.low %v523_v55, %v531_v56  ;;  %v539_v63 = vld [vmem:[#allocation6 + $0x780] sm:$0xff] }
  0x79   :  { %3468 = vmatpush1.bf16.msra.mxu0 %v5664_v1  ;;  %3554 = vmatpush1.bf16.msra.mxu1 %v5666_v4  ;;  %v5794_v61 = vcombine.low %v524_v57, %v532_v59  ;;  %v5795_v62 = vcombine.high %v524_v57, %v532_v59  ;;  %v547_v0 = vld [vmem:[#allocation6 + $0x7c0] sm:$0xff]  ;;  %v540_v1 = vld [vmem:[#allocation6 + $0x788] sm:$0xff] }
  0x7a   :  { %3469 = vmatprep.subr.bf16.mxu0 %v5681_v5  ;;  %3555 = vmatprep.subr.bf16.mxu1 %v5683_v8  ;;  %v5809_v2 = vcombine.high %v539_v63, %v547_v0  ;;  %v548_v3 = vld [vmem:[#allocation6 + $0x7c8] sm:$0xff]  ;;  %v5808_v4 = vcombine.low %v539_v63, %v547_v0  ;;  %v6832_v7 = vld [vmem:[#allocation6 + $0x800] sm:$0xff] }
  0x7b   :  { %v5810_v5 = vcombine.low %v540_v1, %v548_v3  ;;  %v5811_v6 = vcombine.high %v540_v1, %v548_v3  ;;  %v6834_v8 = vld [vmem:[#allocation6 + $0x840] sm:$0xff]  ;;  %v564_v11 = vld [vmem:[#allocation6 + $0x848] sm:$0xff] }
  0x7c   :  { %v5825_v10 = vcombine.high %v6832_v7, %v6834_v8  ;;  %v579_v49 = vld [vmem:[#allocation6 + $0x8c0] sm:$0xff]  ;;  %v580_v51 = vld [vmem:[#allocation6 + $0x8c8] sm:$0xff] }
  0x7d   :  { %3470 = vmatpush1.bf16.msra.mxu0 %v5680_v9  ;;  %3556 = vmatpush1.bf16.msra.mxu1 %v5682_v12  ;;  %v6836_v9 = vld [vmem:[#allocation6 + $0x808] sm:$0xff]  ;;  %v5824_v12 = vcombine.low %v6832_v7, %v6834_v8  ;;  %v587_v59 = vld [vmem:[#allocation6 + $0x900] sm:$0xff] }
  0x7e   :  { %3471 = vmatprep.subr.bf16.mxu0 %v5697_v13  ;;  %3557 = vmatprep.subr.bf16.mxu1 %v5699_v16  ;;  %v5826_v13 = vcombine.low %v6836_v9, %v564_v11  ;;  %v5827_v14 = vcombine.high %v6836_v9, %v564_v11  ;;  %v6844_v16 = vshrl.u32 %v93_v15, 7  ;;  %v596_v63 = vld [vmem:[#allocation6 + $0x948] sm:$0xff] }
  0x7f   :  { %v612_v7 = vld [vmem:[#allocation6 + $0x9c8] sm:$0xff] }
  0x80   :  { %v6850_v18 = vsub.s32 0, %v6844_v16  ;;  %v6853_v19 = vsub.s32 3, %v6844_v16  ;;  %v628_v15 = vld [vmem:[#allocation6 + $0xa48] sm:$0xff] }
  0x81   :  { %3472 = vmatpush1.bf16.msra.mxu0 %v5696_v17  ;;  %3558 = vmatpush1.bf16.msra.mxu1 %v5698_v20  ;;  %v6847_v17 = vsub.s32 2, %v6844_v16  ;;  %v91_v20 = vld [vmem:[#allocation4] sm:$0xf] }
  0x82   :  { %3473 = vmatprep.subr.bf16.mxu0 %v5713_v21  ;;  %3559 = vmatprep.subr.bf16.mxu1 %v5715_v24  ;;  %v6856_v21 = vsub.s32 1, %v6844_v16  ;;  %v96_v23 = vrot.slane %v91_v20, %v6850_v18  ;;  %v108_v24 = vrot.slane %v91_v20, %v6853_v19 }
  0x83   :  { %v104_v22 = vrot.slane %v91_v20, %v6847_v17 }
  0x84   :  { %v100_v26 = vrot.slane %v91_v20, %v6856_v21 }
  0x85   :  { %3474 = vmatpush1.bf16.msra.mxu0 %v5712_v25  ;;  %3560 = vmatpush1.bf16.msra.mxu1 %v5714_v28 }
  0x86   :  { %3475 = vmatprep.subr.bf16.mxu0 %v5729_v29  ;;  %3561 = vmatprep.subr.bf16.mxu1 %v5731_v32 }
  0x89   :  { %3476 = vmatpush1.bf16.msra.mxu0 %v5728_v33  ;;  %3562 = vmatpush1.bf16.msra.mxu1 %v5730_v36 }
  0x8a   :  { %3477 = vmatprep.subr.bf16.mxu0 %v5745_v37  ;;  %3563 = vmatprep.subr.bf16.mxu1 %v5747_v40 }
  0x8d   :  { %3478 = vmatpush1.bf16.msra.mxu0 %v5744_v41  ;;  %3564 = vmatpush1.bf16.msra.mxu1 %v5746_v42 }
  0x8e   :  { %3479 = vmatprep.subr.bf16.mxu0 %v5761_v43  ;;  %3565 = vmatprep.subr.bf16.mxu1 %v5763_v44  ;;  %v571_v44 = vld [vmem:[#allocation6 + $0x880] sm:$0xff] }
  0x8f   :  { %v5841_v57 = vcombine.high %v571_v44, %v579_v49  ;;  %v5840_v0 = vcombine.low %v571_v44, %v579_v49  ;;  %v676_v44 = vld [vmem:[#allocation6 + $0xbc8] sm:$0xff]  ;;  %v683_v49 = vld [vmem:[#allocation6 + $0xc00] sm:$0xff] }
  0x91   :  { %3480 = vmatpush1.bf16.msra.mxu0 %v5760_v45  ;;  %3566 = vmatpush1.bf16.msra.mxu1 %v5762_v46 }
  0x92   :  { %3481 = vmatprep.subr.bf16.mxu0 %v5777_v50  ;;  %3567 = vmatprep.subr.bf16.mxu1 %v5779_v54  ;;  %v572_v50 = vld [vmem:[#allocation6 + $0x888] sm:$0xff] }
  0x93   :  { %v5842_v1 = vcombine.low %v572_v50, %v580_v51 }
  0x95   :  { %3482 = vmatpush1.bf16.msra.mxu0 %v5776_v52  ;;  %3568 = vmatpush1.bf16.msra.mxu1 %v5778_v53 }
  0x96   :  { %3483 = vmatprep.subr.bf16.mxu0 %v5793_v58  ;;  %3569 = vmatprep.subr.bf16.mxu1 %v5795_v62  ;;  %v5843_v58 = vcombine.high %v572_v50, %v580_v51  ;;  %v588_v62 = vld [vmem:[#allocation6 + $0x908] sm:$0xff]  ;;  %v691_v50 = vld [vmem:[#allocation6 + $0xc40] sm:$0xff] }
  0x97   :  { %v5859_v3 = vcombine.high %v588_v62, %v596_v63  ;;  %v5858_v9 = vcombine.low %v588_v62, %v596_v63  ;;  %v684_v51 = vld [vmem:[#allocation6 + $0xc08] sm:$0xff]  ;;  %v707_v62 = vld [vmem:[#allocation6 + $0xcc0] sm:$0xff] }
  0x98   :  { %v700_v63 = vld [vmem:[#allocation6 + $0xc88] sm:$0xff] }
  0x99   :  { %3484 = vmatpush1.bf16.msra.mxu0 %v5792_v60  ;;  %3570 = vmatpush1.bf16.msra.mxu1 %v5794_v61  ;;  %v595_v61 = vld [vmem:[#allocation6 + $0x940] sm:$0xff] }
  0x9a   :  { %3485 = vmatprep.subr.bf16.mxu0 %v5809_v2  ;;  %3571 = vmatprep.subr.bf16.mxu1 %v5811_v6  ;;  %v5857_v2 = vcombine.high %v587_v59, %v595_v61  ;;  %v604_v6 = vld [vmem:[#allocation6 + $0x988] sm:$0xff]  ;;  %v5856_v8 = vcombine.low %v587_v59, %v595_v61  ;;  %v699_v61 = vld [vmem:[#allocation6 + $0xc80] sm:$0xff] }
  0x9b   :  { %v5875_v11 = vcombine.high %v604_v6, %v612_v7 }
  0x9d   :  { %3486 = vmatpush1.bf16.msra.mxu0 %v5808_v4  ;;  %3572 = vmatpush1.bf16.msra.mxu1 %v5810_v5  ;;  %v603_v4 = vld [vmem:[#allocation6 + $0x980] sm:$0xff] }
  0x9e   :  { %3498 = vmatprep.subr.bf16.mxu0 %v5825_v10  ;;  %3584 = vmatprep.subr.bf16.mxu1 %v5827_v14  ;;  %v611_v5 = vld [vmem:[#allocation6 + $0x9c0] sm:$0xff]  ;;  %v620_v14 = vld [vmem:[#allocation6 + $0xa08] sm:$0xff] }
  0x9f   :  { %v5873_v10 = vcombine.high %v603_v4, %v611_v5  ;;  %v5872_v20 = vcombine.low %v603_v4, %v611_v5  ;;  %v715_v5 = vld [vmem:[#allocation6 + $0xd00] sm:$0xff] }
 0x131   :  { %v199_v25 = vpop.f32.mrb[0].mxu0  ;;  %v276_v28 = vpop.f32.mrb[0].mxu1 }
 0x132   :  { %v201_v27 = vpop.f32.mrb[1].mxu0  ;;  %v277_v29 = vadd.f32 %v276_v28, %v104_v22  ;;  %v278_v30 = vpop.f32.mrb[1].mxu1  ;;  %v200_v31 = vadd.f32 %v199_v25, %v96_v23  ;;  %v635_v25 = vld [vmem:[#allocation6 + $0xa80] sm:$0xff]  ;;  %v644_v28 = vld [vmem:[#allocation6 + $0xac8] sm:$0xff] }
 0x133   :  { %v279_v32 = vadd.f32 %v278_v30, %v108_v24  ;;  %v202_v33 = vadd.f32 %v201_v27, %v100_v26  ;;  %v636_v27 = vld [vmem:[#allocation6 + $0xa88] sm:$0xff]  ;;  %v5890_v30 = vcombine.low %v620_v14, %v628_v15 }
 0x134   :  { %v289_v39 = vmax.f32 %v277_v29, 0.0  ;;  %v287_v42 = vmax.f32 %v200_v31, 0.0 }
 0x135   :  { %v205_v34 = vpop.f32.mrb[2].mxu0  ;;  %v282_v37 = vpop.f32.mrb[2].mxu1  ;;  %v290_v45 = vmax.f32 %v279_v32, 0.0  ;;  %v288_v47 = vmax.f32 %v202_v33, 0.0  ;;  %v5907_v32 = vcombine.high %v636_v27, %v644_v28  ;;  %v651_v33 = vld [vmem:[#allocation6 + $0xb00] sm:$0xff] }
 0x136   :  { %v206_v35 = vadd.f32 %v205_v34, %v96_v23  ;;  %v207_v36 = vpop.f32.mrb[3].mxu0  ;;  %v283_v40 = vadd.f32 %v282_v37, %v104_v22  ;;  %v284_v41 = vpop.f32.mrb[3].mxu1  ;;  %v5874_v22 = vcombine.low %v604_v6, %v612_v7  ;;  %v659_v34 = vld [vmem:[#allocation6 + $0xb40] sm:$0xff]  ;;  %v716_v7 = vld [vmem:[#allocation6 + $0xd08] sm:$0xff] }
 0x137   :  { %v208_v38 = vadd.f32 %v207_v36, %v100_v26  ;;  %v285_v46 = vadd.f32 %v284_v41, %v108_v24  ;;  %v5891_v24 = vcombine.high %v620_v14, %v628_v15  ;;  %v643_v26 = vld [vmem:[#allocation6 + $0xac0] sm:$0xff]  ;;  %v660_v36 = vld [vmem:[#allocation6 + $0xb48] sm:$0xff] }
 0x138   :  { %v291_v43 = vmax.f32 %v206_v35, 0.0  ;;  %v293_v52 = vmax.f32 %v283_v40, 0.0  ;;  %v5905_v31 = vcombine.high %v635_v25, %v643_v26  ;;  %v652_v35 = vld [vmem:[#allocation6 + $0xb08] sm:$0xff]  ;;  %v5904_v37 = vcombine.low %v635_v25, %v643_v26  ;;  %v667_v41 = vld [vmem:[#allocation6 + $0xb80] sm:$0xff] }
 0x139   :  { %v292_v48 = vmax.f32 %v208_v38, 0.0  ;;  %v294_v54 = vmax.f32 %v285_v46, 0.0  ;;  %v5906_v38 = vcombine.low %v636_v27, %v644_v28  ;;  %v5923_v40 = vcombine.high %v652_v35, %v660_v36  ;;  %v723_v6 = vld [vmem:[#allocation6 + $0xd40] sm:$0xff]  ;;  %v732_v15 = vld [vmem:[#allocation6 + $0xd88] sm:$0xff] }
 0x13a   :  { %v6862_v53 = vpack.c.bf16 %v291_v43, %v287_v42  ;;  %v6866_v56 = vpack.c.bf16 %v293_v52, %v289_v39  ;;  %v5921_v39 = vcombine.high %v651_v33, %v659_v34  ;;  %v675_v42 = vld [vmem:[#allocation6 + $0xbc0] sm:$0xff]  ;;  %v668_v43 = vld [vmem:[#allocation6 + $0xb88] sm:$0xff]  ;;  %v5922_v46 = vcombine.low %v652_v35, %v660_v36 }
 0x13b   :  { %v6864_v55 = vpack.c.bf16 %v292_v48, %v288_v47  ;;  %v6868_v60 = vpack.c.bf16 %v294_v54, %v290_v45  ;;  %v5920_v45 = vcombine.low %v651_v33, %v659_v34  ;;  %v5937_v47 = vcombine.high %v667_v41, %v675_v42  ;;  %v692_v52 = vld [vmem:[#allocation6 + $0xc48] sm:$0xff]  ;;  %v739_v14 = vld [vmem:[#allocation6 + $0xdc0] sm:$0xff] }
 0x13c   :  { %v5939_v48 = vcombine.high %v668_v43, %v676_v44  ;;  %v5936_v54 = vcombine.low %v667_v41, %v675_v42  ;;  %v5955_v59 = vcombine.high %v684_v51, %v692_v52  ;;  %v747_v26 = vld [vmem:[#allocation6 + $0xe00] sm:$0xff]  ;;  %v748_v28 = vld [vmem:[#allocation6 + $0xe08] sm:$0xff] }
 0x13d   :  { %3487 = vmatprep.mubr.bf16.mxu0 %v6864_v55  ;;  %3573 = vmatprep.mubr.bf16.mxu1 %v6864_v55  ;;  %v755_v27 = vld [vmem:[#allocation6 + $0xe40] sm:$0xff]  ;;  %v764_v36 = vld [vmem:[#allocation6 + $0xe88] sm:$0xff] }
 0x13e   :  { %3488 = vmatmul.mubr.bf16.vlgmr.msra.gmra.mrb[4].mxu0 %v6862_v53  ;;  %3574 = vmatmul.mubr.bf16.vlgmr.msra.gmra.mrb[4].mxu1 %v6862_v53  ;;  %v763_v34 = vld [vmem:[#allocation6 + $0xe80] sm:$0xff] }
 0x13f   :  { %3499 = vmatpush1.bf16.msra.mxu0 %v5824_v12  ;;  %3585 = vmatpush1.bf16.msra.mxu1 %v5826_v13  ;;  %v619_v12 = vld [vmem:[#allocation6 + $0xa00] sm:$0xff] }
 0x140   :  { %3500 = vmatprep.subr.bf16.mxu0 %v5841_v57  ;;  %3586 = vmatprep.subr.bf16.mxu1 %v5843_v58  ;;  %v627_v13 = vld [vmem:[#allocation6 + $0xa40] sm:$0xff]  ;;  %v5938_v57 = vcombine.low %v668_v43, %v676_v44  ;;  %v5953_v58 = vcombine.high %v683_v49, %v691_v50  ;;  %v780_v44 = vld [vmem:[#allocation6 + $0xf08] sm:$0xff] }
 0x141   :  { %3530 = vmatprep.mubr.bf16.mxu0 %v6868_v60  ;;  %3616 = vmatprep.mubr.bf16.mxu1 %v6868_v60  ;;  %v5889_v23 = vcombine.high %v619_v12, %v627_v13  ;;  %v5888_v29 = vcombine.low %v619_v12, %v627_v13  ;;  %v731_v13 = vld [vmem:[#allocation6 + $0xd80] sm:$0xff] }
 0x142   :  { %v771_v35 = vld [vmem:[#allocation6 + $0xec0] sm:$0xff] }
 0x143   :  { %3501 = vmatpush1.bf16.msra.mxu0 %v5840_v0  ;;  %3587 = vmatpush1.bf16.msra.mxu1 %v5842_v1  ;;  %v708_v0 = vld [vmem:[#allocation6 + $0xcc8] sm:$0xff]  ;;  %v5952_v1 = vcombine.low %v683_v49, %v691_v50  ;;  %v779_v42 = vld [vmem:[#allocation6 + $0xf00] sm:$0xff] }
 0x144   :  { %3502 = vmatprep.subr.bf16.mxu0 %v5857_v2  ;;  %3588 = vmatprep.subr.bf16.mxu1 %v5859_v3  ;;  %v5954_v2 = vcombine.low %v684_v51, %v692_v52  ;;  %v5969_v3 = vcombine.high %v699_v61, %v707_v62  ;;  %v5971_v4 = vcombine.high %v700_v63, %v708_v0  ;;  %v787_v43 = vld [vmem:[#allocation6 + $0xf40] sm:$0xff]  ;;  %v796_v52 = vld [vmem:[#allocation6 + $0xf88] sm:$0xff] }
 0x145   :  { %v795_v50 = vld [vmem:[#allocation6 + $0xf80] sm:$0xff] }
 0x146   :  { %v803_v51 = vld [vmem:[#allocation6 + $0xfc0] sm:$0xff] }
 0x147   :  { %3503 = vmatpush1.bf16.msra.mxu0 %v5856_v8  ;;  %3589 = vmatpush1.bf16.msra.mxu1 %v5858_v9  ;;  %v724_v8 = vld [vmem:[#allocation6 + $0xd48] sm:$0xff]  ;;  %v5968_v9 = vcombine.low %v699_v61, %v707_v62  ;;  %v301_v62 = vld [vmem:[#allocation6 + $0x10] sm:$0xff] }
 0x148   :  { %3504 = vmatprep.subr.bf16.mxu0 %v5873_v10  ;;  %3590 = vmatprep.subr.bf16.mxu1 %v5875_v11  ;;  %v5970_v10 = vcombine.low %v700_v63, %v708_v0  ;;  %v5985_v11 = vcombine.high %v715_v5, %v723_v6  ;;  %v5987_v12 = vcombine.high %v716_v7, %v724_v8  ;;  %v309_v63 = vld [vmem:[#allocation6 + $0x50] sm:$0xff]  ;;  %v302_v0 = vld [vmem:[#allocation6 + $0x18] sm:$0xff] }
 0x14b   :  { %3505 = vmatpush1.bf16.msra.mxu0 %v5872_v20  ;;  %3591 = vmatpush1.bf16.msra.mxu1 %v5874_v22  ;;  %v740_v20 = vld [vmem:[#allocation6 + $0xdc8] sm:$0xff]  ;;  %v5984_v22 = vcombine.low %v715_v5, %v723_v6  ;;  %v317_v6 = vld [vmem:[#allocation6 + $0x90] sm:$0xff] }
 0x14c   :  { %3506 = vmatprep.subr.bf16.mxu0 %v5889_v23  ;;  %3592 = vmatprep.subr.bf16.mxu1 %v5891_v24  ;;  %v5986_v23 = vcombine.low %v716_v7, %v724_v8  ;;  %v6001_v24 = vcombine.high %v731_v13, %v739_v14  ;;  %v6003_v25 = vcombine.high %v732_v15, %v740_v20  ;;  %v325_v7 = vld [vmem:[#allocation6 + $0xd0] sm:$0xff]  ;;  %v318_v8 = vld [vmem:[#allocation6 + $0x98] sm:$0xff] }
 0x14f   :  { %3507 = vmatpush1.bf16.msra.mxu0 %v5888_v29  ;;  %3593 = vmatpush1.bf16.msra.mxu1 %v5890_v30  ;;  %v756_v29 = vld [vmem:[#allocation6 + $0xe48] sm:$0xff]  ;;  %v6000_v30 = vcombine.low %v731_v13, %v739_v14  ;;  %v333_v14 = vld [vmem:[#allocation6 + $0x110] sm:$0xff] }
 0x150   :  { %3508 = vmatprep.subr.bf16.mxu0 %v5905_v31  ;;  %3594 = vmatprep.subr.bf16.mxu1 %v5907_v32  ;;  %v6002_v31 = vcombine.low %v732_v15, %v740_v20  ;;  %v6017_v32 = vcombine.high %v747_v26, %v755_v27  ;;  %v6019_v33 = vcombine.high %v748_v28, %v756_v29  ;;  %v341_v15 = vld [vmem:[#allocation6 + $0x150] sm:$0xff]  ;;  %v334_v20 = vld [vmem:[#allocation6 + $0x118] sm:$0xff] }
 0x153   :  { %3509 = vmatpush1.bf16.msra.mxu0 %v5904_v37  ;;  %3595 = vmatpush1.bf16.msra.mxu1 %v5906_v38  ;;  %v772_v37 = vld [vmem:[#allocation6 + $0xec8] sm:$0xff]  ;;  %v6016_v38 = vcombine.low %v747_v26, %v755_v27  ;;  %v349_v27 = vld [vmem:[#allocation6 + $0x190] sm:$0xff] }
 0x154   :  { %3510 = vmatprep.subr.bf16.mxu0 %v5921_v39  ;;  %3596 = vmatprep.subr.bf16.mxu1 %v5923_v40  ;;  %v6018_v39 = vcombine.low %v748_v28, %v756_v29  ;;  %v6033_v40 = vcombine.high %v763_v34, %v771_v35  ;;  %v6035_v41 = vcombine.high %v764_v36, %v772_v37  ;;  %v357_v28 = vld [vmem:[#allocation6 + $0x1d0] sm:$0xff]  ;;  %v350_v29 = vld [vmem:[#allocation6 + $0x198] sm:$0xff] }
 0x157   :  { %3511 = vmatpush1.bf16.msra.mxu0 %v5920_v45  ;;  %3597 = vmatpush1.bf16.msra.mxu1 %v5922_v46  ;;  %v788_v45 = vld [vmem:[#allocation6 + $0xf48] sm:$0xff]  ;;  %v6032_v46 = vcombine.low %v763_v34, %v771_v35  ;;  %v365_v35 = vld [vmem:[#allocation6 + $0x210] sm:$0xff] }
 0x158   :  { %3512 = vmatprep.subr.bf16.mxu0 %v5937_v47  ;;  %3598 = vmatprep.subr.bf16.mxu1 %v5939_v48  ;;  %v6034_v47 = vcombine.low %v764_v36, %v772_v37  ;;  %v6049_v48 = vcombine.high %v779_v42, %v787_v43  ;;  %v6051_v49 = vcombine.high %v780_v44, %v788_v45  ;;  %v373_v36 = vld [vmem:[#allocation6 + $0x250] sm:$0xff]  ;;  %v366_v37 = vld [vmem:[#allocation6 + $0x218] sm:$0xff] }
 0x15b   :  { %3513 = vmatpush1.bf16.msra.mxu0 %v5936_v54  ;;  %3599 = vmatpush1.bf16.msra.mxu1 %v5938_v57  ;;  %v804_v54 = vld [vmem:[#allocation6 + $0xfc8] sm:$0xff]  ;;  %v6048_v57 = vcombine.low %v779_v42, %v787_v43  ;;  %v381_v43 = vld [vmem:[#allocation6 + $0x290] sm:$0xff] }
 0x15c   :  { %3514 = vmatprep.subr.bf16.mxu0 %v5953_v58  ;;  %3600 = vmatprep.subr.bf16.mxu1 %v5955_v59  ;;  %v6050_v58 = vcombine.low %v780_v44, %v788_v45  ;;  %v6065_v59 = vcombine.high %v795_v50, %v803_v51  ;;  %v6067_v61 = vcombine.high %v796_v52, %v804_v54  ;;  %v389_v44 = vld [vmem:[#allocation6 + $0x2d0] sm:$0xff]  ;;  %v382_v45 = vld [vmem:[#allocation6 + $0x298] sm:$0xff] }
 0x15f   :  { %3515 = vmatpush1.bf16.msra.mxu0 %v5952_v1  ;;  %3601 = vmatpush1.bf16.msra.mxu1 %v5954_v2  ;;  %v310_v1 = vld [vmem:[#allocation6 + $0x58] sm:$0xff]  ;;  %v6064_v2 = vcombine.low %v795_v50, %v803_v51  ;;  %v397_v51 = vld [vmem:[#allocation6 + $0x310] sm:$0xff] }
 0x160   :  { %3516 = vmatprep.subr.bf16.mxu0 %v5969_v3  ;;  %3602 = vmatprep.subr.bf16.mxu1 %v5971_v4  ;;  %v6066_v3 = vcombine.low %v796_v52, %v804_v54  ;;  %v5573_v4 = vcombine.high %v301_v62, %v309_v63  ;;  %v5575_v5 = vcombine.high %v302_v0, %v310_v1  ;;  %v405_v52 = vld [vmem:[#allocation6 + $0x350] sm:$0xff]  ;;  %v398_v54 = vld [vmem:[#allocation6 + $0x318] sm:$0xff] }
 0x163   :  { %3517 = vmatpush1.bf16.msra.mxu0 %v5968_v9  ;;  %3603 = vmatpush1.bf16.msra.mxu1 %v5970_v10  ;;  %v326_v9 = vld [vmem:[#allocation6 + $0xd8] sm:$0xff]  ;;  %v5572_v10 = vcombine.low %v301_v62, %v309_v63  ;;  %v413_v63 = vld [vmem:[#allocation6 + $0x390] sm:$0xff] }
 0x164   :  { %3518 = vmatprep.subr.bf16.mxu0 %v5985_v11  ;;  %3604 = vmatprep.subr.bf16.mxu1 %v5987_v12  ;;  %v5574_v11 = vcombine.low %v302_v0, %v310_v1  ;;  %v5589_v12 = vcombine.high %v317_v6, %v325_v7  ;;  %v5591_v13 = vcombine.high %v318_v8, %v326_v9  ;;  %v421_v0 = vld [vmem:[#allocation6 + $0x3d0] sm:$0xff]  ;;  %v414_v1 = vld [vmem:[#allocation6 + $0x398] sm:$0xff] }
 0x167   :  { %3519 = vmatpush1.bf16.msra.mxu0 %v5984_v22  ;;  %3605 = vmatpush1.bf16.msra.mxu1 %v5986_v23  ;;  %v342_v22 = vld [vmem:[#allocation6 + $0x158] sm:$0xff]  ;;  %v5588_v23 = vcombine.low %v317_v6, %v325_v7  ;;  %v429_v7 = vld [vmem:[#allocation6 + $0x410] sm:$0xff] }
 0x168   :  { %3520 = vmatprep.subr.bf16.mxu0 %v6001_v24  ;;  %3606 = vmatprep.subr.bf16.mxu1 %v6003_v25  ;;  %v5590_v24 = vcombine.low %v318_v8, %v326_v9  ;;  %v5605_v25 = vcombine.high %v333_v14, %v341_v15  ;;  %v5607_v26 = vcombine.high %v334_v20, %v342_v22  ;;  %v437_v8 = vld [vmem:[#allocation6 + $0x450] sm:$0xff]  ;;  %v430_v9 = vld [vmem:[#allocation6 + $0x418] sm:$0xff] }
 0x16b   :  { %3521 = vmatpush1.bf16.msra.mxu0 %v6000_v30  ;;  %3607 = vmatpush1.bf16.msra.mxu1 %v6002_v31  ;;  %v358_v30 = vld [vmem:[#allocation6 + $0x1d8] sm:$0xff]  ;;  %v5604_v31 = vcombine.low %v333_v14, %v341_v15  ;;  %v445_v15 = vld [vmem:[#allocation6 + $0x490] sm:$0xff] }
 0x16c   :  { %3522 = vmatprep.subr.bf16.mxu0 %v6017_v32  ;;  %3608 = vmatprep.subr.bf16.mxu1 %v6019_v33  ;;  %v5606_v32 = vcombine.low %v334_v20, %v342_v22  ;;  %v5621_v33 = vcombine.high %v349_v27, %v357_v28  ;;  %v5623_v34 = vcombine.high %v350_v29, %v358_v30  ;;  %v453_v20 = vld [vmem:[#allocation6 + $0x4d0] sm:$0xff]  ;;  %v446_v22 = vld [vmem:[#allocation6 + $0x498] sm:$0xff] }
 0x16f   :  { %3523 = vmatpush1.bf16.msra.mxu0 %v6016_v38  ;;  %3609 = vmatpush1.bf16.msra.mxu1 %v6018_v39  ;;  %v374_v38 = vld [vmem:[#allocation6 + $0x258] sm:$0xff]  ;;  %v5620_v39 = vcombine.low %v349_v27, %v357_v28  ;;  %v461_v28 = vld [vmem:[#allocation6 + $0x510] sm:$0xff] }
 0x170   :  { %3524 = vmatprep.subr.bf16.mxu0 %v6033_v40  ;;  %3610 = vmatprep.subr.bf16.mxu1 %v6035_v41  ;;  %v5622_v40 = vcombine.low %v350_v29, %v358_v30  ;;  %v5637_v41 = vcombine.high %v365_v35, %v373_v36  ;;  %v5639_v42 = vcombine.high %v366_v37, %v374_v38  ;;  %v469_v29 = vld [vmem:[#allocation6 + $0x550] sm:$0xff]  ;;  %v462_v30 = vld [vmem:[#allocation6 + $0x518] sm:$0xff] }
 0x173   :  { %3525 = vmatpush1.bf16.msra.mxu0 %v6032_v46  ;;  %3611 = vmatpush1.bf16.msra.mxu1 %v6034_v47  ;;  %v390_v46 = vld [vmem:[#allocation6 + $0x2d8] sm:$0xff]  ;;  %v5636_v47 = vcombine.low %v365_v35, %v373_v36  ;;  %v477_v36 = vld [vmem:[#allocation6 + $0x590] sm:$0xff] }
 0x174   :  { %3526 = vmatprep.subr.bf16.mxu0 %v6049_v48  ;;  %3612 = vmatprep.subr.bf16.mxu1 %v6051_v49  ;;  %v5638_v48 = vcombine.low %v366_v37, %v374_v38  ;;  %v5653_v49 = vcombine.high %v381_v43, %v389_v44  ;;  %v5655_v50 = vcombine.high %v382_v45, %v390_v46  ;;  %v485_v37 = vld [vmem:[#allocation6 + $0x5d0] sm:$0xff]  ;;  %v478_v38 = vld [vmem:[#allocation6 + $0x598] sm:$0xff] }
 0x177   :  { %3527 = vmatpush1.bf16.msra.mxu0 %v6048_v57  ;;  %3613 = vmatpush1.bf16.msra.mxu1 %v6050_v58  ;;  %v406_v57 = vld [vmem:[#allocation6 + $0x358] sm:$0xff]  ;;  %v5652_v58 = vcombine.low %v381_v43, %v389_v44  ;;  %v493_v44 = vld [vmem:[#allocation6 + $0x610] sm:$0xff] }
 0x178   :  { %3528 = vmatprep.subr.bf16.mxu0 %v6065_v59  ;;  %3614 = vmatprep.subr.bf16.mxu1 %v6067_v61  ;;  %v5654_v59 = vcombine.low %v382_v45, %v390_v46  ;;  %v5669_v61 = vcombine.high %v397_v51, %v405_v52  ;;  %v5671_v62 = vcombine.high %v398_v54, %v406_v57  ;;  %v501_v45 = vld [vmem:[#allocation6 + $0x650] sm:$0xff]  ;;  %v494_v46 = vld [vmem:[#allocation6 + $0x618] sm:$0xff] }
 0x17b   :  { %3529 = vmatpush1.bf16.msra.mxu0 %v6064_v2  ;;  %3615 = vmatpush1.bf16.msra.mxu1 %v6066_v3  ;;  %v422_v2 = vld [vmem:[#allocation6 + $0x3d8] sm:$0xff]  ;;  %v5668_v3 = vcombine.low %v397_v51, %v405_v52  ;;  %v509_v52 = vld [vmem:[#allocation6 + $0x690] sm:$0xff] }
 0x17c   :  { %3627 = vmatprep.subr.bf16.mxu0 %v5573_v4  ;;  %3713 = vmatprep.subr.bf16.mxu1 %v5575_v5  ;;  %v5670_v4 = vcombine.low %v398_v54, %v406_v57  ;;  %v5685_v5 = vcombine.high %v413_v63, %v421_v0  ;;  %v5687_v6 = vcombine.high %v414_v1, %v422_v2  ;;  %v517_v54 = vld [vmem:[#allocation6 + $0x6d0] sm:$0xff]  ;;  %v510_v57 = vld [vmem:[#allocation6 + $0x698] sm:$0xff] }
 0x17e   :  { %3531 = vmatmul.mubr.bf16.vlgmr.msra.gmra.mrb[4].mxu0 %v6866_v56  ;;  %3617 = vmatmul.mubr.bf16.vlgmr.msra.gmra.mrb[4].mxu1 %v6866_v56 }
 0x17f   :  { %3628 = vmatpush1.bf16.msra.mxu0 %v5572_v10  ;;  %3659 = vmatprep.mubr.bf16.mxu0 %v6864_v55  ;;  %v438_v10 = vld [vmem:[#allocation6 + $0x458] sm:$0xff] }
 0x180   :  { %3714 = vmatpush1.bf16.msra.mxu1 %v5574_v11  ;;  %3745 = vmatprep.mubr.bf16.mxu1 %v6864_v55  ;;  %v5684_v11 = vcombine.low %v413_v63, %v421_v0  ;;  %v5703_v14 = vcombine.high %v430_v9, %v438_v10  ;;  %v525_v0 = vld [vmem:[#allocation6 + $0x710] sm:$0xff] }
 0x181   :  { %3629 = vmatprep.subr.bf16.mxu0 %v5589_v12  ;;  %3715 = vmatprep.subr.bf16.mxu1 %v5591_v13  ;;  %v5686_v12 = vcombine.low %v414_v1, %v422_v2  ;;  %v5701_v13 = vcombine.high %v429_v7, %v437_v8  ;;  %v533_v1 = vld [vmem:[#allocation6 + $0x750] sm:$0xff]  ;;  %v526_v2 = vld [vmem:[#allocation6 + $0x718] sm:$0xff] }
 0x183   :  { %3630 = vmatpush1.bf16.msra.mxu0 %v5588_v23  ;;  %v454_v23 = vld [vmem:[#allocation6 + $0x4d8] sm:$0xff] }
 0x184   :  { %3716 = vmatpush1.bf16.msra.mxu1 %v5590_v24  ;;  %3631 = vmatprep.subr.bf16.mxu0 %v5605_v25  ;;  %v5700_v24 = vcombine.low %v429_v7, %v437_v8  ;;  %v5702_v25 = vcombine.low %v430_v9, %v438_v10  ;;  %v5719_v27 = vcombine.high %v446_v22, %v454_v23  ;;  %v541_v8 = vld [vmem:[#allocation6 + $0x790] sm:$0xff]  ;;  %v542_v10 = vld [vmem:[#allocation6 + $0x798] sm:$0xff] }
 0x185   :  { %3717 = vmatprep.subr.bf16.mxu1 %v5607_v26  ;;  %v5717_v26 = vcombine.high %v445_v15, %v453_v20  ;;  %v549_v9 = vld [vmem:[#allocation6 + $0x7d0] sm:$0xff] }
 0x187   :  { %3632 = vmatpush1.bf16.msra.mxu0 %v5604_v31  ;;  %v470_v31 = vld [vmem:[#allocation6 + $0x558] sm:$0xff] }
 0x188   :  { %3718 = vmatpush1.bf16.msra.mxu1 %v5606_v32  ;;  %3633 = vmatprep.subr.bf16.mxu0 %v5621_v33  ;;  %v5716_v32 = vcombine.low %v445_v15, %v453_v20  ;;  %v5718_v33 = vcombine.low %v446_v22, %v454_v23  ;;  %v5735_v35 = vcombine.high %v462_v30, %v470_v31  ;;  %v557_v20 = vld [vmem:[#allocation6 + $0x810] sm:$0xff]  ;;  %v558_v23 = vld [vmem:[#allocation6 + $0x818] sm:$0xff] }
 0x189   :  { %3719 = vmatprep.subr.bf16.mxu1 %v5623_v34  ;;  %v5733_v34 = vcombine.high %v461_v28, %v469_v29  ;;  %v565_v22 = vld [vmem:[#allocation6 + $0x850] sm:$0xff] }
 0x18b   :  { %3634 = vmatpush1.bf16.msra.mxu0 %v5620_v39  ;;  %v486_v39 = vld [vmem:[#allocation6 + $0x5d8] sm:$0xff] }
 0x18c   :  { %3720 = vmatpush1.bf16.msra.mxu1 %v5622_v40  ;;  %3635 = vmatprep.subr.bf16.mxu0 %v5637_v41  ;;  %v5732_v40 = vcombine.low %v461_v28, %v469_v29  ;;  %v5734_v41 = vcombine.low %v462_v30, %v470_v31  ;;  %v5751_v43 = vcombine.high %v478_v38, %v486_v39  ;;  %v573_v29 = vld [vmem:[#allocation6 + $0x890] sm:$0xff] }
 0x18d   :  { %3721 = vmatprep.subr.bf16.mxu1 %v5639_v42  ;;  %v5749_v42 = vcombine.high %v477_v36, %v485_v37  ;;  %v581_v30 = vld [vmem:[#allocation6 + $0x8d0] sm:$0xff]  ;;  %v5828_v31 = vcombine.low %v557_v20, %v565_v22 }
 0x18f   :  { %3636 = vmatpush1.bf16.msra.mxu0 %v5636_v47  ;;  %v502_v47 = vld [vmem:[#allocation6 + $0x658] sm:$0xff] }
 0x190   :  { %3722 = vmatpush1.bf16.msra.mxu1 %v5638_v48  ;;  %3637 = vmatprep.subr.bf16.mxu0 %v5653_v49  ;;  %v5748_v48 = vcombine.low %v477_v36, %v485_v37  ;;  %v5750_v49 = vcombine.low %v478_v38, %v486_v39  ;;  %v5767_v51 = vcombine.high %v494_v46, %v502_v47  ;;  %v589_v36 = vld [vmem:[#allocation6 + $0x910] sm:$0xff]  ;;  %v590_v39 = vld [vmem:[#allocation6 + $0x918] sm:$0xff] }
 0x191   :  { %3723 = vmatprep.subr.bf16.mxu1 %v5655_v50  ;;  %v5765_v50 = vcombine.high %v493_v44, %v501_v45  ;;  %v597_v37 = vld [vmem:[#allocation6 + $0x950] sm:$0xff] }
 0x193   :  { %3638 = vmatpush1.bf16.msra.mxu0 %v5652_v58  ;;  %v518_v58 = vld [vmem:[#allocation6 + $0x6d8] sm:$0xff] }
 0x194   :  { %3724 = vmatpush1.bf16.msra.mxu1 %v5654_v59  ;;  %3639 = vmatprep.subr.bf16.mxu0 %v5669_v61  ;;  %v5764_v59 = vcombine.low %v493_v44, %v501_v45  ;;  %v5766_v61 = vcombine.low %v494_v46, %v502_v47  ;;  %v5783_v63 = vcombine.high %v510_v57, %v518_v58  ;;  %v605_v45 = vld [vmem:[#allocation6 + $0x990] sm:$0xff]  ;;  %v606_v47 = vld [vmem:[#allocation6 + $0x998] sm:$0xff] }
 0x195   :  { %3725 = vmatprep.subr.bf16.mxu1 %v5671_v62  ;;  %v5781_v62 = vcombine.high %v509_v52, %v517_v54  ;;  %v613_v46 = vld [vmem:[#allocation6 + $0x9d0] sm:$0xff] }
 0x197   :  { %3640 = vmatpush1.bf16.msra.mxu0 %v5668_v3  ;;  %v534_v3 = vld [vmem:[#allocation6 + $0x758] sm:$0xff] }
 0x198   :  { %3726 = vmatpush1.bf16.msra.mxu1 %v5670_v4  ;;  %3641 = vmatprep.subr.bf16.mxu0 %v5685_v5  ;;  %v5780_v4 = vcombine.low %v509_v52, %v517_v54  ;;  %v5782_v5 = vcombine.low %v510_v57, %v518_v58  ;;  %v5799_v7 = vcombine.high %v526_v2, %v534_v3  ;;  %v621_v54 = vld [vmem:[#allocation6 + $0xa10] sm:$0xff]  ;;  %v622_v58 = vld [vmem:[#allocation6 + $0xa18] sm:$0xff] }
 0x199   :  { %3727 = vmatprep.subr.bf16.mxu1 %v5687_v6  ;;  %v5797_v6 = vcombine.high %v525_v0, %v533_v1  ;;  %v629_v57 = vld [vmem:[#allocation6 + $0xa50] sm:$0xff] }
 0x19b   :  { %3642 = vmatpush1.bf16.msra.mxu0 %v5684_v11  ;;  %v550_v11 = vld [vmem:[#allocation6 + $0x7d8] sm:$0xff] }
 0x19c   :  { %3728 = vmatpush1.bf16.msra.mxu1 %v5686_v12  ;;  %3643 = vmatprep.subr.bf16.mxu0 %v5701_v13  ;;  %v5796_v12 = vcombine.low %v525_v0, %v533_v1  ;;  %v5798_v13 = vcombine.low %v526_v2, %v534_v3  ;;  %v5815_v15 = vcombine.high %v542_v10, %v550_v11  ;;  %v637_v1 = vld [vmem:[#allocation6 + $0xa90] sm:$0xff]  ;;  %v638_v3 = vld [vmem:[#allocation6 + $0xa98] sm:$0xff] }
 0x19d   :  { %3729 = vmatprep.subr.bf16.mxu1 %v5703_v14  ;;  %v5813_v14 = vcombine.high %v541_v8, %v549_v9  ;;  %v645_v2 = vld [vmem:[#allocation6 + $0xad0] sm:$0xff] }
 0x19f   :  { %3644 = vmatpush1.bf16.msra.mxu0 %v5700_v24  ;;  %v566_v24 = vld [vmem:[#allocation6 + $0x858] sm:$0xff] }
 0x1a0   :  { %3730 = vmatpush1.bf16.msra.mxu1 %v5702_v25  ;;  %3645 = vmatprep.subr.bf16.mxu0 %v5717_v26  ;;  %v5812_v25 = vcombine.low %v541_v8, %v549_v9  ;;  %v5814_v26 = vcombine.low %v542_v10, %v550_v11  ;;  %v5831_v28 = vcombine.high %v558_v23, %v566_v24  ;;  %v653_v9 = vld [vmem:[#allocation6 + $0xb10] sm:$0xff]  ;;  %v654_v11 = vld [vmem:[#allocation6 + $0xb18] sm:$0xff] }
 0x1a1   :  { %3731 = vmatprep.subr.bf16.mxu1 %v5719_v27  ;;  %v5829_v27 = vcombine.high %v557_v20, %v565_v22  ;;  %v661_v10 = vld [vmem:[#allocation6 + $0xb50] sm:$0xff] }
 0x1a2   :  { %v669_v22 = vld [vmem:[#allocation6 + $0xb90] sm:$0xff] }
 0x1a3   :  { %3646 = vmatpush1.bf16.msra.mxu0 %v5716_v32  ;;  %v574_v32 = vld [vmem:[#allocation6 + $0x898] sm:$0xff] }
 0x1a4   :  { %3732 = vmatpush1.bf16.msra.mxu1 %v5718_v33  ;;  %3647 = vmatprep.subr.bf16.mxu0 %v5733_v34  ;;  %v582_v33 = vld [vmem:[#allocation6 + $0x8d8] sm:$0xff]  ;;  %v5830_v34 = vcombine.low %v558_v23, %v566_v24  ;;  %v677_v23 = vld [vmem:[#allocation6 + $0xbd0] sm:$0xff] }
 0x1a5   :  { %3733 = vmatprep.subr.bf16.mxu1 %v5735_v35  ;;  %v5845_v35 = vcombine.high %v573_v29, %v581_v30  ;;  %v5847_v38 = vcombine.high %v574_v32, %v582_v33  ;;  %v670_v24 = vld [vmem:[#allocation6 + $0xb98] sm:$0xff] }
 0x1a7   :  { %3648 = vmatpush1.bf16.msra.mxu0 %v5732_v40  ;;  %v598_v40 = vld [vmem:[#allocation6 + $0x958] sm:$0xff] }
 0x1a8   :  { %3734 = vmatpush1.bf16.msra.mxu1 %v5734_v41  ;;  %3649 = vmatprep.subr.bf16.mxu0 %v5749_v42  ;;  %v5844_v41 = vcombine.low %v573_v29, %v581_v30  ;;  %v5846_v42 = vcombine.low %v574_v32, %v582_v33  ;;  %v5863_v44 = vcombine.high %v590_v39, %v598_v40  ;;  %v685_v30 = vld [vmem:[#allocation6 + $0xc10] sm:$0xff]  ;;  %v686_v32 = vld [vmem:[#allocation6 + $0xc18] sm:$0xff] }
 0x1a9   :  { %3735 = vmatprep.subr.bf16.mxu1 %v5751_v43  ;;  %v5861_v43 = vcombine.high %v589_v36, %v597_v37  ;;  %v694_v33 = vld [vmem:[#allocation6 + $0xc58] sm:$0xff] }
 0x1ab   :  { %3650 = vmatpush1.bf16.msra.mxu0 %v5748_v48  ;;  %v614_v48 = vld [vmem:[#allocation6 + $0x9d8] sm:$0xff] }
 0x1ac   :  { %3736 = vmatpush1.bf16.msra.mxu1 %v5750_v49  ;;  %3651 = vmatprep.subr.bf16.mxu0 %v5765_v50  ;;  %v5860_v49 = vcombine.low %v589_v36, %v597_v37  ;;  %v5862_v50 = vcombine.low %v590_v39, %v598_v40  ;;  %v5879_v52 = vcombine.high %v606_v47, %v614_v48  ;;  %v709_v39 = vld [vmem:[#allocation6 + $0xcd0] sm:$0xff]  ;;  %v702_v40 = vld [vmem:[#allocation6 + $0xc98] sm:$0xff] }
 0x1ad   :  { %3737 = vmatprep.subr.bf16.mxu1 %v5767_v51  ;;  %v5877_v51 = vcombine.high %v605_v45, %v613_v46  ;;  %v5959_v37 = vcombine.high %v686_v32, %v694_v33 }
 0x1af   :  { %3652 = vmatpush1.bf16.msra.mxu0 %v5764_v59  ;;  %v630_v59 = vld [vmem:[#allocation6 + $0xa58] sm:$0xff] }
 0x1b0   :  { %3738 = vmatpush1.bf16.msra.mxu1 %v5766_v61  ;;  %3653 = vmatprep.subr.bf16.mxu0 %v5781_v62  ;;  %v5876_v61 = vcombine.low %v605_v45, %v613_v46  ;;  %v5878_v62 = vcombine.low %v606_v47, %v614_v48  ;;  %v5895_v0 = vcombine.high %v622_v58, %v630_v59  ;;  %v717_v46 = vld [vmem:[#allocation6 + $0xd10] sm:$0xff]  ;;  %v718_v48 = vld [vmem:[#allocation6 + $0xd18] sm:$0xff] }
 0x1b1   :  { %3739 = vmatprep.subr.bf16.mxu1 %v5783_v63  ;;  %v5893_v63 = vcombine.high %v621_v54, %v629_v57  ;;  %v725_v47 = vld [vmem:[#allocation6 + $0xd50] sm:$0xff] }
 0x1b3   :  { %3654 = vmatpush1.bf16.msra.mxu0 %v5780_v4  ;;  %v646_v4 = vld [vmem:[#allocation6 + $0xad8] sm:$0xff] }
 0x1b4   :  { %3740 = vmatpush1.bf16.msra.mxu1 %v5782_v5  ;;  %3655 = vmatprep.subr.bf16.mxu0 %v5797_v6  ;;  %v5892_v5 = vcombine.low %v621_v54, %v629_v57  ;;  %v5894_v6 = vcombine.low %v622_v58, %v630_v59  ;;  %v5911_v8 = vcombine.high %v638_v3, %v646_v4  ;;  %v733_v57 = vld [vmem:[#allocation6 + $0xd90] sm:$0xff]  ;;  %v734_v59 = vld [vmem:[#allocation6 + $0xd98] sm:$0xff] }
 0x1b5   :  { %3741 = vmatprep.subr.bf16.mxu1 %v5799_v7  ;;  %v5909_v7 = vcombine.high %v637_v1, %v645_v2  ;;  %v741_v58 = vld [vmem:[#allocation6 + $0xdd0] sm:$0xff] }
 0x1b7   :  { %3656 = vmatpush1.bf16.msra.mxu0 %v5796_v12  ;;  %v662_v12 = vld [vmem:[#allocation6 + $0xb58] sm:$0xff] }
 0x1b8   :  { %3742 = vmatpush1.bf16.msra.mxu1 %v5798_v13  ;;  %3657 = vmatprep.subr.bf16.mxu0 %v5813_v14  ;;  %v5908_v13 = vcombine.low %v637_v1, %v645_v2  ;;  %v5910_v14 = vcombine.low %v638_v3, %v646_v4  ;;  %v5927_v20 = vcombine.high %v654_v11, %v662_v12  ;;  %v749_v2 = vld [vmem:[#allocation6 + $0xe10] sm:$0xff]  ;;  %v750_v4 = vld [vmem:[#allocation6 + $0xe18] sm:$0xff] }
 0x1b9   :  { %3743 = vmatprep.subr.bf16.mxu1 %v5815_v15  ;;  %v5925_v15 = vcombine.high %v653_v9, %v661_v10  ;;  %v757_v3 = vld [vmem:[#allocation6 + $0xe50] sm:$0xff] }
 0x1bb   :  { %3658 = vmatpush1.bf16.msra.mxu0 %v5812_v25  ;;  %v678_v25 = vld [vmem:[#allocation6 + $0xbd8] sm:$0xff] }
 0x1bc   :  { %3744 = vmatpush1.bf16.msra.mxu1 %v5814_v26  ;;  %3670 = vmatprep.subr.bf16.mxu0 %v5829_v27  ;;  %v5924_v26 = vcombine.low %v653_v9, %v661_v10  ;;  %v5926_v27 = vcombine.low %v654_v11, %v662_v12  ;;  %v5943_v29 = vcombine.high %v670_v24, %v678_v25  ;;  %v765_v10 = vld [vmem:[#allocation6 + $0xe90] sm:$0xff]  ;;  %v766_v12 = vld [vmem:[#allocation6 + $0xe98] sm:$0xff] }
 0x1bd   :  { %3756 = vmatprep.subr.bf16.mxu1 %v5831_v28  ;;  %v5941_v28 = vcombine.high %v669_v22, %v677_v23  ;;  %v773_v11 = vld [vmem:[#allocation6 + $0xed0] sm:$0xff] }
 0x1be   :  { %3660 = vmatmul.mubr.bf16.vlgmr.msra.gmra.mrb[8].mxu0 %v6862_v53 }
 0x1bf   :  { %3746 = vmatmul.mubr.bf16.vlgmr.msra.gmra.mrb[8].mxu1 %v6862_v53  ;;  %3671 = vmatpush1.bf16.msra.mxu0 %v5828_v31  ;;  %v693_v31 = vld [vmem:[#allocation6 + $0xc50] sm:$0xff] }
 0x1c0   :  { %3702 = vmatprep.mubr.bf16.mxu0 %v6868_v60  ;;  %3757 = vmatpush1.bf16.msra.mxu1 %v5830_v34  ;;  %v5940_v34 = vcombine.low %v669_v22, %v677_v23  ;;  %v5957_v36 = vcombine.high %v685_v30, %v693_v31  ;;  %v781_v23 = vld [vmem:[#allocation6 + $0xf10] sm:$0xff] }
 0x1c1   :  { %3788 = vmatprep.mubr.bf16.mxu1 %v6868_v60  ;;  %3672 = vmatprep.subr.bf16.mxu0 %v5845_v35  ;;  %v5942_v35 = vcombine.low %v670_v24, %v678_v25  ;;  %v789_v24 = vld [vmem:[#allocation6 + $0xf50] sm:$0xff]  ;;  %v782_v25 = vld [vmem:[#allocation6 + $0xf18] sm:$0xff] }
 0x1c2   :  { %3758 = vmatprep.subr.bf16.mxu1 %v5847_v38  ;;  %v701_v38 = vld [vmem:[#allocation6 + $0xc90] sm:$0xff] }
 0x1c3   :  { %3673 = vmatpush1.bf16.msra.mxu0 %v5844_v41  ;;  %v710_v41 = vld [vmem:[#allocation6 + $0xcd8] sm:$0xff] }
 0x1c4   :  { %3759 = vmatpush1.bf16.msra.mxu1 %v5846_v42  ;;  %3674 = vmatprep.subr.bf16.mxu0 %v5861_v43  ;;  %v5956_v42 = vcombine.low %v685_v30, %v693_v31  ;;  %v5958_v43 = vcombine.low %v686_v32, %v694_v33  ;;  %v5975_v45 = vcombine.high %v702_v40, %v710_v41  ;;  %v797_v31 = vld [vmem:[#allocation6 + $0xf90] sm:$0xff]  ;;  %v798_v33 = vld [vmem:[#allocation6 + $0xf98] sm:$0xff] }
 0x1c5   :  { %3760 = vmatprep.subr.bf16.mxu1 %v5863_v44  ;;  %v5973_v44 = vcombine.high %v701_v38, %v709_v39  ;;  %v805_v32 = vld [vmem:[#allocation6 + $0xfd0] sm:$0xff] }
 0x1c7   :  { %3675 = vmatpush1.bf16.msra.mxu0 %v5860_v49  ;;  %v726_v49 = vld [vmem:[#allocation6 + $0xd58] sm:$0xff] }
 0x1c8   :  { %3761 = vmatpush1.bf16.msra.mxu1 %v5862_v50  ;;  %3676 = vmatprep.subr.bf16.mxu0 %v5877_v51  ;;  %v5972_v50 = vcombine.low %v701_v38, %v709_v39  ;;  %v5974_v51 = vcombine.low %v702_v40, %v710_v41  ;;  %v5991_v54 = vcombine.high %v718_v48, %v726_v49  ;;  %v303_v39 = vld [vmem:[#allocation6 + $0x20] sm:$0xff]  ;;  %v304_v41 = vld [vmem:[#allocation6 + $0x28] sm:$0xff] }
 0x1c9   :  { %3762 = vmatprep.subr.bf16.mxu1 %v5879_v52  ;;  %v5989_v52 = vcombine.high %v717_v46, %v725_v47  ;;  %v311_v40 = vld [vmem:[#allocation6 + $0x60] sm:$0xff] }
 0x1cb   :  { %3677 = vmatpush1.bf16.msra.mxu0 %v5876_v61  ;;  %v742_v61 = vld [vmem:[#allocation6 + $0xdd8] sm:$0xff] }
 0x1cc   :  { %3763 = vmatpush1.bf16.msra.mxu1 %v5878_v62  ;;  %3678 = vmatprep.subr.bf16.mxu0 %v5893_v63  ;;  %v5988_v62 = vcombine.low %v717_v46, %v725_v47  ;;  %v5990_v63 = vcombine.low %v718_v48, %v726_v49  ;;  %v6007_v1 = vcombine.high %v734_v59, %v742_v61  ;;  %v319_v47 = vld [vmem:[#allocation6 + $0xa0] sm:$0xff] }
 0x1cd   :  { %3764 = vmatprep.subr.bf16.mxu1 %v5895_v0  ;;  %v6005_v0 = vcombine.high %v733_v57, %v741_v58  ;;  %v327_v48 = vld [vmem:[#allocation6 + $0xe0] sm:$0xff]  ;;  %v5576_v49 = vcombine.low %v303_v39, %v311_v40 }
 0x1cf   :  { %3679 = vmatpush1.bf16.msra.mxu0 %v5892_v5  ;;  %v758_v5 = vld [vmem:[#allocation6 + $0xe58] sm:$0xff] }
 0x1d0   :  { %3765 = vmatpush1.bf16.msra.mxu1 %v5894_v6  ;;  %3680 = vmatprep.subr.bf16.mxu0 %v5909_v7  ;;  %v6004_v6 = vcombine.low %v733_v57, %v741_v58  ;;  %v6006_v7 = vcombine.low %v734_v59, %v742_v61  ;;  %v6023_v9 = vcombine.high %v750_v4, %v758_v5  ;;  %v335_v57 = vld [vmem:[#allocation6 + $0x120] sm:$0xff]  ;;  %v336_v61 = vld [vmem:[#allocation6 + $0x128] sm:$0xff] }
 0x1d1   :  { %3766 = vmatprep.subr.bf16.mxu1 %v5911_v8  ;;  %v6021_v8 = vcombine.high %v749_v2, %v757_v3  ;;  %v343_v58 = vld [vmem:[#allocation6 + $0x160] sm:$0xff] }
 0x1d3   :  { %3681 = vmatpush1.bf16.msra.mxu0 %v5908_v13  ;;  %v774_v13 = vld [vmem:[#allocation6 + $0xed8] sm:$0xff] }
 0x1d4   :  { %3767 = vmatpush1.bf16.msra.mxu1 %v5910_v14  ;;  %3682 = vmatprep.subr.bf16.mxu0 %v5925_v15  ;;  %v6020_v14 = vcombine.low %v749_v2, %v757_v3  ;;  %v6022_v15 = vcombine.low %v750_v4, %v758_v5  ;;  %v6039_v22 = vcombine.high %v766_v12, %v774_v13  ;;  %v351_v3 = vld [vmem:[#allocation6 + $0x1a0] sm:$0xff]  ;;  %v352_v5 = vld [vmem:[#allocation6 + $0x1a8] sm:$0xff] }
 0x1d5   :  { %3768 = vmatprep.subr.bf16.mxu1 %v5927_v20  ;;  %v6037_v20 = vcombine.high %v765_v10, %v773_v11  ;;  %v359_v4 = vld [vmem:[#allocation6 + $0x1e0] sm:$0xff] }
 0x1d7   :  { %3683 = vmatpush1.bf16.msra.mxu0 %v5924_v26  ;;  %v790_v26 = vld [vmem:[#allocation6 + $0xf58] sm:$0xff] }
 0x1d8   :  { %3769 = vmatpush1.bf16.msra.mxu1 %v5926_v27  ;;  %3684 = vmatprep.subr.bf16.mxu0 %v5941_v28  ;;  %v6036_v27 = vcombine.low %v765_v10, %v773_v11  ;;  %v6038_v28 = vcombine.low %v766_v12, %v774_v13  ;;  %v6055_v30 = vcombine.high %v782_v25, %v790_v26  ;;  %v367_v11 = vld [vmem:[#allocation6 + $0x220] sm:$0xff]  ;;  %v368_v13 = vld [vmem:[#allocation6 + $0x228] sm:$0xff] }
 0x1d9   :  { %3770 = vmatprep.subr.bf16.mxu1 %v5943_v29  ;;  %v6053_v29 = vcombine.high %v781_v23, %v789_v24  ;;  %v375_v12 = vld [vmem:[#allocation6 + $0x260] sm:$0xff] }
 0x1db   :  { %3685 = vmatpush1.bf16.msra.mxu0 %v5940_v34  ;;  %v806_v34 = vld [vmem:[#allocation6 + $0xfd8] sm:$0xff] }
 0x1dc   :  { %3771 = vmatpush1.bf16.msra.mxu1 %v5942_v35  ;;  %3686 = vmatprep.subr.bf16.mxu0 %v5957_v36  ;;  %v6052_v35 = vcombine.low %v781_v23, %v789_v24  ;;  %v6054_v36 = vcombine.low %v782_v25, %v790_v26  ;;  %v6071_v38 = vcombine.high %v798_v33, %v806_v34  ;;  %v383_v24 = vld [vmem:[#allocation6 + $0x2a0] sm:$0xff]  ;;  %v384_v26 = vld [vmem:[#allocation6 + $0x2a8] sm:$0xff] }
 0x1dd   :  { %3772 = vmatprep.subr.bf16.mxu1 %v5959_v37  ;;  %v6069_v37 = vcombine.high %v797_v31, %v805_v32  ;;  %v391_v25 = vld [vmem:[#allocation6 + $0x2e0] sm:$0xff] }
 0x1df   :  { %3687 = vmatpush1.bf16.msra.mxu0 %v5956_v42  ;;  %v312_v42 = vld [vmem:[#allocation6 + $0x68] sm:$0xff] }
 0x1e0   :  { %3773 = vmatpush1.bf16.msra.mxu1 %v5958_v43  ;;  %3688 = vmatprep.subr.bf16.mxu0 %v5973_v44  ;;  %v6068_v43 = vcombine.low %v797_v31, %v805_v32  ;;  %v6070_v44 = vcombine.low %v798_v33, %v806_v34  ;;  %v5579_v46 = vcombine.high %v304_v41, %v312_v42  ;;  %v399_v32 = vld [vmem:[#allocation6 + $0x320] sm:$0xff]  ;;  %v400_v34 = vld [vmem:[#allocation6 + $0x328] sm:$0xff] }
 0x1e1   :  { %3774 = vmatprep.subr.bf16.mxu1 %v5975_v45  ;;  %v5577_v45 = vcombine.high %v303_v39, %v311_v40  ;;  %v407_v33 = vld [vmem:[#allocation6 + $0x360] sm:$0xff] }
 0x1e2   :  { %v415_v40 = vld [vmem:[#allocation6 + $0x3a0] sm:$0xff] }
 0x1e3   :  { %3689 = vmatpush1.bf16.msra.mxu0 %v5972_v50  ;;  %v320_v50 = vld [vmem:[#allocation6 + $0xa8] sm:$0xff] }
 0x1e4   :  { %3775 = vmatpush1.bf16.msra.mxu1 %v5974_v51  ;;  %3690 = vmatprep.subr.bf16.mxu0 %v5989_v52  ;;  %v328_v51 = vld [vmem:[#allocation6 + $0xe8] sm:$0xff]  ;;  %v5578_v52 = vcombine.low %v304_v41, %v312_v42  ;;  %v423_v41 = vld [vmem:[#allocation6 + $0x3e0] sm:$0xff] }
 0x1e5   :  { %3776 = vmatprep.subr.bf16.mxu1 %v5991_v54  ;;  %v5593_v54 = vcombine.high %v319_v47, %v327_v48  ;;  %v5595_v59 = vcombine.high %v320_v50, %v328_v51  ;;  %v416_v42 = vld [vmem:[#allocation6 + $0x3a8] sm:$0xff] }
 0x1e7   :  { %3691 = vmatpush1.bf16.msra.mxu0 %v5988_v62  ;;  %v344_v62 = vld [vmem:[#allocation6 + $0x168] sm:$0xff] }
 0x1e8   :  { %3777 = vmatpush1.bf16.msra.mxu1 %v5990_v63  ;;  %3692 = vmatprep.subr.bf16.mxu0 %v6005_v0  ;;  %v5592_v63 = vcombine.low %v319_v47, %v327_v48  ;;  %v5594_v0 = vcombine.low %v320_v50, %v328_v51  ;;  %v5611_v2 = vcombine.high %v336_v61, %v344_v62  ;;  %v431_v48 = vld [vmem:[#allocation6 + $0x420] sm:$0xff]  ;;  %v432_v50 = vld [vmem:[#allocation6 + $0x428] sm:$0xff] }
 0x1e9   :  { %3778 = vmatprep.subr.bf16.mxu1 %v6007_v1  ;;  %v5609_v1 = vcombine.high %v335_v57, %v343_v58  ;;  %v440_v51 = vld [vmem:[#allocation6 + $0x468] sm:$0xff] }
 0x1eb   :  { %3693 = vmatpush1.bf16.msra.mxu0 %v6004_v6  ;;  %v360_v6 = vld [vmem:[#allocation6 + $0x1e8] sm:$0xff] }
 0x1ec   :  { %3779 = vmatpush1.bf16.msra.mxu1 %v6006_v7  ;;  %3694 = vmatprep.subr.bf16.mxu0 %v6021_v8  ;;  %v5608_v7 = vcombine.low %v335_v57, %v343_v58  ;;  %v5610_v8 = vcombine.low %v336_v61, %v344_v62  ;;  %v5627_v10 = vcombine.high %v352_v5, %v360_v6  ;;  %v455_v61 = vld [vmem:[#allocation6 + $0x4e0] sm:$0xff]  ;;  %v448_v62 = vld [vmem:[#allocation6 + $0x4a8] sm:$0xff] }
 0x1ed   :  { %3780 = vmatprep.subr.bf16.mxu1 %v6023_v9  ;;  %v5625_v9 = vcombine.high %v351_v3, %v359_v4  ;;  %v5707_v58 = vcombine.high %v432_v50, %v440_v51 }
 0x1ef   :  { %3695 = vmatpush1.bf16.msra.mxu0 %v6020_v14  ;;  %v376_v14 = vld [vmem:[#allocation6 + $0x268] sm:$0xff] }
 0x1f0   :  { %3781 = vmatpush1.bf16.msra.mxu1 %v6022_v15  ;;  %3696 = vmatprep.subr.bf16.mxu0 %v6037_v20  ;;  %v5624_v15 = vcombine.low %v351_v3, %v359_v4  ;;  %v5626_v20 = vcombine.low %v352_v5, %v360_v6  ;;  %v5643_v23 = vcombine.high %v368_v13, %v376_v14  ;;  %v463_v4 = vld [vmem:[#allocation6 + $0x520] sm:$0xff]  ;;  %v464_v6 = vld [vmem:[#allocation6 + $0x528] sm:$0xff] }
 0x1f1   :  { %3782 = vmatprep.subr.bf16.mxu1 %v6039_v22  ;;  %v5641_v22 = vcombine.high %v367_v11, %v375_v12  ;;  %v471_v5 = vld [vmem:[#allocation6 + $0x560] sm:$0xff] }
 0x1f3   :  { %3697 = vmatpush1.bf16.msra.mxu0 %v6036_v27  ;;  %v392_v27 = vld [vmem:[#allocation6 + $0x2e8] sm:$0xff] }
 0x1f4   :  { %3783 = vmatpush1.bf16.msra.mxu1 %v6038_v28  ;;  %3698 = vmatprep.subr.bf16.mxu0 %v6053_v29  ;;  %v5640_v28 = vcombine.low %v367_v11, %v375_v12  ;;  %v5642_v29 = vcombine.low %v368_v13, %v376_v14  ;;  %v5659_v31 = vcombine.high %v384_v26, %v392_v27  ;;  %v479_v12 = vld [vmem:[#allocation6 + $0x5a0] sm:$0xff]  ;;  %v480_v14 = vld [vmem:[#allocation6 + $0x5a8] sm:$0xff] }
 0x1f5   :  { %3784 = vmatprep.subr.bf16.mxu1 %v6055_v30  ;;  %v5657_v30 = vcombine.high %v383_v24, %v391_v25  ;;  %v487_v13 = vld [vmem:[#allocation6 + $0x5e0] sm:$0xff] }
 0x1f7   :  { %3699 = vmatpush1.bf16.msra.mxu0 %v6052_v35  ;;  %v408_v35 = vld [vmem:[#allocation6 + $0x368] sm:$0xff] }
 0x1f8   :  { %3785 = vmatpush1.bf16.msra.mxu1 %v6054_v36  ;;  %3700 = vmatprep.subr.bf16.mxu0 %v6069_v37  ;;  %v5656_v36 = vcombine.low %v383_v24, %v391_v25  ;;  %v5658_v37 = vcombine.low %v384_v26, %v392_v27  ;;  %v5675_v39 = vcombine.high %v400_v34, %v408_v35  ;;  %v495_v25 = vld [vmem:[#allocation6 + $0x620] sm:$0xff]  ;;  %v496_v27 = vld [vmem:[#allocation6 + $0x628] sm:$0xff] }
 0x1f9   :  { %3786 = vmatprep.subr.bf16.mxu1 %v6071_v38  ;;  %v5673_v38 = vcombine.high %v399_v32, %v407_v33  ;;  %v503_v26 = vld [vmem:[#allocation6 + $0x660] sm:$0xff] }
 0x1fb   :  { %3701 = vmatpush1.bf16.msra.mxu0 %v6068_v43  ;;  %v424_v43 = vld [vmem:[#allocation6 + $0x3e8] sm:$0xff] }
 0x1fc   :  { %3787 = vmatpush1.bf16.msra.mxu1 %v6070_v44  ;;  %3799 = vmatprep.subr.bf16.mxu0 %v5577_v45  ;;  %v5672_v44 = vcombine.low %v399_v32, %v407_v33  ;;  %v5674_v45 = vcombine.low %v400_v34, %v408_v35  ;;  %v5691_v47 = vcombine.high %v416_v42, %v424_v43  ;;  %v511_v33 = vld [vmem:[#allocation6 + $0x6a0] sm:$0xff]  ;;  %v512_v35 = vld [vmem:[#allocation6 + $0x6a8] sm:$0xff] }
 0x1fd   :  { %3885 = vmatprep.subr.bf16.mxu1 %v5579_v46  ;;  %v5689_v46 = vcombine.high %v415_v40, %v423_v41  ;;  %v519_v34 = vld [vmem:[#allocation6 + $0x6e0] sm:$0xff] }
 0x1fe   :  { %3703 = vmatmul.mubr.bf16.vlgmr.msra.gmra.mrb[8].mxu0 %v6866_v56 }
 0x1ff   :  { %3789 = vmatmul.mubr.bf16.vlgmr.msra.gmra.mrb[8].mxu1 %v6866_v56  ;;  %3800 = vmatpush1.bf16.msra.mxu0 %v5576_v49  ;;  %v439_v49 = vld [vmem:[#allocation6 + $0x460] sm:$0xff] }
 0x200   :  { %3831 = vmatprep.mubr.bf16.mxu0 %v6864_v55  ;;  %3886 = vmatpush1.bf16.msra.mxu1 %v5578_v52  ;;  %v5688_v52 = vcombine.low %v415_v40, %v423_v41  ;;  %v5705_v57 = vcombine.high %v431_v48, %v439_v49  ;;  %v527_v41 = vld [vmem:[#allocation6 + $0x720] sm:$0xff] }
 0x201   :  { %3917 = vmatprep.mubr.bf16.mxu1 %v6864_v55  ;;  %3801 = vmatprep.subr.bf16.mxu0 %v5593_v54  ;;  %v5690_v54 = vcombine.low %v416_v42, %v424_v43  ;;  %v535_v42 = vld [vmem:[#allocation6 + $0x760] sm:$0xff]  ;;  %v528_v43 = vld [vmem:[#allocation6 + $0x728] sm:$0xff] }
 0x202   :  { %3887 = vmatprep.subr.bf16.mxu1 %v5595_v59  ;;  %v447_v59 = vld [vmem:[#allocation6 + $0x4a0] sm:$0xff] }
 0x203   :  { %3802 = vmatpush1.bf16.msra.mxu0 %v5592_v63  ;;  %v456_v63 = vld [vmem:[#allocation6 + $0x4e8] sm:$0xff] }
 0x204   :  { %3888 = vmatpush1.bf16.msra.mxu1 %v5594_v0  ;;  %3803 = vmatprep.subr.bf16.mxu0 %v5609_v1  ;;  %v5704_v0 = vcombine.low %v431_v48, %v439_v49  ;;  %v5706_v1 = vcombine.low %v432_v50, %v440_v51  ;;  %v5723_v3 = vcombine.high %v448_v62, %v456_v63  ;;  %v543_v49 = vld [vmem:[#allocation6 + $0x7a0] sm:$0xff]  ;;  %v544_v51 = vld [vmem:[#allocation6 + $0x7a8] sm:$0xff] }
 0x205   :  { %3889 = vmatprep.subr.bf16.mxu1 %v5611_v2  ;;  %v5721_v2 = vcombine.high %v447_v59, %v455_v61  ;;  %v551_v50 = vld [vmem:[#allocation6 + $0x7e0] sm:$0xff] }
 0x207   :  { %3804 = vmatpush1.bf16.msra.mxu0 %v5608_v7  ;;  %v472_v7 = vld [vmem:[#allocation6 + $0x568] sm:$0xff] }
 0x208   :  { %3890 = vmatpush1.bf16.msra.mxu1 %v5610_v8  ;;  %3805 = vmatprep.subr.bf16.mxu0 %v5625_v9  ;;  %v5720_v8 = vcombine.low %v447_v59, %v455_v61  ;;  %v5722_v9 = vcombine.low %v448_v62, %v456_v63  ;;  %v5739_v11 = vcombine.high %v464_v6, %v472_v7  ;;  %v559_v61 = vld [vmem:[#allocation6 + $0x820] sm:$0xff]  ;;  %v560_v63 = vld [vmem:[#allocation6 + $0x828] sm:$0xff] }
 0x209   :  { %3891 = vmatprep.subr.bf16.mxu1 %v5627_v10  ;;  %v5737_v10 = vcombine.high %v463_v4, %v471_v5  ;;  %v567_v62 = vld [vmem:[#allocation6 + $0x860] sm:$0xff] }
 0x20b   :  { %3806 = vmatpush1.bf16.msra.mxu0 %v5624_v15  ;;  %v488_v15 = vld [vmem:[#allocation6 + $0x5e8] sm:$0xff] }
 0x20c   :  { %3892 = vmatpush1.bf16.msra.mxu1 %v5626_v20  ;;  %3807 = vmatprep.subr.bf16.mxu0 %v5641_v22  ;;  %v5736_v20 = vcombine.low %v463_v4, %v471_v5  ;;  %v5738_v22 = vcombine.low %v464_v6, %v472_v7  ;;  %v5755_v24 = vcombine.high %v480_v14, %v488_v15  ;;  %v575_v5 = vld [vmem:[#allocation6 + $0x8a0] sm:$0xff] }
 0x20d   :  { %3893 = vmatprep.subr.bf16.mxu1 %v5643_v23  ;;  %v5753_v23 = vcombine.high %v479_v12, %v487_v13  ;;  %v583_v6 = vld [vmem:[#allocation6 + $0x8e0] sm:$0xff]  ;;  %v5832_v7 = vcombine.low %v559_v61, %v567_v62 }
 0x20f   :  { %3808 = vmatpush1.bf16.msra.mxu0 %v5640_v28  ;;  %v504_v28 = vld [vmem:[#allocation6 + $0x668] sm:$0xff] }
 0x210   :  { %3894 = vmatpush1.bf16.msra.mxu1 %v5642_v29  ;;  %3809 = vmatprep.subr.bf16.mxu0 %v5657_v30  ;;  %v5752_v29 = vcombine.low %v479_v12, %v487_v13  ;;  %v5754_v30 = vcombine.low %v480_v14, %v488_v15  ;;  %v5771_v32 = vcombine.high %v496_v27, %v504_v28  ;;  %v591_v12 = vld [vmem:[#allocation6 + $0x920] sm:$0xff]  ;;  %v592_v15 = vld [vmem:[#allocation6 + $0x928] sm:$0xff] }
 0x211   :  { %3895 = vmatprep.subr.bf16.mxu1 %v5659_v31  ;;  %v5769_v31 = vcombine.high %v495_v25, %v503_v26  ;;  %v599_v13 = vld [vmem:[#allocation6 + $0x960] sm:$0xff] }
 0x213   :  { %3810 = vmatpush1.bf16.msra.mxu0 %v5656_v36  ;;  %v520_v36 = vld [vmem:[#allocation6 + $0x6e8] sm:$0xff] }
 0x214   :  { %3896 = vmatpush1.bf16.msra.mxu1 %v5658_v37  ;;  %3811 = vmatprep.subr.bf16.mxu0 %v5673_v38  ;;  %v5768_v37 = vcombine.low %v495_v25, %v503_v26  ;;  %v5770_v38 = vcombine.low %v496_v27, %v504_v28  ;;  %v5787_v40 = vcombine.high %v512_v35, %v520_v36  ;;  %v607_v26 = vld [vmem:[#allocation6 + $0x9a0] sm:$0xff]  ;;  %v608_v28 = vld [vmem:[#allocation6 + $0x9a8] sm:$0xff] }
 0x215   :  { %3897 = vmatprep.subr.bf16.mxu1 %v5675_v39  ;;  %v5785_v39 = vcombine.high %v511_v33, %v519_v34  ;;  %v615_v27 = vld [vmem:[#allocation6 + $0x9e0] sm:$0xff] }
 0x217   :  { %3812 = vmatpush1.bf16.msra.mxu0 %v5672_v44  ;;  %v536_v44 = vld [vmem:[#allocation6 + $0x768] sm:$0xff] }
 0x218   :  { %3898 = vmatpush1.bf16.msra.mxu1 %v5674_v45  ;;  %3813 = vmatprep.subr.bf16.mxu0 %v5689_v46  ;;  %v5784_v45 = vcombine.low %v511_v33, %v519_v34  ;;  %v5786_v46 = vcombine.low %v512_v35, %v520_v36  ;;  %v5803_v48 = vcombine.high %v528_v43, %v536_v44  ;;  %v623_v34 = vld [vmem:[#allocation6 + $0xa20] sm:$0xff]  ;;  %v624_v36 = vld [vmem:[#allocation6 + $0xa28] sm:$0xff] }
 0x219   :  { %3899 = vmatprep.subr.bf16.mxu1 %v5691_v47  ;;  %v5801_v47 = vcombine.high %v527_v41, %v535_v42  ;;  %v631_v35 = vld [vmem:[#allocation6 + $0xa60] sm:$0xff] }
 0x21b   :  { %3814 = vmatpush1.bf16.msra.mxu0 %v5688_v52  ;;  %v552_v52 = vld [vmem:[#allocation6 + $0x7e8] sm:$0xff] }
 0x21c   :  { %3900 = vmatpush1.bf16.msra.mxu1 %v5690_v54  ;;  %3815 = vmatprep.subr.bf16.mxu0 %v5705_v57  ;;  %v5800_v54 = vcombine.low %v527_v41, %v535_v42  ;;  %v5802_v57 = vcombine.low %v528_v43, %v536_v44  ;;  %v5819_v59 = vcombine.high %v544_v51, %v552_v52  ;;  %v639_v42 = vld [vmem:[#allocation6 + $0xaa0] sm:$0xff]  ;;  %v640_v44 = vld [vmem:[#allocation6 + $0xaa8] sm:$0xff] }
 0x21d   :  { %3901 = vmatprep.subr.bf16.mxu1 %v5707_v58  ;;  %v5817_v58 = vcombine.high %v543_v49, %v551_v50  ;;  %v647_v43 = vld [vmem:[#allocation6 + $0xae0] sm:$0xff] }
 0x21f   :  { %3816 = vmatpush1.bf16.msra.mxu0 %v5704_v0  ;;  %v568_v0 = vld [vmem:[#allocation6 + $0x868] sm:$0xff] }
 0x220   :  { %3902 = vmatpush1.bf16.msra.mxu1 %v5706_v1  ;;  %3817 = vmatprep.subr.bf16.mxu0 %v5721_v2  ;;  %v5816_v1 = vcombine.low %v543_v49, %v551_v50  ;;  %v5818_v2 = vcombine.low %v544_v51, %v552_v52  ;;  %v5835_v4 = vcombine.high %v560_v63, %v568_v0  ;;  %v655_v51 = vld [vmem:[#allocation6 + $0xb20] sm:$0xff] }
 0x221   :  { %3903 = vmatprep.subr.bf16.mxu1 %v5723_v3  ;;  %v5833_v3 = vcombine.high %v559_v61, %v567_v62  ;;  %v5913_v49 = vcombine.high %v639_v42, %v647_v43  ;;  %v663_v52 = vld [vmem:[#allocation6 + $0xb60] sm:$0xff] }
 0x223   :  { %3818 = vmatpush1.bf16.msra.mxu0 %v5720_v8  ;;  %v576_v8 = vld [vmem:[#allocation6 + $0x8a8] sm:$0xff] }
 0x224   :  { %3904 = vmatpush1.bf16.msra.mxu1 %v5722_v9  ;;  %3819 = vmatprep.subr.bf16.mxu0 %v5737_v10  ;;  %v584_v9 = vld [vmem:[#allocation6 + $0x8e8] sm:$0xff]  ;;  %v5834_v10 = vcombine.low %v560_v63, %v568_v0  ;;  %v5912_v63 = vcombine.low %v639_v42, %v647_v43 }
 0x225   :  { %3905 = vmatprep.subr.bf16.mxu1 %v5739_v11  ;;  %v5849_v11 = vcombine.high %v575_v5, %v583_v6  ;;  %v5851_v14 = vcombine.high %v576_v8, %v584_v9 }
 0x227   :  { %3820 = vmatpush1.bf16.msra.mxu0 %v5736_v20  ;;  %v600_v20 = vld [vmem:[#allocation6 + $0x968] sm:$0xff] }
 0x228   :  { %3906 = vmatpush1.bf16.msra.mxu1 %v5738_v22  ;;  %3821 = vmatprep.subr.bf16.mxu0 %v5753_v23  ;;  %v5848_v22 = vcombine.low %v575_v5, %v583_v6  ;;  %v5850_v23 = vcombine.low %v576_v8, %v584_v9  ;;  %v5867_v25 = vcombine.high %v592_v15, %v600_v20 }
 0x229   :  { %3907 = vmatprep.subr.bf16.mxu1 %v5755_v24  ;;  %v5865_v24 = vcombine.high %v591_v12, %v599_v13 }
 0x22b   :  { %3822 = vmatpush1.bf16.msra.mxu0 %v5752_v29  ;;  %v616_v29 = vld [vmem:[#allocation6 + $0x9e8] sm:$0xff] }
 0x22c   :  { %3908 = vmatpush1.bf16.msra.mxu1 %v5754_v30  ;;  %3823 = vmatprep.subr.bf16.mxu0 %v5769_v31  ;;  %v5864_v30 = vcombine.low %v591_v12, %v599_v13  ;;  %v5866_v31 = vcombine.low %v592_v15, %v600_v20  ;;  %v5883_v33 = vcombine.high %v608_v28, %v616_v29  ;;  %v672_v12 = vld [vmem:[#allocation6 + $0xba8] sm:$0xff] }
 0x22d   :  { %3909 = vmatprep.subr.bf16.mxu1 %v5771_v32  ;;  %v5881_v32 = vcombine.high %v607_v26, %v615_v27  ;;  %v680_v13 = vld [vmem:[#allocation6 + $0xbe8] sm:$0xff] }
 0x22f   :  { %3824 = vmatpush1.bf16.msra.mxu0 %v5768_v37  ;;  %v632_v37 = vld [vmem:[#allocation6 + $0xa68] sm:$0xff] }
 0x230   :  { %3910 = vmatpush1.bf16.msra.mxu1 %v5770_v38  ;;  %3825 = vmatprep.subr.bf16.mxu0 %v5785_v39  ;;  %v5880_v38 = vcombine.low %v607_v26, %v615_v27  ;;  %v5882_v39 = vcombine.low %v608_v28, %v616_v29  ;;  %v5899_v41 = vcombine.high %v624_v36, %v632_v37 }
 0x231   :  { %3911 = vmatprep.subr.bf16.mxu1 %v5787_v40  ;;  %v5897_v40 = vcombine.high %v623_v34, %v631_v35 }
 0x233   :  { %3826 = vmatpush1.bf16.msra.mxu0 %v5784_v45  ;;  %v648_v45 = vld [vmem:[#allocation6 + $0xae8] sm:$0xff] }
 0x234   :  { %3912 = vmatpush1.bf16.msra.mxu1 %v5786_v46  ;;  %3827 = vmatprep.subr.bf16.mxu0 %v5801_v47  ;;  %v5896_v46 = vcombine.low %v623_v34, %v631_v35  ;;  %v6892_v47 = vld [vmem:[#allocation7] sm:$0xff]  ;;  %v5915_v50 = vcombine.high %v640_v44, %v648_v45  ;;  %v5914_v0 = vcombine.low %v640_v44, %v648_v45 }
 0x235   :  { %3913 = vmatprep.subr.bf16.mxu1 %v5803_v48  ;;  %v5898_v48 = vcombine.low %v624_v36, %v632_v37  ;;  %v822_v61 = vrot.slane %v6892_v47, %v6856_v21  ;;  %v830_v62 = vrot.slane %v6892_v47, %v6853_v19  ;;  %v687_v34 = vld [vmem:[#allocation6 + $0xc20] sm:$0xff] }
 0x236   :  { %v695_v35 = vld [vmem:[#allocation6 + $0xc60] sm:$0xff] }
 0x237   :  { %3828 = vmatpush1.bf16.msra.mxu0 %v5800_v54  ;;  %v818_v54 = vrot.slane %v6892_v47, %v6850_v18 }
 0x238   :  { %3914 = vmatpush1.bf16.msra.mxu1 %v5802_v57  ;;  %3829 = vmatprep.subr.bf16.mxu0 %v5817_v58  ;;  %v826_v57 = vrot.slane %v6892_v47, %v6847_v17  ;;  %v656_v58 = vld [vmem:[#allocation6 + $0xb28] sm:$0xff] }
 0x239   :  { %3915 = vmatprep.subr.bf16.mxu1 %v5819_v59  ;;  %v664_v59 = vld [vmem:[#allocation6 + $0xb68] sm:$0xff] }
 0x23a   :  { %v5931_v6 = vcombine.high %v656_v58, %v664_v59 }
 0x23b   :  { %3830 = vmatpush1.bf16.msra.mxu0 %v5816_v1  ;;  %v5929_v1 = vcombine.high %v655_v51, %v663_v52 }
 0x23c   :  { %3916 = vmatpush1.bf16.msra.mxu1 %v5818_v2  ;;  %3842 = vmatprep.subr.bf16.mxu0 %v5833_v3  ;;  %v671_v2 = vld [vmem:[#allocation6 + $0xba0] sm:$0xff] }
 0x23d   :  { %3928 = vmatprep.subr.bf16.mxu1 %v5835_v4  ;;  %v679_v3 = vld [vmem:[#allocation6 + $0xbe0] sm:$0xff] }
 0x23e   :  { %3832 = vmatmul.mubr.bf16.vlgmr.msra.gmra.mrb[12].mxu0 %v6862_v53  ;;  %v5945_v29 = vcombine.high %v671_v2, %v679_v3 }
 0x23f   :  { %3918 = vmatmul.mubr.bf16.vlgmr.msra.gmra.mrb[12].mxu1 %v6862_v53  ;;  %3843 = vmatpush1.bf16.msra.mxu0 %v5832_v7 }
 0x240   :  { %3874 = vmatprep.mubr.bf16.mxu0 %v6868_v60  ;;  %3929 = vmatpush1.bf16.msra.mxu1 %v5834_v10 }
 0x241   :  { %3960 = vmatprep.mubr.bf16.mxu1 %v6868_v60  ;;  %3844 = vmatprep.subr.bf16.mxu0 %v5849_v11  ;;  %v5928_v11 = vcombine.low %v655_v51, %v663_v52 }
 0x242   :  { %3930 = vmatprep.subr.bf16.mxu1 %v5851_v14 }
 0x243   :  { %3845 = vmatpush1.bf16.msra.mxu0 %v5848_v22 }
 0x244   :  { %3931 = vmatpush1.bf16.msra.mxu1 %v5850_v23  ;;  %3846 = vmatprep.subr.bf16.mxu0 %v5865_v24  ;;  %v5930_v23 = vcombine.low %v656_v58, %v664_v59  ;;  %v5944_v24 = vcombine.low %v671_v2, %v679_v3  ;;  %v704_v58 = vld [vmem:[#allocation6 + $0xca8] sm:$0xff]  ;;  %v727_v2 = vld [vmem:[#allocation6 + $0xd60] sm:$0xff] }
 0x245   :  { %3932 = vmatprep.subr.bf16.mxu1 %v5867_v25  ;;  %v712_v59 = vld [vmem:[#allocation6 + $0xce8] sm:$0xff] }
 0x246   :  { %v720_v3 = vld [vmem:[#allocation6 + $0xd28] sm:$0xff] }
 0x247   :  { %3847 = vmatpush1.bf16.msra.mxu0 %v5864_v30 }
 0x248   :  { %3933 = vmatpush1.bf16.msra.mxu1 %v5866_v31  ;;  %3848 = vmatprep.subr.bf16.mxu0 %v5881_v32  ;;  %v5946_v32 = vcombine.low %v672_v12, %v680_v13 }
 0x249   :  { %3934 = vmatprep.subr.bf16.mxu1 %v5883_v33  ;;  %v5947_v33 = vcombine.high %v672_v12, %v680_v13  ;;  %v744_v12 = vld [vmem:[#allocation6 + $0xde8] sm:$0xff] }
 0x24b   :  { %3849 = vmatpush1.bf16.msra.mxu0 %v5880_v38 }
 0x24c   :  { %3935 = vmatpush1.bf16.msra.mxu1 %v5882_v39  ;;  %3850 = vmatprep.subr.bf16.mxu0 %v5897_v40  ;;  %v688_v40 = vld [vmem:[#allocation6 + $0xc28] sm:$0xff] }
 0x24d   :  { %3936 = vmatprep.subr.bf16.mxu1 %v5899_v41  ;;  %v696_v41 = vld [vmem:[#allocation6 + $0xc68] sm:$0xff] }
 0x24e   :  { %v5963_v52 = vcombine.high %v688_v40, %v696_v41 }
 0x24f   :  { %3851 = vmatpush1.bf16.msra.mxu0 %v5896_v46 }
 0x250   :  { %3937 = vmatpush1.bf16.msra.mxu1 %v5898_v48  ;;  %3852 = vmatprep.subr.bf16.mxu0 %v5913_v49  ;;  %v5961_v49 = vcombine.high %v687_v34, %v695_v35 }
 0x251   :  { %v3532_v4 = vpop.f32.mrb[4].mxu0  ;;  %v3618_v5 = vpop.f32.mrb[4].mxu1  ;;  %3938 = vmatprep.subr.bf16.mxu1 %v5915_v50 }
 0x252   :  { %v6385_v7 = vadd.f32 %v3532_v4, %v818_v54  ;;  %v6389_v8 = vadd.f32 %v3618_v5, %v826_v57  ;;  %v3534_v9 = vpop.f32.mrb[5].mxu0  ;;  %v3620_v10 = vpop.f32.mrb[5].mxu1  ;;  %v728_v4 = vld [vmem:[#allocation6 + $0xd68] sm:$0xff] }
 0x253   :  { %v6386_v14 = vadd.f32 %v3534_v9, %v822_v61  ;;  %v6390_v15 = vadd.f32 %v3620_v10, %v830_v62  ;;  %v3536_v20 = vpop.f32.mrb[6].mxu0  ;;  %v3622_v22 = vpop.f32.mrb[6].mxu1  ;;  %3853 = vmatpush1.bf16.msra.mxu0 %v5912_v63  ;;  %v735_v9 = vld [vmem:[#allocation6 + $0xda0] sm:$0xff] }
 0x254   :  { %v6387_v25 = vadd.f32 %v3536_v20, %v818_v54  ;;  %v6391_v26 = vadd.f32 %v3622_v22, %v826_v57  ;;  %3939 = vmatpush1.bf16.msra.mxu1 %v5914_v0  ;;  %v3538_v27 = vpop.f32.mrb[7].mxu0  ;;  %v3624_v28 = vpop.f32.mrb[7].mxu1  ;;  %3854 = vmatprep.subr.bf16.mxu0 %v5929_v1  ;;  %v4143_v36 = vmax.f32 %v6385_v7, 0.0  ;;  %v4145_v37 = vmax.f32 %v6389_v8, 0.0  ;;  %v703_v54 = vld [vmem:[#allocation6 + $0xca0] sm:$0xff] }
 0x255   :  { %v6388_v30 = vadd.f32 %v3538_v27, %v822_v61  ;;  %v6392_v31 = vadd.f32 %v3624_v28, %v830_v62  ;;  %3940 = vmatprep.subr.bf16.mxu1 %v5931_v6  ;;  %v4144_v42 = vmax.f32 %v6386_v14, 0.0  ;;  %v4146_v43 = vmax.f32 %v6390_v15, 0.0  ;;  %v711_v57 = vld [vmem:[#allocation6 + $0xce0] sm:$0xff] }
 0x256   :  { %v4159_v38 = vmax.f32 %v6387_v25, 0.0  ;;  %v4161_v39 = vmax.f32 %v6391_v26, 0.0  ;;  %v5960_v61 = vcombine.low %v687_v34, %v695_v35  ;;  %v5962_v62 = vcombine.low %v688_v40, %v696_v41  ;;  %v719_v1 = vld [vmem:[#allocation6 + $0xd20] sm:$0xff]  ;;  %v760_v25 = vld [vmem:[#allocation6 + $0xe68] sm:$0xff] }
 0x257   :  { %v4160_v44 = vmax.f32 %v6388_v30, 0.0  ;;  %v4162_v45 = vmax.f32 %v6392_v31, 0.0  ;;  %3855 = vmatpush1.bf16.msra.mxu0 %v5928_v11  ;;  %v5977_v63 = vcombine.high %v703_v54, %v711_v57  ;;  %v5979_v0 = vcombine.high %v704_v58, %v712_v59  ;;  %v743_v10 = vld [vmem:[#allocation6 + $0xde0] sm:$0xff]  ;;  %v736_v11 = vld [vmem:[#allocation6 + $0xda8] sm:$0xff] }
 0x258   :  { %v6902_v46 = vpack.c.bf16 %v4159_v38, %v4143_v36  ;;  %v6904_v48 = vpack.c.bf16 %v4161_v39, %v4145_v37  ;;  %3941 = vmatpush1.bf16.msra.mxu1 %v5930_v23  ;;  %3856 = vmatprep.subr.bf16.mxu0 %v5945_v29  ;;  %v5976_v5 = vcombine.low %v703_v54, %v711_v57  ;;  %v751_v22 = vld [vmem:[#allocation6 + $0xe20] sm:$0xff]  ;;  %v784_v40 = vld [vmem:[#allocation6 + $0xf28] sm:$0xff] }
 0x259   :  { %v6906_v50 = vpack.c.bf16 %v4160_v44, %v4144_v42  ;;  %v6908_v51 = vpack.c.bf16 %v4162_v45, %v4146_v43  ;;  %3942 = vmatprep.subr.bf16.mxu1 %v5947_v33  ;;  %v5978_v6 = vcombine.low %v704_v58, %v712_v59  ;;  %v5993_v7 = vcombine.high %v719_v1, %v727_v2  ;;  %v759_v23 = vld [vmem:[#allocation6 + $0xe60] sm:$0xff]  ;;  %v776_v33 = vld [vmem:[#allocation6 + $0xee8] sm:$0xff] }
 0x25a   :  { %v5995_v8 = vcombine.high %v720_v3, %v728_v4  ;;  %v5992_v13 = vcombine.low %v719_v1, %v727_v2  ;;  %v5994_v14 = vcombine.low %v720_v3, %v728_v4  ;;  %v6009_v15 = vcombine.high %v735_v9, %v743_v10  ;;  %v767_v30 = vld [vmem:[#allocation6 + $0xea0] sm:$0xff]  ;;  %v792_v41 = vld [vmem:[#allocation6 + $0xf68] sm:$0xff]  ;;  %v306_v1 = vld [vmem:[#allocation6 + $0x38] sm:$0xff] }
 0x25b   :  { %3857 = vmatpush1.bf16.msra.mxu0 %v5944_v24  ;;  %v6011_v20 = vcombine.high %v736_v11, %v744_v12  ;;  %v752_v24 = vld [vmem:[#allocation6 + $0xe28] sm:$0xff]  ;;  %v6008_v26 = vcombine.low %v735_v9, %v743_v10  ;;  %v6010_v27 = vcombine.low %v736_v11, %v744_v12  ;;  %v6025_v28 = vcombine.high %v751_v22, %v759_v23  ;;  %v775_v31 = vld [vmem:[#allocation6 + $0xee0] sm:$0xff]  ;;  %v314_v2 = vld [vmem:[#allocation6 + $0x78] sm:$0xff] }
 0x25c   :  { %3943 = vmatpush1.bf16.msra.mxu1 %v5946_v32  ;;  %3858 = vmatprep.subr.bf16.mxu0 %v5961_v49  ;;  %v6027_v29 = vcombine.high %v752_v24, %v760_v25  ;;  %v768_v32 = vld [vmem:[#allocation6 + $0xea8] sm:$0xff]  ;;  %v6024_v34 = vcombine.low %v751_v22, %v759_v23  ;;  %v6026_v35 = vcombine.low %v752_v24, %v760_v25  ;;  %v783_v38 = vld [vmem:[#allocation6 + $0xf20] sm:$0xff]  ;;  %v322_v10 = vld [vmem:[#allocation6 + $0xb8] sm:$0xff] }
 0x25d   :  { %3944 = vmatprep.subr.bf16.mxu1 %v5963_v52  ;;  %v6041_v36 = vcombine.high %v767_v30, %v775_v31  ;;  %v6043_v37 = vcombine.high %v768_v32, %v776_v33  ;;  %v791_v39 = vld [vmem:[#allocation6 + $0xf60] sm:$0xff]  ;;  %v6040_v42 = vcombine.low %v767_v30, %v775_v31  ;;  %v6042_v43 = vcombine.low %v768_v32, %v776_v33  ;;  %v800_v54 = vld [vmem:[#allocation6 + $0xfa8] sm:$0xff]  ;;  %v330_v11 = vld [vmem:[#allocation6 + $0xf8] sm:$0xff] }
 0x25e   :  { %v6057_v44 = vcombine.high %v783_v38, %v791_v39  ;;  %v6059_v45 = vcombine.high %v784_v40, %v792_v41  ;;  %v799_v49 = vld [vmem:[#allocation6 + $0xfa0] sm:$0xff]  ;;  %v808_v57 = vld [vmem:[#allocation6 + $0xfe8] sm:$0xff]  ;;  %v6056_v58 = vcombine.low %v783_v38, %v791_v39  ;;  %v6058_v59 = vcombine.low %v784_v40, %v792_v41  ;;  %v338_v22 = vld [vmem:[#allocation6 + $0x138] sm:$0xff] }
 0x25f   :  { %3859 = vmatpush1.bf16.msra.mxu0 %v5960_v61  ;;  %v807_v52 = vld [vmem:[#allocation6 + $0xfe0] sm:$0xff]  ;;  %v6074_v4 = vcombine.low %v800_v54, %v808_v57  ;;  %v5582_v12 = vcombine.low %v306_v1, %v314_v2  ;;  %v346_v23 = vld [vmem:[#allocation6 + $0x178] sm:$0xff]  ;;  %v5598_v25 = vcombine.low %v322_v10, %v330_v11 }
 0x260   :  { %3945 = vmatpush1.bf16.msra.mxu1 %v5962_v62  ;;  %3860 = vmatprep.subr.bf16.mxu0 %v5977_v63  ;;  %v6073_v61 = vcombine.high %v799_v49, %v807_v52  ;;  %v6075_v62 = vcombine.high %v800_v54, %v808_v57  ;;  %v305_v63 = vld [vmem:[#allocation6 + $0x30] sm:$0xff]  ;;  %v6072_v3 = vcombine.low %v799_v49, %v807_v52  ;;  %v354_v30 = vld [vmem:[#allocation6 + $0x1b8] sm:$0xff] }
 0x261   :  { %3946 = vmatprep.subr.bf16.mxu1 %v5979_v0  ;;  %v313_v0 = vld [vmem:[#allocation6 + $0x70] sm:$0xff]  ;;  %v362_v31 = vld [vmem:[#allocation6 + $0x1f8] sm:$0xff]  ;;  %v5614_v33 = vcombine.low %v338_v22, %v346_v23 }
 0x262   :  { %v5580_v9 = vcombine.low %v305_v63, %v313_v0  ;;  %v370_v38 = vld [vmem:[#allocation6 + $0x238] sm:$0xff]  ;;  %v5630_v40 = vcombine.low %v354_v30, %v362_v31 }
 0x263   :  { %3861 = vmatpush1.bf16.msra.mxu0 %v5976_v5  ;;  %v5581_v5 = vcombine.high %v305_v63, %v313_v0  ;;  %v378_v39 = vld [vmem:[#allocation6 + $0x278] sm:$0xff] }
 0x264   :  { %3947 = vmatpush1.bf16.msra.mxu1 %v5978_v6  ;;  %3862 = vmatprep.subr.bf16.mxu0 %v5993_v7  ;;  %v5583_v6 = vcombine.high %v306_v1, %v314_v2  ;;  %v321_v7 = vld [vmem:[#allocation6 + $0xb0] sm:$0xff]  ;;  %v394_v49 = vld [vmem:[#allocation6 + $0x2f8] sm:$0xff]  ;;  %v5646_v54 = vcombine.low %v370_v38, %v378_v39 }
 0x265   :  { %3948 = vmatprep.subr.bf16.mxu1 %v5995_v8  ;;  %v329_v8 = vld [vmem:[#allocation6 + $0xf0] sm:$0xff]  ;;  %v410_v63 = vld [vmem:[#allocation6 + $0x378] sm:$0xff] }
 0x266   :  { %v5596_v24 = vcombine.low %v321_v7, %v329_v8 }
 0x267   :  { %3863 = vmatpush1.bf16.msra.mxu0 %v5992_v13  ;;  %v5597_v13 = vcombine.high %v321_v7, %v329_v8  ;;  %v426_v7 = vld [vmem:[#allocation6 + $0x3f8] sm:$0xff] }
 0x268   :  { %3949 = vmatpush1.bf16.msra.mxu1 %v5994_v14  ;;  %3864 = vmatprep.subr.bf16.mxu0 %v6009_v15  ;;  %v337_v14 = vld [vmem:[#allocation6 + $0x130] sm:$0xff] }
 0x269   :  { %3950 = vmatprep.subr.bf16.mxu1 %v6011_v20  ;;  %v345_v15 = vld [vmem:[#allocation6 + $0x170] sm:$0xff]  ;;  %v5599_v20 = vcombine.high %v322_v10, %v330_v11 }
 0x26a   :  { %v5612_v32 = vcombine.low %v337_v14, %v345_v15 }
 0x26b   :  { %3865 = vmatpush1.bf16.msra.mxu0 %v6008_v26  ;;  %v5613_v26 = vcombine.high %v337_v14, %v345_v15  ;;  %v434_v14 = vld [vmem:[#allocation6 + $0x438] sm:$0xff] }
 0x26c   :  { %3951 = vmatpush1.bf16.msra.mxu1 %v6010_v27  ;;  %3866 = vmatprep.subr.bf16.mxu0 %v6025_v28  ;;  %v5615_v27 = vcombine.high %v338_v22, %v346_v23  ;;  %v353_v28 = vld [vmem:[#allocation6 + $0x1b0] sm:$0xff]  ;;  %v442_v15 = vld [vmem:[#allocation6 + $0x478] sm:$0xff] }
 0x26d   :  { %3952 = vmatprep.subr.bf16.mxu1 %v6027_v29  ;;  %v361_v29 = vld [vmem:[#allocation6 + $0x1f0] sm:$0xff] }
 0x26f   :  { %3867 = vmatpush1.bf16.msra.mxu0 %v6024_v34  ;;  %v5629_v34 = vcombine.high %v353_v28, %v361_v29 }
 0x270   :  { %3953 = vmatpush1.bf16.msra.mxu1 %v6026_v35  ;;  %3868 = vmatprep.subr.bf16.mxu0 %v6041_v36  ;;  %v5631_v35 = vcombine.high %v354_v30, %v362_v31  ;;  %v369_v36 = vld [vmem:[#allocation6 + $0x230] sm:$0xff]  ;;  %v5710_v30 = vcombine.low %v434_v14, %v442_v15 }
 0x271   :  { %3954 = vmatprep.subr.bf16.mxu1 %v6043_v37  ;;  %v377_v37 = vld [vmem:[#allocation6 + $0x270] sm:$0xff] }
 0x272   :  { %v5645_v41 = vcombine.high %v369_v36, %v377_v37  ;;  %v5644_v52 = vcombine.low %v369_v36, %v377_v37  ;;  %v474_v36 = vld [vmem:[#allocation6 + $0x578] sm:$0xff] }
 0x273   :  { %3869 = vmatpush1.bf16.msra.mxu0 %v6040_v42  ;;  %v5647_v42 = vcombine.high %v370_v38, %v378_v39 }
 0x274   :  { %3955 = vmatpush1.bf16.msra.mxu1 %v6042_v43  ;;  %3870 = vmatprep.subr.bf16.mxu0 %v6057_v44  ;;  %v385_v43 = vld [vmem:[#allocation6 + $0x2b0] sm:$0xff] }
 0x275   :  { %3956 = vmatprep.subr.bf16.mxu1 %v6059_v45  ;;  %v393_v44 = vld [vmem:[#allocation6 + $0x2f0] sm:$0xff]  ;;  %v386_v45 = vld [vmem:[#allocation6 + $0x2b8] sm:$0xff] }
 0x276   :  { %v5661_v57 = vcombine.high %v385_v43, %v393_v44  ;;  %v5660_v0 = vcombine.low %v385_v43, %v393_v44  ;;  %v5662_v1 = vcombine.low %v386_v45, %v394_v49  ;;  %v490_v43 = vld [vmem:[#allocation6 + $0x5f8] sm:$0xff] }
 0x277   :  { %3871 = vmatpush1.bf16.msra.mxu0 %v6056_v58  ;;  %v5663_v58 = vcombine.high %v386_v45, %v394_v49 }
 0x278   :  { %3957 = vmatpush1.bf16.msra.mxu1 %v6058_v59  ;;  %3872 = vmatprep.subr.bf16.mxu0 %v6073_v61  ;;  %v401_v59 = vld [vmem:[#allocation6 + $0x330] sm:$0xff] }
 0x279   :  { %3958 = vmatprep.subr.bf16.mxu1 %v6075_v62  ;;  %v409_v61 = vld [vmem:[#allocation6 + $0x370] sm:$0xff]  ;;  %v402_v62 = vld [vmem:[#allocation6 + $0x338] sm:$0xff] }
 0x27a   :  { %v5677_v2 = vcombine.high %v401_v59, %v409_v61  ;;  %v5676_v8 = vcombine.low %v401_v59, %v409_v61  ;;  %v506_v59 = vld [vmem:[#allocation6 + $0x678] sm:$0xff] }
 0x27b   :  { %3873 = vmatpush1.bf16.msra.mxu0 %v6072_v3  ;;  %v5679_v3 = vcombine.high %v402_v62, %v410_v63 }
 0x27c   :  { %3959 = vmatpush1.bf16.msra.mxu1 %v6074_v4  ;;  %3971 = vmatprep.subr.bf16.mxu0 %v5581_v5  ;;  %v417_v4 = vld [vmem:[#allocation6 + $0x3b0] sm:$0xff] }
 0x27d   :  { %4057 = vmatprep.subr.bf16.mxu1 %v5583_v6  ;;  %v425_v5 = vld [vmem:[#allocation6 + $0x3f0] sm:$0xff]  ;;  %v418_v6 = vld [vmem:[#allocation6 + $0x3b8] sm:$0xff] }
 0x27e   :  { %3875 = vmatmul.mubr.bf16.vlgmr.msra.gmra.mrb[12].mxu0 %v6866_v56  ;;  %v5693_v10 = vcombine.high %v417_v4, %v425_v5  ;;  %v5695_v11 = vcombine.high %v418_v6, %v426_v7  ;;  %v5694_v22 = vcombine.low %v418_v6, %v426_v7 }
 0x27f   :  { %3961 = vmatmul.mubr.bf16.vlgmr.msra.gmra.mrb[12].mxu1 %v6866_v56  ;;  %3972 = vmatpush1.bf16.msra.mxu0 %v5580_v9  ;;  %v5678_v9 = vcombine.low %v402_v62, %v410_v63 }
 0x280   :  { %4003 = vmatprep.mubr.bf16.mxu0 %v6864_v55  ;;  %4058 = vmatpush1.bf16.msra.mxu1 %v5582_v12  ;;  %v433_v12 = vld [vmem:[#allocation6 + $0x430] sm:$0xff] }
 0x281   :  { %4089 = vmatprep.mubr.bf16.mxu1 %v6864_v55  ;;  %3973 = vmatprep.subr.bf16.mxu0 %v5597_v13  ;;  %v5628_v55 = vcombine.low %v353_v28, %v361_v29  ;;  %v441_v13 = vld [vmem:[#allocation6 + $0x470] sm:$0xff]  ;;  %v458_v28 = vld [vmem:[#allocation6 + $0x4f8] sm:$0xff] }
 0x282   :  { %4059 = vmatprep.subr.bf16.mxu1 %v5599_v20  ;;  %v5692_v20 = vcombine.low %v417_v4, %v425_v5  ;;  %v5709_v23 = vcombine.high %v433_v12, %v441_v13  ;;  %v5708_v29 = vcombine.low %v433_v12, %v441_v13  ;;  %v522_v4 = vld [vmem:[#allocation6 + $0x6f8] sm:$0xff] }
 0x283   :  { %3974 = vmatpush1.bf16.msra.mxu0 %v5596_v24  ;;  %v5711_v24 = vcombine.high %v434_v14, %v442_v15  ;;  %v538_v12 = vld [vmem:[#allocation6 + $0x778] sm:$0xff] }
 0x284   :  { %4060 = vmatpush1.bf16.msra.mxu1 %v5598_v25  ;;  %3975 = vmatprep.subr.bf16.mxu0 %v5613_v26  ;;  %v449_v25 = vld [vmem:[#allocation6 + $0x4b0] sm:$0xff] }
 0x285   :  { %4061 = vmatprep.subr.bf16.mxu1 %v5615_v27  ;;  %v457_v26 = vld [vmem:[#allocation6 + $0x4f0] sm:$0xff]  ;;  %v450_v27 = vld [vmem:[#allocation6 + $0x4b8] sm:$0xff] }
 0x286   :  { %v5725_v31 = vcombine.high %v449_v25, %v457_v26  ;;  %v5724_v37 = vcombine.low %v449_v25, %v457_v26  ;;  %v5726_v38 = vcombine.low %v450_v27, %v458_v28  ;;  %v554_v25 = vld [vmem:[#allocation6 + $0x7f8] sm:$0xff] }
 0x287   :  { %3976 = vmatpush1.bf16.msra.mxu0 %v5612_v32  ;;  %v5727_v32 = vcombine.high %v450_v27, %v458_v28 }
 0x288   :  { %4062 = vmatpush1.bf16.msra.mxu1 %v5614_v33  ;;  %3977 = vmatprep.subr.bf16.mxu0 %v5629_v34  ;;  %v465_v33 = vld [vmem:[#allocation6 + $0x530] sm:$0xff] }
 0x289   :  { %4063 = vmatprep.subr.bf16.mxu1 %v5631_v35  ;;  %v473_v34 = vld [vmem:[#allocation6 + $0x570] sm:$0xff]  ;;  %v466_v35 = vld [vmem:[#allocation6 + $0x538] sm:$0xff] }
 0x28a   :  { %v5741_v39 = vcombine.high %v465_v33, %v473_v34  ;;  %v5740_v44 = vcombine.low %v465_v33, %v473_v34  ;;  %v5742_v45 = vcombine.low %v466_v35, %v474_v36  ;;  %v570_v33 = vld [vmem:[#allocation6 + $0x878] sm:$0xff] }
 0x28b   :  { %3978 = vmatpush1.bf16.msra.mxu0 %v5628_v55  ;;  %v5743_v55 = vcombine.high %v466_v35, %v474_v36 }
 0x28c   :  { %4064 = vmatpush1.bf16.msra.mxu1 %v5630_v40  ;;  %3979 = vmatprep.subr.bf16.mxu0 %v5645_v41  ;;  %v481_v40 = vld [vmem:[#allocation6 + $0x5b0] sm:$0xff] }
 0x28d   :  { %4065 = vmatprep.subr.bf16.mxu1 %v5647_v42  ;;  %v489_v41 = vld [vmem:[#allocation6 + $0x5f0] sm:$0xff]  ;;  %v482_v42 = vld [vmem:[#allocation6 + $0x5b8] sm:$0xff] }
 0x28e   :  { %v5757_v49 = vcombine.high %v481_v40, %v489_v41  ;;  %v5756_v61 = vcombine.low %v481_v40, %v489_v41  ;;  %v5758_v62 = vcombine.low %v482_v42, %v490_v43  ;;  %v578_v40 = vld [vmem:[#allocation6 + $0x8b8] sm:$0xff] }
 0x28f   :  { %3980 = vmatpush1.bf16.msra.mxu0 %v5644_v52  ;;  %v5759_v52 = vcombine.high %v482_v42, %v490_v43  ;;  %v586_v41 = vld [vmem:[#allocation6 + $0x8f8] sm:$0xff] }
 0x290   :  { %4066 = vmatpush1.bf16.msra.mxu1 %v5646_v54  ;;  %3981 = vmatprep.subr.bf16.mxu0 %v5661_v57  ;;  %v497_v54 = vld [vmem:[#allocation6 + $0x630] sm:$0xff] }
 0x291   :  { %4067 = vmatprep.subr.bf16.mxu1 %v5663_v58  ;;  %v505_v57 = vld [vmem:[#allocation6 + $0x670] sm:$0xff]  ;;  %v498_v58 = vld [vmem:[#allocation6 + $0x638] sm:$0xff] }
 0x292   :  { %v5773_v63 = vcombine.high %v497_v54, %v505_v57  ;;  %v5772_v5 = vcombine.low %v497_v54, %v505_v57  ;;  %v5774_v6 = vcombine.low %v498_v58, %v506_v59  ;;  %v602_v54 = vld [vmem:[#allocation6 + $0x978] sm:$0xff] }
 0x293   :  { %3982 = vmatpush1.bf16.msra.mxu0 %v5660_v0  ;;  %v5775_v0 = vcombine.high %v498_v58, %v506_v59  ;;  %v5854_v58 = vcombine.low %v578_v40, %v586_v41 }
 0x294   :  { %4068 = vmatpush1.bf16.msra.mxu1 %v5662_v1  ;;  %3983 = vmatprep.subr.bf16.mxu0 %v5677_v2  ;;  %v513_v1 = vld [vmem:[#allocation6 + $0x6b0] sm:$0xff] }
 0x295   :  { %4069 = vmatprep.subr.bf16.mxu1 %v5679_v3  ;;  %v521_v2 = vld [vmem:[#allocation6 + $0x6f0] sm:$0xff]  ;;  %v514_v3 = vld [vmem:[#allocation6 + $0x6b8] sm:$0xff] }
 0x296   :  { %v5789_v7 = vcombine.high %v513_v1, %v521_v2  ;;  %v5788_v13 = vcombine.low %v513_v1, %v521_v2  ;;  %v5790_v14 = vcombine.low %v514_v3, %v522_v4  ;;  %v618_v1 = vld [vmem:[#allocation6 + $0x9f8] sm:$0xff] }
 0x297   :  { %3984 = vmatpush1.bf16.msra.mxu0 %v5676_v8  ;;  %v5791_v8 = vcombine.high %v514_v3, %v522_v4 }
 0x298   :  { %4070 = vmatpush1.bf16.msra.mxu1 %v5678_v9  ;;  %3985 = vmatprep.subr.bf16.mxu0 %v5693_v10  ;;  %v529_v9 = vld [vmem:[#allocation6 + $0x730] sm:$0xff] }
 0x299   :  { %4071 = vmatprep.subr.bf16.mxu1 %v5695_v11  ;;  %v537_v10 = vld [vmem:[#allocation6 + $0x770] sm:$0xff]  ;;  %v530_v11 = vld [vmem:[#allocation6 + $0x738] sm:$0xff] }
 0x29a   :  { %v5805_v15 = vcombine.high %v529_v9, %v537_v10  ;;  %v5804_v26 = vcombine.low %v529_v9, %v537_v10  ;;  %v5806_v27 = vcombine.low %v530_v11, %v538_v12 }
 0x29b   :  { %3986 = vmatpush1.bf16.msra.mxu0 %v5692_v20  ;;  %v5807_v20 = vcombine.high %v530_v11, %v538_v12  ;;  %v641_v12 = vld [vmem:[#allocation6 + $0xab0] sm:$0xff] }
 0x29c   :  { %4072 = vmatpush1.bf16.msra.mxu1 %v5694_v22  ;;  %3987 = vmatprep.subr.bf16.mxu0 %v5709_v23  ;;  %v545_v22 = vld [vmem:[#allocation6 + $0x7b0] sm:$0xff] }
 0x29d   :  { %4073 = vmatprep.subr.bf16.mxu1 %v5711_v24  ;;  %v553_v23 = vld [vmem:[#allocation6 + $0x7f0] sm:$0xff]  ;;  %v546_v24 = vld [vmem:[#allocation6 + $0x7b8] sm:$0xff] }
 0x29e   :  { %v5821_v28 = vcombine.high %v545_v22, %v553_v23  ;;  %v5820_v34 = vcombine.low %v545_v22, %v553_v23  ;;  %v5822_v35 = vcombine.low %v546_v24, %v554_v25  ;;  %v841_v23 = vsub.s32 6, %v6844_v16 }
 0x29f   :  { %3988 = vmatpush1.bf16.msra.mxu0 %v5708_v29  ;;  %v5823_v29 = vcombine.high %v546_v24, %v554_v25  ;;  %v837_v24 = vsub.s32 5, %v6844_v16 }
 0x2a0   :  { %4074 = vmatpush1.bf16.msra.mxu1 %v5710_v30  ;;  %3989 = vmatprep.subr.bf16.mxu0 %v5725_v31  ;;  %v561_v30 = vld [vmem:[#allocation6 + $0x830] sm:$0xff] }
 0x2a1   :  { %4075 = vmatprep.subr.bf16.mxu1 %v5727_v32  ;;  %v569_v31 = vld [vmem:[#allocation6 + $0x870] sm:$0xff]  ;;  %v562_v32 = vld [vmem:[#allocation6 + $0x838] sm:$0xff] }
 0x2a2   :  { %v5837_v36 = vcombine.high %v561_v30, %v569_v31  ;;  %v5838_v42 = vcombine.low %v562_v32, %v570_v33 }
 0x2a3   :  { %3990 = vmatpush1.bf16.msra.mxu0 %v5724_v37  ;;  %v5839_v37 = vcombine.high %v562_v32, %v570_v33  ;;  %v658_v32 = vld [vmem:[#allocation6 + $0xb38] sm:$0xff] }
 0x2a4   :  { %4076 = vmatpush1.bf16.msra.mxu1 %v5726_v38  ;;  %3991 = vmatprep.subr.bf16.mxu0 %v5741_v39  ;;  %v577_v38 = vld [vmem:[#allocation6 + $0x8b0] sm:$0xff]  ;;  %v666_v33 = vld [vmem:[#allocation6 + $0xb78] sm:$0xff] }
 0x2a5   :  { %4077 = vmatprep.subr.bf16.mxu1 %v5743_v55  ;;  %v585_v39 = vld [vmem:[#allocation6 + $0x8f0] sm:$0xff]  ;;  %v5836_v55 = vcombine.low %v561_v30, %v569_v31 }
 0x2a6   :  { %v5853_v43 = vcombine.high %v577_v38, %v585_v39  ;;  %v5852_v57 = vcombine.low %v577_v38, %v585_v39  ;;  %v665_v30 = vld [vmem:[#allocation6 + $0xb70] sm:$0xff] }
 0x2a7   :  { %3992 = vmatpush1.bf16.msra.mxu0 %v5740_v44  ;;  %v593_v44 = vld [vmem:[#allocation6 + $0x930] sm:$0xff] }
 0x2a8   :  { %4078 = vmatpush1.bf16.msra.mxu1 %v5742_v45  ;;  %3993 = vmatprep.subr.bf16.mxu0 %v5757_v49  ;;  %v601_v45 = vld [vmem:[#allocation6 + $0x970] sm:$0xff]  ;;  %v5855_v49 = vcombine.high %v578_v40, %v586_v41  ;;  %v5935_v40 = vcombine.high %v658_v32, %v666_v33 }
 0x2a9   :  { %4079 = vmatprep.subr.bf16.mxu1 %v5759_v52  ;;  %v594_v52 = vld [vmem:[#allocation6 + $0x938] sm:$0xff]  ;;  %v5869_v59 = vcombine.high %v593_v44, %v601_v45  ;;  %v5868_v2 = vcombine.low %v593_v44, %v601_v45  ;;  %v673_v41 = vld [vmem:[#allocation6 + $0xbb0] sm:$0xff] }
 0x2ab   :  { %3994 = vmatpush1.bf16.msra.mxu0 %v5756_v61  ;;  %v5871_v61 = vcombine.high %v594_v52, %v602_v54 }
 0x2ac   :  { %4080 = vmatpush1.bf16.msra.mxu1 %v5758_v62  ;;  %3995 = vmatprep.subr.bf16.mxu0 %v5773_v63  ;;  %v609_v62 = vld [vmem:[#allocation6 + $0x9b0] sm:$0xff] }
 0x2ad   :  { %4081 = vmatprep.subr.bf16.mxu1 %v5775_v0  ;;  %v617_v63 = vld [vmem:[#allocation6 + $0x9f0] sm:$0xff]  ;;  %v610_v0 = vld [vmem:[#allocation6 + $0x9b8] sm:$0xff] }
 0x2ae   :  { %v5885_v3 = vcombine.high %v609_v62, %v617_v63  ;;  %v5887_v4 = vcombine.high %v610_v0, %v618_v1  ;;  %v5886_v9 = vcombine.low %v610_v0, %v618_v1 }
 0x2af   :  { %3996 = vmatpush1.bf16.msra.mxu0 %v5772_v5  ;;  %v625_v5 = vld [vmem:[#allocation6 + $0xa30] sm:$0xff] }
 0x2b0   :  { %4082 = vmatpush1.bf16.msra.mxu1 %v5774_v6  ;;  %3997 = vmatprep.subr.bf16.mxu0 %v5789_v7  ;;  %v633_v6 = vld [vmem:[#allocation6 + $0xa70] sm:$0xff]  ;;  %v626_v7 = vld [vmem:[#allocation6 + $0xa38] sm:$0xff] }
 0x2b1   :  { %4083 = vmatprep.subr.bf16.mxu1 %v5791_v8  ;;  %v634_v8 = vld [vmem:[#allocation6 + $0xa78] sm:$0xff]  ;;  %v5901_v10 = vcombine.high %v625_v5, %v633_v6  ;;  %v5900_v22 = vcombine.low %v625_v5, %v633_v6 }
 0x2b2   :  { %v5903_v11 = vcombine.high %v626_v7, %v634_v8  ;;  %v5902_v25 = vcombine.low %v626_v7, %v634_v8  ;;  %v689_v7 = vld [vmem:[#allocation6 + $0xc30] sm:$0xff] }
 0x2b3   :  { %3998 = vmatpush1.bf16.msra.mxu0 %v5788_v13  ;;  %v649_v13 = vld [vmem:[#allocation6 + $0xaf0] sm:$0xff] }
 0x2b4   :  { %4084 = vmatpush1.bf16.msra.mxu1 %v5790_v14  ;;  %3999 = vmatprep.subr.bf16.mxu0 %v5805_v15  ;;  %v833_v14 = vsub.s32 4, %v6844_v16  ;;  %v642_v15 = vld [vmem:[#allocation6 + $0xab8] sm:$0xff]  ;;  %v697_v8 = vld [vmem:[#allocation6 + $0xc70] sm:$0xff] }
 0x2b5   :  { %4085 = vmatprep.subr.bf16.mxu1 %v5807_v20  ;;  %v650_v20 = vld [vmem:[#allocation6 + $0xaf8] sm:$0xff] }
 0x2b6   :  { %v834_v31 = vrot.slane %v6892_v47, %v833_v14  ;;  %v5918_v38 = vcombine.low %v642_v15, %v650_v20 }
 0x2b7   :  { %4000 = vmatpush1.bf16.msra.mxu0 %v5804_v26  ;;  %v845_v26 = vsub.s32 7, %v6844_v16 }
 0x2b8   :  { %4086 = vmatpush1.bf16.msra.mxu1 %v5806_v27  ;;  %4001 = vmatprep.subr.bf16.mxu0 %v5821_v28  ;;  %v5917_v27 = vcombine.high %v641_v12, %v649_v13  ;;  %v5919_v28 = vcombine.high %v642_v15, %v650_v20 }
 0x2b9   :  { %4087 = vmatprep.subr.bf16.mxu1 %v5823_v29  ;;  %v657_v29 = vld [vmem:[#allocation6 + $0xb30] sm:$0xff] }
 0x2ba   :  { %v5933_v39 = vcombine.high %v657_v29, %v665_v30 }
 0x2bb   :  { %4002 = vmatpush1.bf16.msra.mxu0 %v5820_v34  ;;  %v842_v34 = vrot.slane %v6892_v47, %v841_v23 }
 0x2bc   :  { %4088 = vmatpush1.bf16.msra.mxu1 %v5822_v35  ;;  %4014 = vmatprep.subr.bf16.mxu0 %v5837_v36  ;;  %v838_v35 = vrot.slane %v6892_v47, %v837_v24  ;;  %v5916_v36 = vcombine.low %v641_v12, %v649_v13  ;;  %v690_v12 = vld [vmem:[#allocation6 + $0xc38] sm:$0xff] }
 0x2bd   :  { %4100 = vmatprep.subr.bf16.mxu1 %v5839_v37  ;;  %v846_v37 = vrot.slane %v6892_v47, %v845_v26  ;;  %v5934_v47 = vcombine.low %v658_v32, %v666_v33  ;;  %v698_v13 = vld [vmem:[#allocation6 + $0xc78] sm:$0xff] }
 0x2be   :  { %4004 = vmatmul.mubr.bf16.vlgmr.msra.gmra.mrb[16].mxu0 %v6862_v53  ;;  %v5967_v33 = vcombine.high %v690_v12, %v698_v13 }
 0x2bf   :  { %4090 = vmatmul.mubr.bf16.vlgmr.msra.gmra.mrb[16].mxu1 %v6862_v53  ;;  %4015 = vmatpush1.bf16.msra.mxu0 %v5836_v55  ;;  %v5870_v53 = vcombine.low %v594_v52, %v602_v54  ;;  %v682_v52 = vld [vmem:[#allocation6 + $0xbf8] sm:$0xff] }
 0x2c0   :  { %4046 = vmatprep.mubr.bf16.mxu0 %v6868_v60  ;;  %4101 = vmatpush1.bf16.msra.mxu1 %v5838_v42  ;;  %v681_v42 = vld [vmem:[#allocation6 + $0xbf0] sm:$0xff] }
 0x2c1   :  { %4132 = vmatprep.mubr.bf16.mxu1 %v6868_v60  ;;  %4016 = vmatprep.subr.bf16.mxu0 %v5853_v43  ;;  %v5884_v60 = vcombine.low %v609_v62, %v617_v63  ;;  %v5948_v5 = vcombine.low %v673_v41, %v681_v42 }
 0x2c2   :  { %4102 = vmatprep.subr.bf16.mxu1 %v5855_v49  ;;  %v674_v49 = vld [vmem:[#allocation6 + $0xbb8] sm:$0xff] }
 0x2c3   :  { %4017 = vmatpush1.bf16.msra.mxu0 %v5852_v57  ;;  %v5951_v6 = vcombine.high %v674_v49, %v682_v52 }
 0x2c4   :  { %4103 = vmatpush1.bf16.msra.mxu1 %v5854_v58  ;;  %4018 = vmatprep.subr.bf16.mxu0 %v5869_v59 }
 0x2c5   :  { %4104 = vmatprep.subr.bf16.mxu1 %v5871_v61  ;;  %v5932_v61 = vcombine.low %v657_v29, %v665_v30  ;;  %v5965_v30 = vcombine.high %v689_v7, %v697_v8 }
 0x2c7   :  { %4019 = vmatpush1.bf16.msra.mxu0 %v5868_v2  ;;  %v5949_v2 = vcombine.high %v673_v41, %v681_v42  ;;  %v721_v42 = vld [vmem:[#allocation6 + $0xd30] sm:$0xff] }
 0x2c8   :  { %4105 = vmatpush1.bf16.msra.mxu1 %v5870_v53  ;;  %4020 = vmatprep.subr.bf16.mxu0 %v5885_v3 }
 0x2c9   :  { %4106 = vmatprep.subr.bf16.mxu1 %v5887_v4 }
 0x2cb   :  { %4021 = vmatpush1.bf16.msra.mxu0 %v5884_v60 }
 0x2cc   :  { %4107 = vmatpush1.bf16.msra.mxu1 %v5886_v9  ;;  %4022 = vmatprep.subr.bf16.mxu0 %v5901_v10 }
 0x2cd   :  { %4108 = vmatprep.subr.bf16.mxu1 %v5903_v11  ;;  %v5950_v11 = vcombine.low %v674_v49, %v682_v52 }
 0x2cf   :  { %4023 = vmatpush1.bf16.msra.mxu0 %v5900_v22 }
 0x2d0   :  { %4109 = vmatpush1.bf16.msra.mxu1 %v5902_v25  ;;  %4024 = vmatprep.subr.bf16.mxu0 %v5917_v27 }
 0x2d1   :  { %v3704_v55 = vpop.f32.mrb[8].mxu0  ;;  %4110 = vmatprep.subr.bf16.mxu1 %v5919_v28 }
 0x2d2   :  { %v6393_v43 = vadd.f32 %v3704_v55, %v834_v31  ;;  %v3790_v44 = vpop.f32.mrb[8].mxu1  ;;  %v3706_v45 = vpop.f32.mrb[9].mxu0  ;;  %v5966_v55 = vcombine.low %v690_v12, %v698_v13 }
 0x2d3   :  { %v6397_v54 = vadd.f32 %v3790_v44, %v842_v34  ;;  %v6394_v57 = vadd.f32 %v3706_v45, %v838_v35  ;;  %v3792_v58 = vpop.f32.mrb[9].mxu1  ;;  %v3708_v59 = vpop.f32.mrb[10].mxu0  ;;  %4025 = vmatpush1.bf16.msra.mxu0 %v5916_v36  ;;  %v722_v44 = vld [vmem:[#allocation6 + $0xd38] sm:$0xff] }
 0x2d4   :  { %v6398_v62 = vadd.f32 %v3792_v58, %v846_v37  ;;  %v6395_v63 = vadd.f32 %v3708_v59, %v834_v31  ;;  %v3794_v0 = vpop.f32.mrb[10].mxu1  ;;  %4111 = vmatpush1.bf16.msra.mxu1 %v5918_v38  ;;  %v3710_v1 = vpop.f32.mrb[11].mxu0  ;;  %4026 = vmatprep.subr.bf16.mxu0 %v5933_v39  ;;  %v4147_v60 = vmax.f32 %v6393_v43, 0.0  ;;  %v714_v38 = vld [vmem:[#allocation6 + $0xcf8] sm:$0xff]  ;;  %v5964_v39 = vcombine.low %v689_v7, %v697_v8  ;;  %v729_v43 = vld [vmem:[#allocation6 + $0xd70] sm:$0xff] }
 0x2d5   :  { %v6399_v53 = vadd.f32 %v3794_v0, %v842_v34  ;;  %v6396_v3 = vadd.f32 %v3710_v1, %v838_v35  ;;  %v3796_v4 = vpop.f32.mrb[11].mxu1  ;;  %4112 = vmatprep.subr.bf16.mxu1 %v5935_v40  ;;  %v4149_v15 = vmax.f32 %v6397_v54, 0.0  ;;  %v4148_v20 = vmax.f32 %v6394_v57, 0.0  ;;  %v705_v34 = vld [vmem:[#allocation6 + $0xcb0] sm:$0xff]  ;;  %v730_v45 = vld [vmem:[#allocation6 + $0xd78] sm:$0xff] }
 0x2d6   :  { %v4163_v9 = vmax.f32 %v6395_v63, 0.0  ;;  %v6400_v10 = vadd.f32 %v3796_v4, %v846_v37  ;;  %v4150_v27 = vmax.f32 %v6398_v62, 0.0  ;;  %v713_v35 = vld [vmem:[#allocation6 + $0xcf0] sm:$0xff]  ;;  %v706_v37 = vld [vmem:[#allocation6 + $0xcb8] sm:$0xff]  ;;  %v5997_v54 = vcombine.high %v721_v42, %v729_v43 }
 0x2d7   :  { %v4165_v22 = vmax.f32 %v6399_v53, 0.0  ;;  %v4164_v25 = vmax.f32 %v6396_v3, 0.0  ;;  %4027 = vmatpush1.bf16.msra.mxu0 %v5932_v61  ;;  %v5981_v40 = vcombine.high %v705_v34, %v713_v35  ;;  %v5983_v41 = vcombine.high %v706_v37, %v714_v38  ;;  %v737_v58 = vld [vmem:[#allocation6 + $0xdb0] sm:$0xff]  ;;  %v738_v61 = vld [vmem:[#allocation6 + $0xdb8] sm:$0xff] }
 0x2d8   :  { %v6934_v28 = vpack.c.bf16 %v4163_v9, %v4147_v60  ;;  %v4166_v29 = vmax.f32 %v6400_v10, 0.0  ;;  %4113 = vmatpush1.bf16.msra.mxu1 %v5934_v47  ;;  %4028 = vmatprep.subr.bf16.mxu0 %v5949_v2  ;;  %v5980_v49 = vcombine.low %v705_v34, %v713_v35  ;;  %v5982_v52 = vcombine.low %v706_v37, %v714_v38  ;;  %v745_v59 = vld [vmem:[#allocation6 + $0xdf0] sm:$0xff]  ;;  %v746_v47 = vld [vmem:[#allocation6 + $0xdf8] sm:$0xff] }
 0x2d9   :  { %v6936_v31 = vpack.c.bf16 %v4165_v22, %v4149_v15  ;;  %v6938_v32 = vpack.c.bf16 %v4164_v25, %v4148_v20  ;;  %4114 = vmatprep.subr.bf16.mxu1 %v5951_v6  ;;  %v5999_v57 = vcombine.high %v722_v44, %v730_v45  ;;  %v5996_v62 = vcombine.low %v721_v42, %v729_v43  ;;  %v753_v2 = vld [vmem:[#allocation6 + $0xe30] sm:$0xff]  ;;  %v754_v3 = vld [vmem:[#allocation6 + $0xe38] sm:$0xff] }
 0x2da   :  { %v6940_v36 = vpack.c.bf16 %v4166_v29, %v4150_v27  ;;  %v5998_v63 = vcombine.low %v722_v44, %v730_v45  ;;  %v6013_v0 = vcombine.high %v737_v58, %v745_v59  ;;  %v6015_v1 = vcombine.high %v738_v61, %v746_v47  ;;  %v761_v53 = vld [vmem:[#allocation6 + $0xe70] sm:$0xff]  ;;  %v762_v4 = vld [vmem:[#allocation6 + $0xe78] sm:$0xff] }
 0x2db   :  { %4029 = vmatpush1.bf16.msra.mxu0 %v5948_v5  ;;  %v6012_v5 = vcombine.low %v737_v58, %v745_v59  ;;  %v6014_v6 = vcombine.low %v738_v61, %v746_v47  ;;  %v6029_v7 = vcombine.high %v753_v2, %v761_v53  ;;  %v6031_v8 = vcombine.high %v754_v3, %v762_v4  ;;  %v769_v60 = vld [vmem:[#allocation6 + $0xeb0] sm:$0xff]  ;;  %v770_v10 = vld [vmem:[#allocation6 + $0xeb8] sm:$0xff] }
 0x2dc   :  { %4115 = vmatpush1.bf16.msra.mxu1 %v5950_v11  ;;  %4030 = vmatprep.subr.bf16.mxu0 %v5965_v30  ;;  %v777_v9 = vld [vmem:[#allocation6 + $0xef0] sm:$0xff]  ;;  %v778_v11 = vld [vmem:[#allocation6 + $0xef8] sm:$0xff]  ;;  %v6028_v12 = vcombine.low %v753_v2, %v761_v53  ;;  %v6030_v13 = vcombine.low %v754_v3, %v762_v4  ;;  %v6474_v2 = vld [vmem:[%s7369_s5 + $0x98] sm:$0xff]  }
 0x2dd   :  { %4116 = vmatprep.subr.bf16.mxu1 %v5967_v33  ;;  %v6045_v15 = vcombine.high %v769_v60, %v777_v9  ;;  %v6047_v20 = vcombine.high %v770_v10, %v778_v11  ;;  %v785_v22 = vld [vmem:[#allocation6 + $0xf30] sm:$0xff]  ;;  %v786_v27 = vld [vmem:[#allocation6 + $0xf38] sm:$0xff]  ;;  %v6044_v30 = vcombine.low %v769_v60, %v777_v9  ;;  %v6046_v33 = vcombine.low %v770_v10, %v778_v11 }
 0x2de   :  { %v793_v25 = vld [vmem:[#allocation6 + $0xf70] sm:$0xff]  ;;  %v794_v29 = vld [vmem:[#allocation6 + $0xf78] sm:$0xff] }
 0x2df   :  { %4031 = vmatpush1.bf16.msra.mxu0 %v5964_v39  ;;  %v6061_v34 = vcombine.high %v785_v22, %v793_v25  ;;  %v6063_v35 = vcombine.high %v786_v27, %v794_v29  ;;  %v801_v37 = vld [vmem:[#allocation6 + $0xfb0] sm:$0xff]  ;;  %v802_v39 = vld [vmem:[#allocation6 + $0xfb8] sm:$0xff] }
 0x2e0   :  { %4117 = vmatpush1.bf16.msra.mxu1 %v5966_v55  ;;  %4032 = vmatprep.subr.bf16.mxu0 %v5981_v40  ;;  %v809_v38 = vld [vmem:[#allocation6 + $0xff0] sm:$0xff]  ;;  %v810_v55 = vld [vmem:[#allocation6 + $0xff8] sm:$0xff]  ;;  %v6060_v40 = vcombine.low %v785_v22, %v793_v25  ;;  %v6490_v22 = vld [vmem:[%s7369_s5 + $0xb8] sm:$0xff]  }
 0x2e1   :  { %4118 = vmatprep.subr.bf16.mxu1 %v5983_v41  ;;  %v6062_v41 = vcombine.low %v786_v27, %v794_v29  ;;  %v6077_v42 = vcombine.high %v801_v37, %v809_v38  ;;  %v6079_v43 = vcombine.high %v802_v39, %v810_v55  ;;  %v6076_v44 = vcombine.low %v801_v37, %v809_v38  ;;  %v6463_v58 = vld [vmem:[%s7369_s5 + $0x48] sm:$0xff]   ;;  %v6475_v53 = vld [vmem:[%s7369_s5 + $0x60] sm:$0xff]   ;;  %v6483_v9 = vld [vmem:[%s7369_s5 + $0x70] sm:$0xff]  }
 0x2e2   :  { %v6078_v45 = vcombine.low %v802_v39, %v810_v55  ;;  %v6464_v59 = vld [vmem:[%s7369_s5 + $0xc8] sm:$0xff]   ;;  %v6476_v3 = vld [vmem:[%s7369_s5 + $0xe0] sm:$0xff]   ;;  %v6484_v10 = vld [vmem:[%s7369_s5 + $0xf0] sm:$0xff]  }
 0x2e3   :  { %4033 = vmatpush1.bf16.msra.mxu0 %v5980_v49  ;;  %v6459_v49 = vld [vmem:[%s7369_s5 + $0x40] sm:$0xff]   ;;  %v6465_v61 = vld [vmem:[%s7369_s5 + $0x8] sm:$0xff]   ;;  %v6485_v11 = vld [vmem:[%s7369_s5 + $0x30] sm:$0xff]  }
 0x2e4   :  { %4119 = vmatpush1.bf16.msra.mxu1 %v5982_v52  ;;  %4034 = vmatprep.subr.bf16.mxu0 %v5997_v54  ;;  %v6460_v52 = vld [vmem:[%s7369_s5 + $0xc0] sm:$0xff]   ;;  %v6466_v47 = vld [vmem:[%s7369_s5 + $0x88] sm:$0xff]   ;;  %v6502_v38 = vld [vmem:[%s7369_s5 + $0x190] sm:$0xff]  }
 0x2e5   :  { %4120 = vmatprep.subr.bf16.mxu1 %v5999_v57  ;;  %v6461_v54 = vld [vmem:[%s7369_s5] sm:$0xff]   ;;  %v6482_v60 = vld [vmem:[%s7369_s5 + $0xa8] sm:$0xff]   ;;  %v6504_v39 = vld [vmem:[%s7369_s5 + $0x1d8] sm:$0xff]  }
 0x2e6   :  { %v6462_v57 = vld [vmem:[%s7369_s5 + $0x80] sm:$0xff]   ;;  %v6498_v37 = vld [vmem:[%s7369_s5 + $0x188] sm:$0xff]   ;;  %v6505_v55 = vld [vmem:[%s7369_s5 + $0x118] sm:$0xff]  }
 0x2e7   :  { %4035 = vmatpush1.bf16.msra.mxu0 %v5996_v62  ;;  %v6467_v62 = vld [vmem:[%s7369_s5 + $0x50] sm:$0xff]   ;;  %v6477_v4 = vld [vmem:[%s7369_s5 + $0x20] sm:$0xff]  }
 0x2e8   :  { %4121 = vmatpush1.bf16.msra.mxu1 %v5998_v63  ;;  %4036 = vmatprep.subr.bf16.mxu0 %v6013_v0  ;;  %v6470_v63 = vld [vmem:[%s7369_s5 + $0x90] sm:$0xff]   ;;  %v6472_v0 = vld [vmem:[%s7369_s5 + $0xd8] sm:$0xff]   ;;  %v6491_v25 = vld [vmem:[%s7369_s5 + $0x140] sm:$0xff]  }
 0x2e9   :  { %4122 = vmatprep.subr.bf16.mxu1 %v6015_v1  ;;  %v6473_v1 = vld [vmem:[%s7369_s5 + $0x18] sm:$0xff]   ;;  %v6492_v27 = vld [vmem:[%s7369_s5 + $0x1c0] sm:$0xff]  }
 0x2ea   :  { %v6493_v29 = vld [vmem:[%s7369_s5 + $0x100] sm:$0xff]  }
 0x2eb   :  { %4037 = vmatpush1.bf16.msra.mxu0 %v6012_v5  ;;  %v6478_v5 = vld [vmem:[%s7369_s5 + $0xa0] sm:$0xff]  }
 0x2ec   :  { %4123 = vmatpush1.bf16.msra.mxu1 %v6014_v6  ;;  %4038 = vmatprep.subr.bf16.mxu0 %v6029_v7  ;;  %v6479_v6 = vld [vmem:[%s7369_s5 + $0x68] sm:$0xff]  }
 0x2ed   :  { %4124 = vmatprep.subr.bf16.mxu1 %v6031_v8  ;;  %v6480_v7 = vld [vmem:[%s7369_s5 + $0xe8] sm:$0xff]  }
 0x2ee   :  { %v6481_v8 = vld [vmem:[%s7369_s5 + $0x28] sm:$0xff]  }
 0x2ef   :  { %4039 = vmatpush1.bf16.msra.mxu0 %v6028_v12  ;;  %v6486_v12 = vld [vmem:[%s7369_s5 + $0xb0] sm:$0xff]  }
 0x2f0   :  { %4125 = vmatpush1.bf16.msra.mxu1 %v6030_v13  ;;  %4040 = vmatprep.subr.bf16.mxu0 %v6045_v15  ;;  %v6487_v13 = vld [vmem:[%s7369_s5 + $0x78] sm:$0xff]  }
 0x2f1   :  { %4126 = vmatprep.subr.bf16.mxu1 %v6047_v20  ;;  %v6488_v15 = vld [vmem:[%s7369_s5 + $0xf8] sm:$0xff]  }
 0x2f2   :  { %v6489_v20 = vld [vmem:[%s7369_s5 + $0x38] sm:$0xff]  }
 0x2f3   :  { %4041 = vmatpush1.bf16.msra.mxu0 %v6044_v30  ;;  %v6494_v30 = vld [vmem:[%s7369_s5 + $0x180] sm:$0xff]  }
 0x2f4   :  { %4127 = vmatpush1.bf16.msra.mxu1 %v6046_v33  ;;  %4042 = vmatprep.subr.bf16.mxu0 %v6061_v34  ;;  %v6495_v33 = vld [vmem:[%s7369_s5 + $0x148] sm:$0xff]  }
 0x2f5   :  { %4128 = vmatprep.subr.bf16.mxu1 %v6063_v35  ;;  %v6496_v34 = vld [vmem:[%s7369_s5 + $0x1c8] sm:$0xff]  }
 0x2f6   :  { %v6497_v35 = vld [vmem:[%s7369_s5 + $0x108] sm:$0xff]  }
 0x2f7   :  { %4043 = vmatpush1.bf16.msra.mxu0 %v6060_v40  ;;  %v6506_v40 = vld [vmem:[%s7369_s5 + $0x198] sm:$0xff]  }
 0x2f8   :  { %4129 = vmatpush1.bf16.msra.mxu1 %v6062_v41  ;;  %4044 = vmatprep.subr.bf16.mxu0 %v6077_v42  ;;  %v6507_v41 = vld [vmem:[%s7369_s5 + $0x160] sm:$0xff]  }
 0x2f9   :  { %4130 = vmatprep.subr.bf16.mxu1 %v6079_v43  ;;  %v6508_v42 = vld [vmem:[%s7369_s5 + $0x1e0] sm:$0xff]  }
 0x2fa   :  { %v6509_v43 = vld [vmem:[%s7369_s5 + $0x120] sm:$0xff]  }
 0x2fb   :  { %4045 = vmatpush1.bf16.msra.mxu0 %v6076_v44  ;;  %v6510_v44 = vld [vmem:[%s7369_s5 + $0x1a0] sm:$0xff]  }
 0x2fc   :  { %4131 = vmatpush1.bf16.msra.mxu1 %v6078_v45  ;;  %6209 = vmatprep.subr.bf16.mxu0 %v6459_v49  ;;  %v6511_v45 = vld [vmem:[%s7369_s5 + $0x168] sm:$0xff]  }
 0x2fd   :  { %6231 = vmatprep.subr.bf16.mxu1 %v6460_v52  ;;  %v6512_v49 = vld [vmem:[%s7369_s5 + $0x1e8] sm:$0xff]  }
 0x2fe   :  { %4047 = vmatmul.mubr.bf16.vlgmr.msra.gmra.mrb[16].mxu0 %v6866_v56  ;;  %v6513_v52 = vld [vmem:[%s7369_s5 + $0x128] sm:$0xff]  }
 0x2ff   :  { %4133 = vmatmul.mubr.bf16.vlgmr.msra.gmra.mrb[16].mxu1 %v6866_v56  ;;  %6210 = vmatpush3.bf16.msra.mxu0 %v6461_v54  ;;  %v6468_v56 = vld [vmem:[%s7369_s5 + $0xd0] sm:$0xff]   ;;  %v6514_v54 = vld [vmem:[%s7369_s5 + $0x1a8] sm:$0xff]  }
 0x300   :  { %5254 = vmatprep.mubr.bf16.mxu0 %v6906_v50  ;;  %6232 = vmatpush3.bf16.msra.mxu1 %v6462_v57  ;;  %v6469_v50 = vld [vmem:[%s7369_s5 + $0x10] sm:$0xff]  }
 0x301   :  { %5295 = vmatprep.mubr.bf16.mxu1 %v6908_v51  ;;  %6211 = vmatprep.subr.bf16.mxu0 %v6463_v58  ;;  %v6471_v51 = vld [vmem:[%s7369_s5 + $0x58] sm:$0xff]   ;;  %v6515_v57 = vld [vmem:[%s7369_s5 + $0x170] sm:$0xff]  }
 0x302   :  { %6233 = vmatprep.subr.bf16.mxu1 %v6464_v59  ;;  %v6516_v58 = vld [vmem:[%s7369_s5 + $0x1f0] sm:$0xff]  }
 0x303   :  { %6212 = vmatpush3.bf16.msra.mxu0 %v6465_v61  ;;  %v6517_v59 = vld [vmem:[%s7369_s5 + $0x130] sm:$0xff]  }
 0x304   :  { %6234 = vmatpush3.bf16.msra.mxu1 %v6466_v47  ;;  %6213 = vmatprep.subr.bf16.mxu0 %v6467_v62  ;;  %v6518_v61 = vld [vmem:[%s7369_s5 + $0x1b0] sm:$0xff]   ;;  %v6519_v47 = vld [vmem:[%s7369_s5 + $0x178] sm:$0xff]  }
 0x305   :  { %6235 = vmatprep.subr.bf16.mxu1 %v6468_v56  ;;  %v6520_v62 = vld [vmem:[%s7369_s5 + $0x1f8] sm:$0xff]  }
 0x306   :  { %v6521_v56 = vld [vmem:[%s7369_s5 + $0x138] sm:$0xff]  }
 0x307   :  { %6214 = vmatpush3.bf16.msra.mxu0 %v6469_v50  ;;  %v6522_v50 = vld [vmem:[%s7369_s5 + $0x1b8] sm:$0xff]  }
 0x308   :  { %6236 = vmatpush3.bf16.msra.mxu1 %v6470_v63  ;;  %6215 = vmatprep.subr.bf16.mxu0 %v6471_v51  ;;  %v6523_v63 = vld [vmem:[%s7369_s5 + $0x240] sm:$0xff]  }
 0x309   :  { %6237 = vmatprep.subr.bf16.mxu1 %v6472_v0  ;;  %v6524_v51 = vld [vmem:[%s7369_s5 + $0x2c0] sm:$0xff]  }
 0x30a   :  { %v6525_v0 = vld [vmem:[%s7369_s5 + $0x200] sm:$0xff]  }
 0x30b   :  { %6216 = vmatpush3.bf16.msra.mxu0 %v6473_v1  ;;  %v6526_v1 = vld [vmem:[%s7369_s5 + $0x280] sm:$0xff]  }
 0x30c   :  { %6238 = vmatpush3.bf16.msra.mxu1 %v6474_v2  ;;  %6217 = vmatprep.subr.bf16.mxu0 %v6475_v53  ;;  %v6527_v2 = vld [vmem:[%s7369_s5 + $0x248] sm:$0xff]  }
 0x30d   :  { %6239 = vmatprep.subr.bf16.mxu1 %v6476_v3  ;;  %v6528_v53 = vld [vmem:[%s7369_s5 + $0x2c8] sm:$0xff]  }
 0x30e   :  { %v6529_v3 = vld [vmem:[%s7369_s5 + $0x208] sm:$0xff]  }
 0x30f   :  { %6218 = vmatpush3.bf16.msra.mxu0 %v6477_v4  ;;  %v6530_v4 = vld [vmem:[%s7369_s5 + $0x288] sm:$0xff]  }
 0x310   :  { %6240 = vmatpush3.bf16.msra.mxu1 %v6478_v5  ;;  %6219 = vmatprep.subr.bf16.mxu0 %v6479_v6  ;;  %v6531_v5 = vld [vmem:[%s7369_s5 + $0x250] sm:$0xff]  }
 0x311   :  { %6241 = vmatprep.subr.bf16.mxu1 %v6480_v7  ;;  %v6534_v6 = vld [vmem:[%s7369_s5 + $0x290] sm:$0xff]   ;;  %v6535_v7 = vld [vmem:[%s7369_s5 + $0x258] sm:$0xff]  }
 0x313   :  { %6220 = vmatpush3.bf16.msra.mxu0 %v6481_v8  ;;  %v6536_v8 = vld [vmem:[%s7369_s5 + $0x2d8] sm:$0xff]  }
 0x314   :  { %6242 = vmatpush3.bf16.msra.mxu1 %v6482_v60  ;;  %6221 = vmatprep.subr.bf16.mxu0 %v6483_v9  ;;  %v6537_v60 = vld [vmem:[%s7369_s5 + $0x218] sm:$0xff]  }
 0x315   :  { %6243 = vmatprep.subr.bf16.mxu1 %v6484_v10  ;;  %v6538_v9 = vld [vmem:[%s7369_s5 + $0x298] sm:$0xff]   ;;  %v6539_v10 = vld [vmem:[%s7369_s5 + $0x260] sm:$0xff]  }
 0x317   :  { %6222 = vmatpush3.bf16.msra.mxu0 %v6485_v11  ;;  %v6540_v11 = vld [vmem:[%s7369_s5 + $0x2e0] sm:$0xff]  }
 0x318   :  { %6244 = vmatpush3.bf16.msra.mxu1 %v6486_v12  ;;  %6223 = vmatprep.subr.bf16.mxu0 %v6487_v13  ;;  %v6541_v12 = vld [vmem:[%s7369_s5 + $0x220] sm:$0xff]  }
 0x319   :  { %6245 = vmatprep.subr.bf16.mxu1 %v6488_v15  ;;  %v7201_v13 = vld [vmem:[#allocation7 + $0x8] sm:$0xff] }
 0x31a   :  { %v6542_v15 = vld [vmem:[%s7369_s5 + $0x2a0] sm:$0xff]  }
 0x31b   :  { %6224 = vmatpush3.bf16.msra.mxu0 %v6489_v20  ;;  %v6543_v20 = vld [vmem:[%s7369_s5 + $0x268] sm:$0xff]  }
 0x31c   :  { %6246 = vmatpush3.bf16.msra.mxu1 %v6490_v22  ;;  %6253 = vmatprep.subr.bf16.mxu0 %v6491_v25  ;;  %v6544_v22 = vld [vmem:[%s7369_s5 + $0x2e8] sm:$0xff]   ;;  %v850_v25 = vrot.slane %v7201_v13, %v6850_v18 }
 0x31d   :  { %6275 = vmatprep.subr.bf16.mxu1 %v6492_v27  ;;  %v858_v27 = vrot.slane %v7201_v13, %v6847_v17  ;;  %v6546_v18 = vld [vmem:[%s7369_s5 + $0x2a8] sm:$0xff]   ;;  %v6547_v17 = vld [vmem:[%s7369_s5 + $0x270] sm:$0xff]  }
 0x31e   :  { %5255 = vmatmul.mubr.bf16.vlgmr.msra.gmra.mrb[20].mxu0 %v6902_v46  ;;  %v6499_v46 = vld [vmem:[%s7369_s5 + $0x150] sm:$0xff]  }
 0x31f   :  { %5296 = vmatmul.mubr.bf16.vlgmr.msra.gmra.mrb[20].mxu1 %v6904_v48  ;;  %6254 = vmatpush3.bf16.msra.mxu0 %v6493_v29  ;;  %v6500_v48 = vld [vmem:[%s7369_s5 + $0x1d0] sm:$0xff]   ;;  %v854_v29 = vrot.slane %v7201_v13, %v6856_v21 }
 0x320   :  { %5336 = vmatprep.mubr.bf16.mxu0 %v6938_v32  ;;  %6276 = vmatpush3.bf16.msra.mxu1 %v6494_v30  ;;  %v6501_v32 = vld [vmem:[%s7369_s5 + $0x110] sm:$0xff]   ;;  %v6545_v30 = vld [vmem:[%s7369_s5 + $0x228] sm:$0xff]  }
 0x321   :  { %5377 = vmatprep.mubr.bf16.mxu1 %v6940_v36  ;;  %6255 = vmatprep.subr.bf16.mxu0 %v6495_v33  ;;  %v6503_v36 = vld [vmem:[%s7369_s5 + $0x158] sm:$0xff]   ;;  %v862_v33 = vrot.slane %v7201_v13, %v6853_v19  ;;  %v6548_v21 = vld [vmem:[%s7369_s5 + $0x2f0] sm:$0xff]  }
 0x322   :  { %6277 = vmatprep.subr.bf16.mxu1 %v6496_v34 }
 0x323   :  { %6256 = vmatpush3.bf16.msra.mxu0 %v6497_v35 }
 0x324   :  { %6278 = vmatpush3.bf16.msra.mxu1 %v6498_v37  ;;  %6257 = vmatprep.subr.bf16.mxu0 %v6499_v46 }
 0x325   :  { %6279 = vmatprep.subr.bf16.mxu1 %v6500_v48 }
 0x327   :  { %6258 = vmatpush3.bf16.msra.mxu0 %v6501_v32 }
 0x328   :  { %6280 = vmatpush3.bf16.msra.mxu1 %v6502_v38  ;;  %6259 = vmatprep.subr.bf16.mxu0 %v6503_v36  ;;  %v6549_v36 = vld [vmem:[%s7369_s5 + $0x230] sm:$0xff]  }
 0x329   :  { %6281 = vmatprep.subr.bf16.mxu1 %v6504_v39 }
 0x32b   :  { %6260 = vmatpush3.bf16.msra.mxu0 %v6505_v55 }
 0x32c   :  { %6282 = vmatpush3.bf16.msra.mxu1 %v6506_v40  ;;  %6261 = vmatprep.subr.bf16.mxu0 %v6507_v41 }
 0x32d   :  { %6283 = vmatprep.subr.bf16.mxu1 %v6508_v42  ;;  %v6550_v42 = vld [vmem:[%s7369_s5 + $0x2b0] sm:$0xff]  }
 0x32f   :  { %6262 = vmatpush3.bf16.msra.mxu0 %v6509_v43  ;;  %v6551_v43 = vld [vmem:[%s7369_s5 + $0x278] sm:$0xff]  }
 0x330   :  { %6284 = vmatpush3.bf16.msra.mxu1 %v6510_v44  ;;  %6263 = vmatprep.subr.bf16.mxu0 %v6511_v45 }
 0x331   :  { %6285 = vmatprep.subr.bf16.mxu1 %v6512_v49 }
 0x333   :  { %6264 = vmatpush3.bf16.msra.mxu0 %v6513_v52  ;;  %v6552_v52 = vld [vmem:[%s7369_s5 + $0x2f8] sm:$0xff]  }
 0x334   :  { %6286 = vmatpush3.bf16.msra.mxu1 %v6514_v54  ;;  %6265 = vmatprep.subr.bf16.mxu0 %v6515_v57 }
 0x335   :  { %6287 = vmatprep.subr.bf16.mxu1 %v6516_v58 }
 0x337   :  { %6266 = vmatpush3.bf16.msra.mxu0 %v6517_v59 }
 0x338   :  { %6288 = vmatpush3.bf16.msra.mxu1 %v6518_v61  ;;  %6267 = vmatprep.subr.bf16.mxu0 %v6519_v47 }
 0x339   :  { %6289 = vmatprep.subr.bf16.mxu1 %v6520_v62 }
 0x33b   :  { %6268 = vmatpush3.bf16.msra.mxu0 %v6521_v56  ;;  %v6553_v56 = vld [vmem:[%s7369_s5 + $0x238] sm:$0xff]  }
 0x33c   :  { %6290 = vmatpush3.bf16.msra.mxu1 %v6522_v50  ;;  %6297 = vmatprep.subr.bf16.mxu0 %v6523_v63 }
 0x33d   :  { %6319 = vmatprep.subr.bf16.mxu1 %v6524_v51 }
 0x33e   :  { %5337 = vmatmul.mubr.bf16.vlgmr.msra.gmra.mrb[24].mxu0 %v6934_v28  ;;  %v6532_v28 = vld [vmem:[%s7369_s5 + $0x2d0] sm:$0xff]  }
 0x33f   :  { %5378 = vmatmul.mubr.bf16.vlgmr.msra.gmra.mrb[24].mxu1 %v6936_v31  ;;  %6298 = vmatpush3.bf16.msra.mxu0 %v6525_v0  ;;  %v6533_v31 = vld [vmem:[%s7369_s5 + $0x210] sm:$0xff]   ;;  %v6554_v0 = vld [vmem:[%s7369_s5 + $0x2b8] sm:$0xff]  }
 0x340   :  { %6320 = vmatpush3.bf16.msra.mxu1 %v6526_v1  ;;  %6299 = vmatprep.subr.bf16.mxu0 %v6527_v2 }
 0x341   :  { %6321 = vmatprep.subr.bf16.mxu1 %v6528_v53  ;;  %v6555_v53 = vld [vmem:[%s7369_s5 + $0x340] sm:$0xff]  }
 0x343   :  { %6300 = vmatpush3.bf16.msra.mxu0 %v6529_v3  ;;  %v6556_v3 = vld [vmem:[%s7369_s5 + $0x3c0] sm:$0xff]  }
 0x344   :  { %6322 = vmatpush3.bf16.msra.mxu1 %v6530_v4  ;;  %6301 = vmatprep.subr.bf16.mxu0 %v6531_v5  ;;  %v6557_v5 = vld [vmem:[%s7369_s5 + $0x300] sm:$0xff]  }
 0x345   :  { %6323 = vmatprep.subr.bf16.mxu1 %v6532_v28  ;;  %v6558_v28 = vld [vmem:[%s7369_s5 + $0x380] sm:$0xff]  }
 0x347   :  { %6302 = vmatpush3.bf16.msra.mxu0 %v6533_v31  ;;  %v6559_v31 = vld [vmem:[%s7369_s5 + $0x348] sm:$0xff]  }
 0x348   :  { %6324 = vmatpush3.bf16.msra.mxu1 %v6534_v6  ;;  %6303 = vmatprep.subr.bf16.mxu0 %v6535_v7  ;;  %v6560_v6 = vld [vmem:[%s7369_s5 + $0x3c8] sm:$0xff]  }
 0x349   :  { %6325 = vmatprep.subr.bf16.mxu1 %v6536_v8  ;;  %v6561_v7 = vld [vmem:[%s7369_s5 + $0x308] sm:$0xff]  }
 0x34a   :  { %v6562_v8 = vld [vmem:[%s7369_s5 + $0x388] sm:$0xff]  }
 0x34b   :  { %6304 = vmatpush3.bf16.msra.mxu0 %v6537_v60  ;;  %v6563_v60 = vld [vmem:[%s7369_s5 + $0x350] sm:$0xff]  }
 0x34c   :  { %6326 = vmatpush3.bf16.msra.mxu1 %v6538_v9  ;;  %6305 = vmatprep.subr.bf16.mxu0 %v6539_v10  ;;  %v6564_v9 = vld [vmem:[%s7369_s5 + $0x3d0] sm:$0xff]  }
 0x34d   :  { %6327 = vmatprep.subr.bf16.mxu1 %v6540_v11  ;;  %v6565_v10 = vld [vmem:[%s7369_s5 + $0x310] sm:$0xff]  }
 0x34e   :  { %v6566_v11 = vld [vmem:[%s7369_s5 + $0x390] sm:$0xff]  }
 0x34f   :  { %6306 = vmatpush3.bf16.msra.mxu0 %v6541_v12  ;;  %v6567_v12 = vld [vmem:[%s7369_s5 + $0x358] sm:$0xff]  }
 0x350   :  { %6328 = vmatpush3.bf16.msra.mxu1 %v6542_v15  ;;  %6307 = vmatprep.subr.bf16.mxu0 %v6543_v20  ;;  %v6568_v15 = vld [vmem:[%s7369_s5 + $0x3d8] sm:$0xff]  }
 0x351   :  { %v3876_v34 = vpop.f32.mrb[12].mxu0  ;;  %6329 = vmatprep.subr.bf16.mxu1 %v6544_v22  ;;  %v6569_v20 = vld [vmem:[%s7369_s5 + $0x318] sm:$0xff]  }
 0x352   :  { %v6401_v35 = vadd.f32 %v3876_v34, %v850_v25  ;;  %v3962_v37 = vpop.f32.mrb[12].mxu1  ;;  %v3878_v46 = vpop.f32.mrb[13].mxu0  ;;  %v6570_v22 = vld [vmem:[%s7369_s5 + $0x398] sm:$0xff]   ;;  %v6578_v34 = vld [vmem:[%s7369_s5 + $0x3a8] sm:$0xff]  }
 0x353   :  { %v6405_v48 = vadd.f32 %v3962_v37, %v858_v27  ;;  %v6402_v19 = vadd.f32 %v3878_v46, %v854_v29  ;;  %v3964_v32 = vpop.f32.mrb[13].mxu1  ;;  %v3880_v38 = vpop.f32.mrb[14].mxu0  ;;  %6308 = vmatpush3.bf16.msra.mxu0 %v6545_v30  ;;  %v6574_v30 = vld [vmem:[%s7369_s5 + $0x3a0] sm:$0xff]   ;;  %v6581_v37 = vld [vmem:[%s7369_s5 + $0x330] sm:$0xff]  }
 0x354   :  { %v6406_v39 = vadd.f32 %v3964_v32, %v862_v33  ;;  %v6403_v55 = vadd.f32 %v3880_v38, %v850_v25  ;;  %v3966_v40 = vpop.f32.mrb[14].mxu1  ;;  %6330 = vmatpush3.bf16.msra.mxu1 %v6546_v18  ;;  %v3882_v41 = vpop.f32.mrb[15].mxu0  ;;  %6309 = vmatprep.subr.bf16.mxu0 %v6547_v17  ;;  %v4151_v54 = vmax.f32 %v6401_v35, 0.0  ;;  %v6571_v25 = vld [vmem:[%s7369_s5 + $0x360] sm:$0xff]   ;;  %v6576_v18 = vld [vmem:[%s7369_s5 + $0x3e8] sm:$0xff]   ;;  %v6580_v35 = vld [vmem:[%s7369_s5 + $0x3f0] sm:$0xff]  }
 0x355   :  { %v6407_v44 = vadd.f32 %v3966_v40, %v858_v27  ;;  %v6404_v45 = vadd.f32 %v3882_v41, %v854_v29  ;;  %v3968_v49 = vpop.f32.mrb[15].mxu1  ;;  %6331 = vmatprep.subr.bf16.mxu1 %v6548_v21  ;;  %v4153_v59 = vmax.f32 %v6405_v48, 0.0  ;;  %v4152_v61 = vmax.f32 %v6402_v19, 0.0  ;;  %v6572_v27 = vld [vmem:[%s7369_s5 + $0x3e0] sm:$0xff]   ;;  %v6577_v17 = vld [vmem:[%s7369_s5 + $0x328] sm:$0xff]   ;;  %v6579_v21 = vld [vmem:[%s7369_s5 + $0x370] sm:$0xff]  }
 0x356   :  { %v4167_v57 = vmax.f32 %v6403_v55, 0.0  ;;  %v6408_v58 = vadd.f32 %v3968_v49, %v862_v33  ;;  %v4154_v50 = vmax.f32 %v6406_v39, 0.0  ;;  %v6573_v29 = vld [vmem:[%s7369_s5 + $0x320] sm:$0xff]   ;;  %v6575_v33 = vld [vmem:[%s7369_s5 + $0x368] sm:$0xff]   ;;  %v6582_v46 = vld [vmem:[%s7369_s5 + $0x3b0] sm:$0xff]   ;;  %v874_v39 = vrot.slane %v7201_v13, %v841_v23 }
 0x357   :  { %v4169_v47 = vmax.f32 %v6407_v44, 0.0  ;;  %v4168_v62 = vmax.f32 %v6404_v45, 0.0  ;;  %6310 = vmatpush3.bf16.msra.mxu0 %v6549_v36  ;;  %v6583_v48 = vld [vmem:[%s7369_s5 + $0x378] sm:$0xff]   ;;  %v866_v36 = vrot.slane %v7201_v13, %v833_v14  ;;  %v870_v55 = vrot.slane %v7201_v13, %v837_v24 }
 0x358   :  { %v4183_v63 = vpack.c.bf16 %v4167_v57, %v4151_v54  ;;  %v4170_v51 = vmax.f32 %v6408_v58, 0.0  ;;  %6332 = vmatpush3.bf16.msra.mxu1 %v6550_v42  ;;  %6311 = vmatprep.subr.bf16.mxu0 %v6551_v43  ;;  %v6584_v19 = vld [vmem:[%s7369_s5 + $0x3f8] sm:$0xff]   ;;  %v878_v40 = vrot.slane %v7201_v13, %v845_v26 }
 0x359   :  { %v4185_v1 = vpack.c.bf16 %v4169_v47, %v4153_v59  ;;  %v4184_v2 = vpack.c.bf16 %v4168_v62, %v4152_v61  ;;  %6333 = vmatprep.subr.bf16.mxu1 %v6552_v52  ;;  %v6585_v32 = vld [vmem:[%s7369_s5 + $0x338] sm:$0xff]  }
 0x35a   :  { %v4186_v4 = vpack.c.bf16 %v4170_v51, %v4154_v50  ;;  %v6586_v38 = vld [vmem:[%s7369_s5 + $0x3b8] sm:$0xff]  }
 0x35b   :  { %6312 = vmatpush3.bf16.msra.mxu0 %v6553_v56  ;;  %5418 = vmatprep.mubr.bf16.mxu0 %v4184_v2 }
 0x35c   :  { %6334 = vmatpush3.bf16.msra.mxu1 %v6554_v0  ;;  %5459 = vmatprep.mubr.bf16.mxu1 %v4186_v4 }
 0x35d   :  { %6341 = vmatprep.subr.bf16.mxu0 %v6555_v53  ;;  %6363 = vmatprep.subr.bf16.mxu1 %v6556_v3 }
 0x35e   :  { %5419 = vmatmul.mubr.bf16.vlgmr.msra.gmra.mrb[28].mxu0 %v4183_v63 }
 0x35f   :  { %5460 = vmatmul.mubr.bf16.vlgmr.msra.gmra.mrb[28].mxu1 %v4185_v1  ;;  %6342 = vmatpush3.bf16.msra.mxu0 %v6557_v5  ;;  %v6080_v5 = vld [vmem:[#allocation9] ss:$0 sm:$0xff] }
 0x360   :  { %6364 = vmatpush3.bf16.msra.mxu1 %v6558_v28  ;;  %6343 = vmatprep.subr.bf16.mxu0 %v6559_v31 }
 0x361   :  { %6365 = vmatprep.subr.bf16.mxu1 %v6560_v6 }
 0x363   :  { %6344 = vmatpush3.bf16.msra.mxu0 %v6561_v7 }
 0x364   :  { %6366 = vmatpush3.bf16.msra.mxu1 %v6562_v8  ;;  %6345 = vmatprep.subr.bf16.mxu0 %v6563_v60 }
 0x365   :  { %6367 = vmatprep.subr.bf16.mxu1 %v6564_v9 }
 0x367   :  { %6346 = vmatpush3.bf16.msra.mxu0 %v6565_v10 }
 0x368   :  { %6368 = vmatpush3.bf16.msra.mxu1 %v6566_v11  ;;  %6347 = vmatprep.subr.bf16.mxu0 %v6567_v12 }
 0x369   :  { %6369 = vmatprep.subr.bf16.mxu1 %v6568_v15 }
 0x36b   :  { %6348 = vmatpush3.bf16.msra.mxu0 %v6569_v20 }
 0x36c   :  { %6370 = vmatpush3.bf16.msra.mxu1 %v6570_v22  ;;  %6349 = vmatprep.subr.bf16.mxu0 %v6571_v25 }
 0x36d   :  { %6371 = vmatprep.subr.bf16.mxu1 %v6572_v27 }
 0x36f   :  { %6350 = vmatpush3.bf16.msra.mxu0 %v6573_v29 }
 0x370   :  { %6372 = vmatpush3.bf16.msra.mxu1 %v6574_v30  ;;  %6351 = vmatprep.subr.bf16.mxu0 %v6575_v33 }
 0x371   :  { %6373 = vmatprep.subr.bf16.mxu1 %v6576_v18 }
 0x373   :  { %6352 = vmatpush3.bf16.msra.mxu0 %v6577_v17 }
 0x374   :  { %6374 = vmatpush3.bf16.msra.mxu1 %v6578_v34  ;;  %6353 = vmatprep.subr.bf16.mxu0 %v6579_v21 }
 0x375   :  { %6375 = vmatprep.subr.bf16.mxu1 %v6580_v35 }
 0x377   :  { %6354 = vmatpush3.bf16.msra.mxu0 %v6581_v37 }
 0x378   :  { %6376 = vmatpush3.bf16.msra.mxu1 %v6582_v46  ;;  %6355 = vmatprep.subr.bf16.mxu0 %v6583_v48 }
 0x379   :  { %6377 = vmatprep.subr.bf16.mxu1 %v6584_v19 }
 0x37b   :  { %6356 = vmatpush3.bf16.msra.mxu0 %v6585_v32 }
 0x37c   :  { %6378 = vmatpush3.bf16.msra.mxu1 %v6586_v38 }
 0x3d1   :  { %v4048_v41 = vpop.f32.mrb[16].mxu0 }
 0x3d2   :  { %v6409_v42 = vadd.f32 %v4048_v41, %v866_v36  ;;  %v4134_v43 = vpop.f32.mrb[16].mxu1  ;;  %v4050_v44 = vpop.f32.mrb[17].mxu0 }
 0x3d3   :  { %v6413_v45 = vadd.f32 %v4134_v43, %v874_v39  ;;  %v6410_v49 = vadd.f32 %v4050_v44, %v870_v55  ;;  %v4136_v52 = vpop.f32.mrb[17].mxu1  ;;  %v4052_v14 = vpop.f32.mrb[18].mxu0 }
 0x3d4   :  { %v6414_v54 = vadd.f32 %v4136_v52, %v878_v40  ;;  %v6411_v57 = vadd.f32 %v4052_v14, %v866_v36  ;;  %v4138_v58 = vpop.f32.mrb[18].mxu1  ;;  %v4054_v23 = vpop.f32.mrb[19].mxu0  ;;  %v4155_v24 = vmax.f32 %v6409_v42, 0.0 }
 0x3d5   :  { %v6415_v59 = vadd.f32 %v4138_v58, %v874_v39  ;;  %v6412_v61 = vadd.f32 %v4054_v23, %v870_v55  ;;  %v4140_v47 = vpop.f32.mrb[19].mxu1  ;;  %v4157_v56 = vmax.f32 %v6413_v45, 0.0  ;;  %v4156_v26 = vmax.f32 %v6410_v49, 0.0 }
 0x3d6   :  { %v4171_v62 = vmax.f32 %v6411_v57, 0.0  ;;  %v6416_v16 = vadd.f32 %v4140_v47, %v878_v40  ;;  %v4158_v63 = vmax.f32 %v6414_v54, 0.0 }
 0x3d7   :  { %v4173_v13 = vmax.f32 %v6415_v59, 0.0  ;;  %v4172_v50 = vmax.f32 %v6412_v61, 0.0 }
 0x3d8   :  { %v4187_v51 = vpack.c.bf16 %v4171_v62, %v4155_v24  ;;  %v4174_v0 = vmax.f32 %v6416_v16, 0.0 }
 0x3d9   :  { %v4189_v1 = vpack.c.bf16 %v4173_v13, %v4157_v56  ;;  %v4188_v2 = vpack.c.bf16 %v4172_v50, %v4156_v26 }
 0x3da   :  { %v4190_v53 = vpack.c.bf16 %v4174_v0, %v4158_v63 }
 0x3db   :  { %5500 = vmatprep.mubr.bf16.mxu0 %v4188_v2 }
 0x3dc   :  { %5541 = vmatprep.mubr.bf16.mxu1 %v4190_v53  ;;  %5501 = vmatmul.mubr.bf16.vlgmr.msra.gmra.mrb[32].mxu0 %v4187_v51 }
 0x3dd   :  { %5542 = vmatmul.mubr.bf16.vlgmr.msra.gmra.mrb[32].mxu1 %v4189_v1 }
 0x3f1   :  { %v6225_v3 = vpop.f32.mrb[20].mxu0 }
 0x3f2   :  { %v6247_v4 = vpop.f32.mrb[20].mxu1  ;;  %v6226_v28 = vpop.f32.mrb[21].mxu0 }
 0x3f3   :  { %v6227_v31 = vadd.f32 %v6226_v28, %v6225_v3  ;;  %v6248_v6 = vpop.f32.mrb[21].mxu1  ;;  %v6228_v7 = vpop.f32.mrb[22].mxu0 }
 0x3f4   :  { %v6249_v8 = vadd.f32 %v6248_v6, %v6247_v4  ;;  %v6250_v60 = vpop.f32.mrb[22].mxu1  ;;  %v6229_v9 = vpop.f32.mrb[23].mxu0 }
 0x3f5   :  { %v5257_v10 = vadd.f32 %v6227_v31, %v6080_v5  ;;  %v6230_v11 = vadd.f32 %v6229_v9, %v6228_v7  ;;  %v6251_v12 = vpop.f32.mrb[23].mxu1 }
 0x3f6   :  { %v6252_v15 = vadd.f32 %v6251_v12, %v6250_v60 }
 0x3f7   :  { %v5298_v20 = vadd.f32 %v6249_v8, %v5257_v10  ;;  %v5260_v22 = vadd.f32 %v6230_v11, %v6080_v5 }
 0x3f9   :  { %v5301_v25 = vadd.f32 %v6252_v15, %v5260_v22 }
 0x411   :  { %v6269_v27 = vpop.f32.mrb[24].mxu0 }
 0x412   :  { %v6291_v29 = vpop.f32.mrb[24].mxu1  ;;  %v6270_v30 = vpop.f32.mrb[25].mxu0 }
 0x413   :  { %v6271_v33 = vadd.f32 %v6270_v30, %v6269_v27  ;;  %v6292_v18 = vpop.f32.mrb[25].mxu1  ;;  %v6272_v17 = vpop.f32.mrb[26].mxu0 }
 0x414   :  { %v6293_v34 = vadd.f32 %v6292_v18, %v6291_v29  ;;  %v6294_v21 = vpop.f32.mrb[26].mxu1  ;;  %v6273_v35 = vpop.f32.mrb[27].mxu0 }
 0x415   :  { %v5339_v37 = vadd.f32 %v6271_v33, %v5298_v20  ;;  %v6274_v46 = vadd.f32 %v6273_v35, %v6272_v17  ;;  %v6295_v48 = vpop.f32.mrb[27].mxu1 }
 0x416   :  { %v6296_v19 = vadd.f32 %v6295_v48, %v6294_v21 }
 0x417   :  { %v5380_v32 = vadd.f32 %v6293_v34, %v5339_v37  ;;  %v5342_v38 = vadd.f32 %v6274_v46, %v5301_v25 }
 0x419   :  { %v5383_v36 = vadd.f32 %v6296_v19, %v5342_v38 }
 0x431   :  { %v6313_v39 = vpop.f32.mrb[28].mxu0 }
 0x432   :  { %v6335_v55 = vpop.f32.mrb[28].mxu1  ;;  %v6314_v40 = vpop.f32.mrb[29].mxu0 }
 0x433   :  { %v6315_v41 = vadd.f32 %v6314_v40, %v6313_v39  ;;  %v6336_v42 = vpop.f32.mrb[29].mxu1  ;;  %v6316_v43 = vpop.f32.mrb[30].mxu0 }
 0x434   :  { %v6337_v44 = vadd.f32 %v6336_v42, %v6335_v55  ;;  %v6338_v45 = vpop.f32.mrb[30].mxu1  ;;  %v6317_v49 = vpop.f32.mrb[31].mxu0 }
 0x435   :  { %v5421_v52 = vadd.f32 %v6315_v41, %v5380_v32  ;;  %v6318_v14 = vadd.f32 %v6317_v49, %v6316_v43  ;;  %v6339_v54 = vpop.f32.mrb[31].mxu1 }
 0x436   :  { %v6340_v57 = vadd.f32 %v6339_v54, %v6338_v45 }
 0x437   :  { %v5462_v58 = vadd.f32 %v6337_v44, %v5421_v52  ;;  %v5424_v23 = vadd.f32 %v6318_v14, %v5383_v36 }
 0x439   :  { %v5465_v59 = vadd.f32 %v6340_v57, %v5424_v23 }
 0x4af   :  { %v6357_v61 = vpop.f32.mrb[32].mxu0 }
 0x4b0   :  { %v6379_v47 = vpop.f32.mrb[32].mxu1  ;;  %v6358_v24 = vpop.f32.mrb[33].mxu0 }
 0x4b1   :  { %v6359_v62 = vadd.f32 %v6358_v24, %v6357_v61  ;;  %v6380_v16 = vpop.f32.mrb[33].mxu1  ;;  %v6360_v56 = vpop.f32.mrb[34].mxu0 }
 0x4b2   :  { %v6381_v26 = vadd.f32 %v6380_v16, %v6379_v47  ;;  %v6382_v13 = vpop.f32.mrb[34].mxu1  ;;  %v6361_v50 = vpop.f32.mrb[35].mxu0 }
 0x4b3   :  { %v5503_v63 = vadd.f32 %v6359_v62, %v5462_v58  ;;  %v6362_v51 = vadd.f32 %v6361_v50, %v6360_v56  ;;  %v6383_v0 = vpop.f32.mrb[35].mxu1 }
 0x4b4   :  { %v6384_v1 = vadd.f32 %v6383_v0, %v6382_v13 }
 0x4b5   :  { %v5544_v2 = vadd.f32 %v6381_v26, %v5503_v63  ;;  %v5506_v53 = vadd.f32 %v6362_v51, %v5465_v59 }
 0x4b7   :  { %5551 = vst.msk [vmem:[%s7371_s7] sm:$0xff] %vm5550_vm2, %v5544_v2  ;;  %v5547_v3 = vadd.f32 %v6384_v1, %v5506_v53 }
 0x4b9   :  { %5552 = vst.msk [vmem:[%s7371_s7 + $0x8] sm:$0xff] %vm5550_vm2, %v5547_v3 }
 0x4ba   :  { %5557 = vsyncpa [#allocation3], 1 }
 0x4bb   :  { %5558 = vsyncpa [#allocation5], 1 }
 0x4bc   :  { %5559 = vsyncpa [#allocation8], 1 }

</bundles_post_ra>
